<compile_context>
chip_gen: v6e
topology: v6e:2x2x1
jax: 0.10.0
libtpu: 0.0.40
codegen_flags: <defaults>
</compile_context>

<pallas_src>
import jax
import jax.numpy as jnp
from jax.experimental import pallas as pl
from jax.experimental.pallas import tpu as pltpu

D_IN = 28 * 28          # 784
D_H = 28 * 28 * 4       # 3136
D_H_PAD = 3328          # 26 * 128  (minimal 128-multiple >= 3136)
TN = 1664               # D_H_PAD / 2  -> grid of 2 streaming steps
D_OUT = 10
D_OUT_PAD = 128         # lane-dense padded fc3 output width
B_PAD = 16              # full bf16 sublane-packed vreg in the M dimension


def _mlp_fused_kernel(x_ref, w1_ref, b1_ref, w2_ref, b2_ref, w3_ref, b3_ref,
                      o_ref, h1_ref, acc_ref):
    """Fused fc1+relu (once), streamed fc2+relu / fc3-accumulate per tile.

    x:(Bp,784)f32  w1:(784,784)bf16  w2 tile:(784,TN)bf16  w3 tile:(TN,128)bf16
    biases f32; o:(Bp,128)f32.  h1 scratch (Bp,784)bf16, acc scratch (Bp,128)f32.
    """
    j = pl.program_id(0)

    @pl.when(j == 0)
    def _():
        x_bf16 = x_ref[...].astype(jnp.bfloat16)          # in-kernel cast (VPU)
        h1 = jnp.dot(x_bf16, w1_ref[...], preferred_element_type=jnp.float32)
        h1 = jnp.maximum(h1 + b1_ref[...], 0.0)
        h1_ref[...] = h1.astype(jnp.bfloat16)
        acc_ref[...] = jnp.zeros_like(acc_ref)

    h2 = jnp.dot(h1_ref[...], w2_ref[...], preferred_element_type=jnp.float32)
    h2 = jnp.maximum(h2 + b2_ref[...], 0.0)
    acc_ref[...] += jnp.dot(h2.astype(jnp.bfloat16), w3_ref[...],
                            preferred_element_type=jnp.float32)

    @pl.when(j == pl.num_programs(0) - 1)
    def _():
        o_ref[...] = (acc_ref[...] + b3_ref[...]).astype(o_ref.dtype)


def _round_up(x, m):
    return (x + m - 1) // m * m


def mlp_pallas(x_flat, params):
    """Run the fused 3-layer MLP.  x_flat: (B, 784) f32 -> (B, 10) f32."""
    (w1, b1), (w2p, b2p), (w3p, b3p) = params
    B = x_flat.shape[0]
    Bp = _round_up(max(B, B_PAD), B_PAD)

    # Pad the batch (rows are independent through all three layers; padded
    # rows are dropped afterwards).  Keep f32 — the bf16 cast happens in-kernel.
    xp = jnp.zeros((Bp, D_IN), jnp.float32).at[:B, :].set(x_flat)

    resident = lambda j: (0, 0)
    n_tiles = D_H_PAD // TN

    out = pl.pallas_call(
        _mlp_fused_kernel,
        out_shape=jax.ShapeDtypeStruct((Bp, D_OUT_PAD), jnp.float32),
        grid=(n_tiles,),
        in_specs=[
            pl.BlockSpec((Bp, D_IN), resident),          # x        (resident)
            pl.BlockSpec((D_IN, D_IN), resident),        # w1       (resident)
            pl.BlockSpec((1, D_IN), resident),           # b1       (resident)
            pl.BlockSpec((D_IN, TN), lambda j: (0, j)),  # w2 tile  (streamed)
            pl.BlockSpec((1, TN), lambda j: (0, j)),     # b2 tile  (streamed)
            pl.BlockSpec((TN, D_OUT_PAD), lambda j: (j, 0)),  # w3 tile (streamed)
            pl.BlockSpec((1, D_OUT_PAD), resident),      # b3       (resident)
        ],
        out_specs=pl.BlockSpec((Bp, D_OUT_PAD), resident),
        scratch_shapes=[
            pltpu.VMEM((Bp, D_IN), jnp.bfloat16),        # h1 (fc1 activations)
            pltpu.VMEM((Bp, D_OUT_PAD), jnp.float32),    # fc3 accumulator
        ],
        compiler_params=pltpu.CompilerParams(
            dimension_semantics=("arbitrary",),
            # ~8 MiB actually used (resident w1 + double-buffered w2/w3 tiles);
            # 32 MiB is safe on v5e/v6e (128 MiB phys) and v7x (64 MiB phys).
            vmem_limit_bytes=32 << 20,
        ),
    )(xp, w1, b1, w2p, b2p, w3p, b3p)
    return out[:B, :D_OUT]


def init_params(key):
    """nn.Linear-style init; weights stored (in,out) bf16, biases (1,out) f32.

    w2/b2 are zero-padded 3136 -> 3328 columns (streaming-tile alignment) and
    w3/b3 from 10 -> 128 output columns (lane-dense store); the padded fc2
    columns produce relu(0)=0 activations that meet zero fc3 rows, and the
    padded fc3 columns are sliced away by the wrapper, so results are exact.
    """
    ks = jax.random.split(key, 6)

    def uniform_linear(kw, kb, fan_in, fan_out):
        # Matches torch's default U(-1/sqrt(fan_in), 1/sqrt(fan_in)) init.
        bound = 1.0 / jnp.sqrt(jnp.float32(fan_in))
        w = jax.random.uniform(kw, (fan_in, fan_out), jnp.float32, -bound, bound)
        b = jax.random.uniform(kb, (fan_out,), jnp.float32, -bound, bound)
        return w, b

    w1, b1 = uniform_linear(ks[0], ks[1], D_IN, D_IN)
    w2, b2 = uniform_linear(ks[2], ks[3], D_IN, D_H)
    w3, b3 = uniform_linear(ks[4], ks[5], D_H, D_OUT)

    w2p = jnp.zeros((D_IN, D_H_PAD), jnp.float32).at[:, :D_H].set(w2)
    b2p = jnp.zeros((D_H_PAD,), jnp.float32).at[:D_H].set(b2)
    w3p = jnp.zeros((D_H_PAD, D_OUT_PAD), jnp.float32).at[:D_H, :D_OUT].set(w3)
    b3p = jnp.zeros((D_OUT_PAD,), jnp.float32).at[:D_OUT].set(b3)

    return (
        (w1.astype(jnp.bfloat16), b1.reshape(1, D_IN)),
        (w2p.astype(jnp.bfloat16), b2p.reshape(1, D_H_PAD)),
        (w3p.astype(jnp.bfloat16), b3p.reshape(1, D_OUT_PAD)),
    )


@jax.jit
def mlp_forward(x, params):
    # torch.flatten(x, start_dim=1, end_dim=-1)
    xf = x.reshape(x.shape[0], -1)
    return mlp_pallas(xf, params)


def mlp_reference_bf16(x, params):
    """Plain-JAX reference applying the same bf16 casts as the kernel."""
    (w1, b1), (w2p, b2p), (w3p, b3p) = params
    xf = x.reshape(x.shape[0], -1).astype(jnp.bfloat16)
    h1 = jnp.maximum(
        jnp.dot(xf, w1, preferred_element_type=jnp.float32) + b1, 0.0)
    h2 = jnp.maximum(
        jnp.dot(h1.astype(jnp.bfloat16), w2p,
                preferred_element_type=jnp.float32) + b2p, 0.0)
    y = jnp.dot(h2.astype(jnp.bfloat16), w3p,
                preferred_element_type=jnp.float32) + b3p
    return y[:, :D_OUT]


if __name__ == "__main__":
    key = jax.random.PRNGKey(0)
    k_params, k_x = jax.random.split(key)
    params = init_params(k_params)

    # Small MNIST-like batch, NCHW (batch, 1, 28, 28).
    x = jax.random.normal(k_x, (2, 1, 28, 28), dtype=jnp.float32)

    out = mlp_forward(x, params)
    out = jax.block_until_ready(out)
    assert out.shape == (2, D_OUT), out.shape

    # Tight check vs a plain-JAX reference using the same bf16 weights/casts.
    ref = mlp_reference_bf16(x, params)
    assert jnp.allclose(out, ref, atol=1e-2, rtol=1e-2), "mismatch vs bf16 ref"

    # Loose check vs an f32-activation reference (bf16 activation rounding is
    # the only remaining difference).
    xf = x.reshape(x.shape[0], -1)
    (w1, b1), (w2p, b2p), (w3p, b3p) = params
    ref32 = jnp.maximum(xf @ w1.astype(jnp.float32) + b1, 0.0)
    ref32 = jnp.maximum(ref32 @ w2p.astype(jnp.float32) + b2p, 0.0)
    ref32 = (ref32 @ w3p.astype(jnp.float32) + b3p)[:, :D_OUT]
    assert jnp.allclose(out, ref32, atol=1e-1, rtol=1e-1), "mismatch vs f32 ref"

    print("KERNEL_OK")
</pallas_src>

<mosaic_0001>
module attributes {stable_mosaic.version = 11 : i64} {
  func.func @_mlp_fused_kernel(%arg0: i32, %arg1: memref<16x784xf32, #tpu.memory_space<vmem>>, %arg2: memref<784x784xbf16, #tpu.memory_space<vmem>>, %arg3: memref<1x784xf32, #tpu.memory_space<vmem>>, %arg4: memref<784x1664xbf16, #tpu.memory_space<vmem>>, %arg5: memref<1x1664xf32, #tpu.memory_space<vmem>>, %arg6: memref<1664x128xbf16, #tpu.memory_space<vmem>>, %arg7: memref<1x128xf32, #tpu.memory_space<vmem>>, %arg8: memref<16x128xf32, #tpu.memory_space<vmem>>, %arg9: memref<16x784xbf16, #tpu.memory_space<vmem>>, %arg10: memref<16x128xf32, #tpu.memory_space<vmem>>) attributes {dimension_semantics = [#tpu.dimension_semantics<arbitrary>], iteration_bounds = array<i64: 2>, scalar_prefetch = 0 : i64, scratch_operands = 2 : i64, tpu.core_type = #tpu.core_type<tc>, window_params = [{pipeline_mode = #tpu.pipeline_mode<synchronous>, transform_indices = @transform_0, window_bounds = array<i64: 16, 784>}, {pipeline_mode = #tpu.pipeline_mode<synchronous>, transform_indices = @transform_1, window_bounds = array<i64: 784, 784>}, {pipeline_mode = #tpu.pipeline_mode<synchronous>, transform_indices = @transform_2, window_bounds = array<i64: 1, 784>}, {transform_indices = @transform_3, window_bounds = array<i64: 784, 1664>}, {transform_indices = @transform_4, window_bounds = array<i64: 1, 1664>}, {transform_indices = @transform_5, window_bounds = array<i64: 1664, 128>}, {pipeline_mode = #tpu.pipeline_mode<synchronous>, transform_indices = @transform_6, window_bounds = array<i64: 1, 128>}, {pipeline_mode = #tpu.pipeline_mode<synchronous>, transform_indices = @transform_7, window_bounds = array<i64: 16, 128>}]} {
    %c0_i32 = arith.constant 0 : i32
    %0 = arith.cmpi eq, %arg0, %c0_i32 : i32
    %1 = arith.extui %0 : i1 to i32
    %c0_i32_0 = arith.constant 0 : i32
    %2 = arith.cmpi ne, %1, %c0_i32_0 : i32
    scf.if %2 {
      %c0_15 = arith.constant 0 : index
      %c0_16 = arith.constant 0 : index
      %20 = vector.load %arg1[%c0_15, %c0_16] : memref<16x784xf32, #tpu.memory_space<vmem>>, vector<16x784xf32>
      %21 = arith.truncf %20 : vector<16x784xf32> to vector<16x784xbf16>
      %c0_17 = arith.constant 0 : index
      %c0_18 = arith.constant 0 : index
      %22 = vector.load %arg2[%c0_17, %c0_18] : memref<784x784xbf16, #tpu.memory_space<vmem>>, vector<784x784xbf16>
      %cst_19 = arith.constant dense<0.000000e+00> : vector<16x784xf32>
      %23 = tpu.matmul %21, %22, %cst_19 {dimension_numbers = #tpu.dot_dimension_numbers<[1], [0], [0], [1], [0, 0, 1, 1], [], []>} : vector<16x784xbf16>, vector<784x784xbf16>, vector<16x784xf32> -> vector<16x784xf32>
      %c0_20 = arith.constant 0 : index
      %c0_21 = arith.constant 0 : index
      %24 = vector.load %arg3[%c0_20, %c0_21] : memref<1x784xf32, #tpu.memory_space<vmem>>, vector<1x784xf32>
      %25 = vector.broadcast %24 : vector<1x784xf32> to vector<16x784xf32>
      %26 = arith.addf %23, %25 : vector<16x784xf32>
      %cst_22 = arith.constant 0.000000e+00 : f32
      %27 = vector.broadcast %cst_22 : f32 to vector<16x784xf32>
      %28 = arith.maximumf %26, %27 : vector<16x784xf32>
      %29 = arith.truncf %28 : vector<16x784xf32> to vector<16x784xbf16>
      %c0_23 = arith.constant 0 : index
      %c0_24 = arith.constant 0 : index
      %30 = vector.load %arg9[%c0_23, %c0_24] : memref<16x784xbf16, #tpu.memory_space<vmem>>, vector<16x784xbf16>
      tpu.vector_store %arg9[%c0_23, %c0_24], %29 {strides = array<i32>} : memref<16x784xbf16, #tpu.memory_space<vmem>>, vector<16x784xbf16>,
      %cst_25 = arith.constant 0.000000e+00 : f32
      %31 = vector.broadcast %cst_25 : f32 to vector<16x128xf32>
      %c0_26 = arith.constant 0 : index
      %c0_27 = arith.constant 0 : index
      %32 = vector.load %arg10[%c0_26, %c0_27] : memref<16x128xf32, #tpu.memory_space<vmem>>, vector<16x128xf32>
      tpu.vector_store %arg10[%c0_26, %c0_27], %31 {strides = array<i32>} : memref<16x128xf32, #tpu.memory_space<vmem>>, vector<16x128xf32>,
    } else {
    }
    %c0 = arith.constant 0 : index
    %c0_1 = arith.constant 0 : index
    %3 = vector.load %arg9[%c0, %c0_1] : memref<16x784xbf16, #tpu.memory_space<vmem>>, vector<16x784xbf16>
    %c0_2 = arith.constant 0 : index
    %c0_3 = arith.constant 0 : index
    %4 = vector.load %arg4[%c0_2, %c0_3] : memref<784x1664xbf16, #tpu.memory_space<vmem>>, vector<784x1664xbf16>
    %cst = arith.constant dense<0.000000e+00> : vector<16x1664xf32>
    %5 = tpu.matmul %3, %4, %cst {dimension_numbers = #tpu.dot_dimension_numbers<[1], [0], [0], [1], [0, 0, 1, 1], [], []>} : vector<16x784xbf16>, vector<784x1664xbf16>, vector<16x1664xf32> -> vector<16x1664xf32>
    %c0_4 = arith.constant 0 : index
    %c0_5 = arith.constant 0 : index
    %6 = vector.load %arg5[%c0_4, %c0_5] : memref<1x1664xf32, #tpu.memory_space<vmem>>, vector<1x1664xf32>
    %7 = vector.broadcast %6 : vector<1x1664xf32> to vector<16x1664xf32>
    %8 = arith.addf %5, %7 : vector<16x1664xf32>
    %cst_6 = arith.constant 0.000000e+00 : f32
    %9 = vector.broadcast %cst_6 : f32 to vector<16x1664xf32>
    %10 = arith.maximumf %8, %9 : vector<16x1664xf32>
    %c0_7 = arith.constant 0 : index
    %c0_8 = arith.constant 0 : index
    %11 = vector.load %arg10[%c0_7, %c0_8] : memref<16x128xf32, #tpu.memory_space<vmem>>, vector<16x128xf32>
    %12 = arith.truncf %10 : vector<16x1664xf32> to vector<16x1664xbf16>
    %c0_9 = arith.constant 0 : index
    %c0_10 = arith.constant 0 : index
    %13 = vector.load %arg6[%c0_9, %c0_10] : memref<1664x128xbf16, #tpu.memory_space<vmem>>, vector<1664x128xbf16>
    %cst_11 = arith.constant dense<0.000000e+00> : vector<16x128xf32>
    %14 = tpu.matmul %12, %13, %cst_11 {dimension_numbers = #tpu.dot_dimension_numbers<[1], [0], [0], [1], [0, 0, 1, 1], [], []>} : vector<16x1664xbf16>, vector<1664x128xbf16>, vector<16x128xf32> -> vector<16x128xf32>
    %15 = arith.addf %11, %14 : vector<16x128xf32>
    %c0_12 = arith.constant 0 : index
    %c0_13 = arith.constant 0 : index
    %16 = vector.load %arg10[%c0_12, %c0_13] : memref<16x128xf32, #tpu.memory_space<vmem>>, vector<16x128xf32>
    tpu.vector_store %arg10[%c0_12, %c0_13], %15 {strides = array<i32>} : memref<16x128xf32, #tpu.memory_space<vmem>>, vector<16x128xf32>,
    %c1_i32 = arith.constant 1 : i32
    %17 = arith.cmpi eq, %arg0, %c1_i32 : i32
    %18 = arith.extui %17 : i1 to i32
    %c0_i32_14 = arith.constant 0 : i32
    %19 = arith.cmpi ne, %18, %c0_i32_14 : i32
    scf.if %19 {
      %c0_15 = arith.constant 0 : index
      %c0_16 = arith.constant 0 : index
      %20 = vector.load %arg10[%c0_15, %c0_16] : memref<16x128xf32, #tpu.memory_space<vmem>>, vector<16x128xf32>
      %c0_17 = arith.constant 0 : index
      %c0_18 = arith.constant 0 : index
      %21 = vector.load %arg7[%c0_17, %c0_18] : memref<1x128xf32, #tpu.memory_space<vmem>>, vector<1x128xf32>
      %22 = vector.broadcast %21 : vector<1x128xf32> to vector<16x128xf32>
      %23 = arith.addf %20, %22 : vector<16x128xf32>
      %c0_19 = arith.constant 0 : index
      %c0_20 = arith.constant 0 : index
      %24 = vector.load %arg8[%c0_19, %c0_20] : memref<16x128xf32, #tpu.memory_space<vmem>>, vector<16x128xf32>
      tpu.vector_store %arg8[%c0_19, %c0_20], %23 {strides = array<i32>} : memref<16x128xf32, #tpu.memory_space<vmem>>, vector<16x128xf32>,
    } else {
    }
    return
  }
  func.func @transform_0(%arg0: i32) -> (i32, i32) {
    %c0_i32 = arith.constant 0 : i32
    %c0_i32_0 = arith.constant 0 : i32
    %c0_i32_1 = arith.constant 0 : i32
    return %c0_i32, %c0_i32_0 : i32, i32
  }
  func.func @transform_1(%arg0: i32) -> (i32, i32) {
    %c0_i32 = arith.constant 0 : i32
    %c0_i32_0 = arith.constant 0 : i32
    %c0_i32_1 = arith.constant 0 : i32
    return %c0_i32, %c0_i32_0 : i32, i32
  }
  func.func @transform_2(%arg0: i32) -> (i32, i32) {
    %c0_i32 = arith.constant 0 : i32
    %c0_i32_0 = arith.constant 0 : i32
    %c0_i32_1 = arith.constant 0 : i32
    return %c0_i32, %c0_i32_0 : i32, i32
  }
  func.func @transform_3(%arg0: i32) -> (i32, i32) {
    %c0_i32 = arith.constant 0 : i32
    %c0_i32_0 = arith.constant 0 : i32
    return %c0_i32, %arg0 : i32, i32
  }
  func.func @transform_4(%arg0: i32) -> (i32, i32) {
    %c0_i32 = arith.constant 0 : i32
    %c0_i32_0 = arith.constant 0 : i32
    return %c0_i32, %arg0 : i32, i32
  }
  func.func @transform_5(%arg0: i32) -> (i32, i32) {
    %c0_i32 = arith.constant 0 : i32
    %c0_i32_0 = arith.constant 0 : i32
    return %arg0, %c0_i32 : i32, i32
  }
  func.func @transform_6(%arg0: i32) -> (i32, i32) {
    %c0_i32 = arith.constant 0 : i32
    %c0_i32_0 = arith.constant 0 : i32
    %c0_i32_1 = arith.constant 0 : i32
    return %c0_i32, %c0_i32_0 : i32, i32
  }
  func.func @transform_7(%arg0: i32) -> (i32, i32) {
    %c0_i32 = arith.constant 0 : i32
    %c0_i32_0 = arith.constant 0 : i32
    %c0_i32_1 = arith.constant 0 : i32
    return %c0_i32, %c0_i32_0 : i32, i32
  }
}

</mosaic_0001>

<bundles_post_ra>
// kernel: mlp_forward.1
= control target key start
LH: loop header
LB: loop body
LE: loop exit
PB: predicated region body
PF: predicated region fallthrough
CT: control target
= control target key end

     0   :  { %12 = vsyncpa [#allocation5], 0  ;;  %s14675_s0 = inlined_call_operand.vmem [shape: f32[16,784], index: 0, kind: input, shape index: {}]   ;;  %s14676_s1 = inlined_call_operand.hbm [shape: bf16[784,784], index: 1, kind: input, shape index: {}]   ;;  %s14677_s2 = inlined_call_operand.hbm [shape: f32[1,784], index: 2, kind: input, shape index: {}]   ;;  %s14678_s3 = inlined_call_operand.hbm [shape: bf16[784,3328], index: 3, kind: input, shape index: {}]   ;;  %s14679_s4 = inlined_call_operand.hbm [shape: f32[1,3328], index: 4, kind: input, shape index: {}]   ;;  %s14680_s5 = inlined_call_operand.hbm [shape: bf16[3328,128], index: 5, kind: input, shape index: {}]   ;;  %s14681_s6 = inlined_call_operand.hbm [shape: f32[1,128], index: 6, kind: input, shape index: {}]   ;;  %s14682_s7 = inlined_call_operand.vmem [shape: f32[16,128], index: 7, kind: output, shape index: {}]  }
   0x1   :  { %13 = vsyncpa [#allocation7], 0  ;;  %s13257_s24 = smov 0   ;;  %s13259_s25 = smov 0  }
   0x2   :  { %s13261_s26 = smov 0   ;;  %s13263_s27 = smov 0  }
   0x3 LB: > { %14693 = sst [smem:[#allocation16_spill]] %s13192_s26  ;;  %s13276_s28 = sadd.s32 4294967295, %s13196_s27   ;;  %s13196_s27 = sphi %s13263_s27, %s14715_s27   ;;  %s13192_s26 = sphi %s13261_s26, %s14717_s26   ;;  %s13188_s25 = sphi %s13259_s25, %s14719_s25   ;;  %s13184_s24 = sphi %s13257_s24, %s14718_s24  }
   0x4   : > { %s13279_s29 = sadd.s32 1, %s13196_s27   ;;  %s89_s8 = sadd.s32 1, %s13192_s26 }
   0x5   : > { %14694 = sst [smem:[#allocation17_spill]] %s13279_s29  ;;  %s86_s30 = ssub.s32 %s13196_s27, %s13279_s29 }
   0x6   : > { %p87_p0 = scmp.eq.s32.totalorder %s86_s30, 0  ;;  %p96_p1 = scmp.ne.s32.totalorder %s13192_s26, %s13188_s25 }
   0x7   : > { %p97_p2 = scmp.eq.s32.totalorder %s13196_s27, 0  ;;  %p102_p3 = scmp.ne.s32.totalorder %s13188_s25, %s13184_s24 }
   0x8   : > { %s13289_s9 = scalar_select %p87_p0, %s13192_s26, %s89_s8  }
   0x9   : > { %p13291_p4 = por %p97_p2, %p96_p1  ;;  %p14683_p5 = scmp.eq.s32.totalorder %s13276_s28, 0 }
   0xa   : > { %14695 = sst [smem:[#allocation18_spill]] %s13289_s9  ;;  %p9889_p6 = scmp.ge.s32.totalorder %s13196_s27, 1 }
   0xb   : > { %p207_p7 = scmp.lt.s32.totalorder %s13196_s27, 3  ;;  %p13300_p8 = por %p14683_p5, %p102_p3 }
   0xc   : > { %s13198_s13 = smov [#allocation4]   ;;  %p11383_p13 = scmp.lt.s32.totalorder %s13196_s27, 2 }
   0xd   : > { %s14697_s11 = scalar_select %p13300_p8, 1, 0 }
   0xe   : > { %p13305_p10 = pnand %p9889_p6, %p207_p7  ;;  %s222_s14 = sshll.u32 %s13198_s13, 4  ;;  %s223_s14 = int_to_ptr.vmem [resolvable:$true] %s222_s14 }
   0xf   : > { %s258_s16 = sand.u32 1, %s13196_s27   ;;  %s13320_s17 = sand.u32 1, %s13192_s26  }
  0x10   : > { %s14698_s12 = scalar_select %p13305_p10, 1, 0 }
  0x11   : > { %p11360_p11 = pneg %p13305_p10  ;;  %p13324_p0 = pnand %p11383_p13, %p13291_p4 }
  0x12   : > { %s12999_s19 = scalar_lea.vmem %s223_s14, 43904  ;;  %p13007_p7 = scmp.lt.s32.totalorder %s223_s14, %s223_s14 }
  0x13   : > { %p13313_p12 = pnand %p11360_p11, %p14683_p5  ;;  %p13000_p2 = scmp.ne.s32.totalorder %s223_s14, %s12999_s19 }
  0x14   : > { %p13008_p11 = scmp.lt.s32.totalorder %s12999_s19, %s12999_s19 }
  0x15   : > { %s14699_s15 = scalar_select %p13313_p12, 1, 0 }
  0x16   : > { %p14687_p1 = pneg %p13313_p12  ;;  %p13009_p9 = por %p13008_p11, %p13007_p7 }
  0x18   : > { %p13002_p3 = pnand %p13000_p2, %p14687_p1 }
  0x1a   : > { %p13003_p6 = pneg %p13002_p3 }
  0x1c   : > { %p13010_p5 = pnand %p13009_p9, %p13003_p6 }
  0x1e   : > { %13013 = shalt.err (!%p13010_p5)
}
  0x1f   : > { %s13199_s20 = smov 448   ;;  %s13200_s21 = smov 28  }
  0x20   : > { %11363 = dma.hbm_to_vmem [thread:$0]  (!%p13313_p12), %s14676_s1, 43904, %s223_s14, [#allocation5], %s13199_s20, %s13199_s20, %s13200_s21  }
  0x21   : > { %s11336_s24 = smul.u32 5096, %s13320_s17  ;;  %s13347_s26 = scalar_lea.sflag [#allocation5], %s258_s16 }
  0x22   : > { %s11016_s30 = smul.u32 832, %s13196_s27  ;;  %p13353_p5 = pneg %p13324_p0 }
  0x23   : > { %s262_s19 = scalar_lea.vmem [#allocation8], %s11336_s24  ;;  %s13019_s22 = scalar_lea.hbm %s14678_s3, 163072 }
  0x24   : > { %s13343_s13 = scalar_lea.hbm %s14678_s3, %s11016_s30  ;;  %s269_s9 = sshll.u32 %s262_s19, 4  ;;  %s13345_s9 = int_to_ptr.vmem [resolvable:$true] %s269_s9 }
  0x25   : > { %s13014_s29 = scalar_lea.hbm %s13343_s13, 81536  ;;  %p13020_p2 = scmp.lt.s32.totalorder %s13343_s13, %s14678_s3 }
  0x26   : > { %p13015_p4 = scmp.ne.s32.totalorder %s13343_s13, %s13014_s29  ;;  %p13021_p3 = scmp.lt.s32.totalorder %s13019_s22, %s13014_s29 }
  0x28   : > { %p13017_p9 = pnand %p13353_p5, %p13015_p4  ;;  %p13022_p6 = por %p13021_p3, %p13020_p2 }
  0x2a   : > { %p13018_p13 = pneg %p13017_p9 }
  0x2c   : > { %p13023_p7 = pnand %p13022_p6, %p13018_p13 }
  0x2e   : > { %13026 = shalt.err (!%p13023_p7)
}
  0x2f   : > { %s13027_s16 = scalar_lea.vmem %s13345_s9, 81536  ;;  %s13201_s30 = smov [#allocation8]  }
  0x30   : > { %p13028_p11 = scmp.ne.s32.totalorder %s13345_s9, %s13027_s16  ;;  %s13032_s8 = sshll.u32 %s13201_s30, 4  ;;  %s13033_s8 = int_to_ptr.vmem [resolvable:$false] %s13032_s8 }
  0x31   : > { %s13034_s10 = scalar_lea.vmem %s13033_s8, 163072  ;;  %p13035_p1 = scmp.lt.s32.totalorder %s13345_s9, %s13033_s8 }
  0x32   : > { %p13030_p4 = pnand %p13028_p11, %p13353_p5  ;;  %p13036_p8 = scmp.lt.s32.totalorder %s13034_s10, %s13027_s16 }
  0x34   : > { %p13031_p9 = pneg %p13030_p4  ;;  %p13037_p10 = por %p13036_p8, %p13035_p1 }
  0x36   : > { %p13038_p12 = pnand %p13037_p10, %p13031_p9 }
  0x38   : > { %13041 = shalt.err (!%p13038_p12)
}
  0x39   : > { %s13202_s29 = smov 1664   ;;  %s13203_s19 = smov 832  }
  0x3a   : > { %s13204_s20 = smov 52   ;;  %s13205_s21 = smov [#allocation6]  }
  0x3b   : > { %11373 = dma.hbm_to_vmem [thread:$0]  (!%p13324_p0), %s13343_s13, 81536, %s13345_s9, %s13347_s26, %s13202_s29, %s13203_s19, %s13204_s20  }
  0x3c   : > { %s236_s22 = sshll.u32 %s13205_s21, 4  ;;  %s11337_s23 = smul.u32 13, %s13320_s17  ;;  %s237_s22 = int_to_ptr.vmem [resolvable:$true] %s236_s22 }
  0x3d   : > { %s11017_s24 = smul.u32 208, %s13196_s27  ;;  %s13053_s16 = scalar_lea.vmem %s237_s22, 112 }
  0x3e   : > { %p13054_p8 = scmp.ne.s32.totalorder %s237_s22, %s13053_s16  ;;  %p14702_p10 = scmp.ne.s32.totalorder %s14699_s15, 0 }
  0x3f   : > { %s13060_s30 = scalar_lea.vmem %s237_s22, 128  ;;  %p13061_p2 = scmp.lt.s32.totalorder %s237_s22, %s237_s22 }
  0x40   : > { %p14703_p12 = pneg %p14702_p10  ;;  %p13062_p3 = scmp.lt.s32.totalorder %s13060_s30, %s13053_s16 }
  0x42   : > { %p13056_p1 = pnand %p13054_p8, %p14703_p12  ;;  %p13063_p6 = por %p13062_p3, %p13061_p2 }
  0x44   : > { %p13057_p13 = pneg %p13056_p1 }
  0x46   : > { %p13064_p7 = pnand %p13063_p6, %p13057_p13 }
  0x48   : > { %13067 = shalt.err (!%p13064_p7)
}
  0x49   : > { %11366 = dma.hbm_to_vmem [thread:$0]  (!%p14702_p10), %s14677_s2, 112, %s237_s22, [#allocation7]  }
  0x4a   : > { %s13389_s29 = scalar_lea.hbm %s14679_s4, %s11017_s24  ;;  %s283_s19 = scalar_lea.vmem [#allocation9], %s11337_s23 }
  0x4b   : > { %s291_s20 = sshll.u32 %s283_s19, 4  ;;  %s13206_s21 = smov [#allocation11]   ;;  %s292_s20 = int_to_ptr.vmem [resolvable:$true] %s291_s20 }
  0x4c   : > { %s247_s16 = sshll.u32 %s13206_s21, 4  ;;  %s13068_s30 = scalar_lea.hbm %s13389_s29, 208  ;;  %s248_s16 = int_to_ptr.vmem [resolvable:$true] %s247_s16 }
  0x4d   : > { %p13069_p11 = scmp.ne.s32.totalorder %s13389_s29, %s13068_s30  ;;  %s13073_s13 = scalar_lea.hbm %s14679_s4, 416 }
  0x4e   : > { %p13074_p8 = scmp.lt.s32.totalorder %s13389_s29, %s14679_s4  ;;  %p13075_p12 = scmp.lt.s32.totalorder %s13073_s13, %s13068_s30 }
  0x4f   : > { %p13071_p4 = pnand %p13069_p11, %p13353_p5 }
  0x50   : > { %p13076_p1 = por %p13075_p12, %p13074_p8 }
  0x51   : > { %p13072_p9 = pneg %p13071_p4 }
  0x53   : > { %p13077_p13 = pnand %p13076_p1, %p13072_p9 }
  0x55   : > { %13080 = shalt.err (!%p13077_p13)
}
  0x56   : > { %s13081_s23 = scalar_lea.vmem %s292_s20, 208  ;;  %s13207_s10 = smov [#allocation9]  }
  0x57   : > { %p13082_p2 = scmp.ne.s32.totalorder %s292_s20, %s13081_s23  ;;  %s13086_s19 = sshll.u32 %s13207_s10, 4  ;;  %s13087_s19 = int_to_ptr.vmem [resolvable:$false] %s13086_s19 }
  0x58   : > { %s13088_s21 = scalar_lea.vmem %s13087_s19, 416  ;;  %p13089_p7 = scmp.lt.s32.totalorder %s292_s20, %s13087_s19 }
  0x59   : > { %p13084_p3 = pnand %p13082_p2, %p13353_p5  ;;  %p13090_p11 = scmp.lt.s32.totalorder %s13088_s21, %s13081_s23 }
  0x5b   : > { %p13085_p6 = pneg %p13084_p3  ;;  %p13091_p4 = por %p13090_p11, %p13089_p7 }
  0x5d   : > { %p13092_p10 = pnand %p13091_p4, %p13085_p6 }
  0x5f   : > { %13095 = shalt.err (!%p13092_p10)
}
  0x60   : > { %11376 = dma.hbm_to_vmem [thread:$0]  (!%p13324_p0), %s13389_s29, 208, %s292_s20, %s13347_s26  }
  0x61   : > { %s11338_s30 = smul.u32 832, %s13320_s17  ;;  %s13107_s9 = scalar_lea.vmem %s248_s16, 16 }
  0x62   : > { %p13108_p9 = scmp.ne.s32.totalorder %s248_s16, %s13107_s9  ;;  %p14704_p8 = scmp.ne.s32.totalorder %s14699_s15, 0 }
  0x63   : > { %s13114_s22 = scalar_lea.vmem %s248_s16, 32  ;;  %p13115_p2 = scmp.lt.s32.totalorder %s248_s16, %s248_s16 }
  0x64   : > { %p14705_p12 = pneg %p14704_p8  ;;  %p13116_p3 = scmp.lt.s32.totalorder %s13114_s22, %s13107_s9 }
  0x66   : > { %p13110_p1 = pnand %p13108_p9, %p14705_p12  ;;  %p13117_p6 = por %p13116_p3, %p13115_p2 }
  0x68   : > { %p13111_p13 = pneg %p13110_p1 }
  0x6a   : > { %p13118_p10 = pnand %p13117_p6, %p13111_p13 }
  0x6c   : > { %13121 = shalt.err (!%p13118_p10)
}
  0x6d   : > { %11369 = dma.hbm_to_vmem [thread:$0]  (!%p14704_p8), %s14681_s6, 16, %s248_s16, [#allocation7]  }
  0x6e   : > { %s11018_s17 = smul.u32 13312, %s13196_s27  ;;  %s302_s29 = scalar_lea.vmem [#allocation10], %s11338_s30 }
  0x6f   : > { %s309_s20 = sshll.u32 %s302_s29, 4  ;;  %s13127_s27 = scalar_lea.hbm %s14680_s5, 26624  ;;  %s13423_s20 = int_to_ptr.vmem [resolvable:$true] %s309_s20 }
  0x70   : > { %s13421_s10 = scalar_lea.hbm %s14680_s5, %s11018_s17 }
  0x71   : > { %s13122_s15 = scalar_lea.hbm %s13421_s10, 13312  ;;  %p13128_p9 = scmp.lt.s32.totalorder %s13421_s10, %s14680_s5 }
  0x72   : > { %p13123_p7 = scmp.ne.s32.totalorder %s13421_s10, %s13122_s15  ;;  %p13129_p8 = scmp.lt.s32.totalorder %s13127_s27, %s13122_s15 }
  0x74   : > { %p13125_p11 = pnand %p13123_p7, %p13353_p5  ;;  %p13130_p12 = por %p13129_p8, %p13128_p9 }
  0x76   : > { %p13126_p4 = pneg %p13125_p11 }
  0x78   : > { %p13131_p1 = pnand %p13130_p12, %p13126_p4 }
  0x7a   : > { %13134 = shalt.err (!%p13131_p1)
}
  0x7b   : > { %s13135_s9 = scalar_lea.vmem %s13423_s20, 13312  ;;  %s13208_s22 = smov [#allocation10]  }
  0x7c   : > { %p13136_p13 = scmp.ne.s32.totalorder %s13423_s20, %s13135_s9  ;;  %s13140_s13 = sshll.u32 %s13208_s22, 4  ;;  %s13141_s13 = int_to_ptr.vmem [resolvable:$false] %s13140_s13 }
  0x7d   : > { %s13142_s8 = scalar_lea.vmem %s13141_s13, 26624  ;;  %p13143_p6 = scmp.lt.s32.totalorder %s13423_s20, %s13141_s13 }
  0x7e   : > { %p13138_p2 = pnand %p13136_p13, %p13353_p5  ;;  %p13144_p10 = scmp.lt.s32.totalorder %s13142_s8, %s13135_s9 }
  0x80   : > { %p13139_p3 = pneg %p13138_p2  ;;  %p13145_p7 = por %p13144_p10, %p13143_p6 }
  0x82   : > { %p13146_p11 = pnand %p13145_p7, %p13139_p3 }
  0x84   : > { %13149 = shalt.err (!%p13146_p11)
}
  0x85   : > { %s13209_s17 = smov 64   ;;  %s13210_s29 = smov 4  }
  0x86   : > { %11379 = dma.hbm_to_vmem [thread:$0]  (!%p13324_p0), %s13421_s10, 13312, %s13423_s20, %s13347_s26, %s13209_s17, %s13209_s17, %s13210_s29  }
  0x87   : > { %p14706_p5 = scmp.ne.s32.totalorder %s14698_s12, 0 }
  0x88   : > { %p14707_p4 = scmp.eq.s32.totalorder (!%p14706_p5), %s13276_s28, 0 }
  0x89   : > { %321 = sbr.rel (%p14706_p5) target bundleno = 1813 (0x715), region = 48 }
  0x8e   : > { %13167 = dma.done.wait (%p14707_p4), [#allocation5], 43904   ;;  %p14708_p9 = pmov %p14707_p4 }
  0x8f   : > { %p14709_p8 = pmov %p14707_p4 }
  0x90   : > { %13169 = vsyncadd (%p14708_p9), [#allocation5], 4294923392 }
  0x91   : > { %13171 = dma.done.wait (%p14709_p8), [#allocation7], 112   ;;  %p14710_p12 = pmov %p14707_p4 }
  0x92   : > { %s331_s18 = sand.u32 1, %s13276_s28   ;;  %s333_s26 = sand.u32 1, %s13188_s25  }
  0x93   : > { %13173 = vsyncadd (%p14710_p12), [#allocation7], 4294967184  ;;  %s11339_s14 = smul.u32 5096, %s333_s26  ;;  %s332_s12 = scalar_lea.sflag [#allocation5], %s331_s18 }
  0x94   : > { %p14711_p0 = scmp.ne.s32.totalorder %s14697_s11, 0 }
  0x95   : > { %s13458_s20 = scalar_lea.vmem [#allocation8], %s11339_s14 }
  0x96   : > { %13175 = dma.done.wait (%p14711_p0), %s332_s12, 95056  }
  0x97   : > { %13177 = vsyncadd (%p14711_p0), %s332_s12, 4294872240  ;;  %s11340_s24 = smul.u32 13, %s333_s26  ;;  %p14712_p1 = pmov %p14707_p4 }
  0x98   : > { %s11341_s23 = smul.u32 832, %s333_s26 }
  0x99   : > { %s13464_s10 = scalar_lea.vmem [#allocation9], %s11340_s24 }
  0x9a   : > { %s13466_s15 = scalar_lea.vmem [#allocation10], %s11341_s23 }
  0x9b   : > { %13179 = dma.done.wait (%p14712_p1), [#allocation7], 16   ;;  %p14713_p13 = pmov %p14712_p1 }
  0x9c   : > { %p14714_p2 = scmp.ne.s32.totalorder %s13276_s28, 0 }
  0x9d   : > { %13181 = vsyncadd (%p14713_p13), [#allocation7], 4294967280 }
  0x9e   : > { %400 = sbr.rel (%p14714_p2) target bundleno = 727 (0x2d7), region = 76 }
  0xa3   : > { %v11435_v0 = vld [vmem:[#allocation4 + $0x18c] ss:$28 sps:$4 sm:$0xff]   ;;  %v11441_v4 = vld [vmem:[#allocation4 + $0x154] ss:$28 sps:$4 sm:$0xff]   ;;  %v11447_v8 = vld [vmem:[#allocation4 + $0x11c] ss:$28 sps:$4 sm:$0xff]  }
  0xa4   : > { %v11437_v1 = vld [vmem:[#allocation4 + $0x50c] ss:$28 sps:$4 sm:$0xff]   ;;  %2619 = vmatprep.subr.bf16.mxu0 %v11435_v0  ;;  %v11443_v5 = vld [vmem:[#allocation4 + $0x4d4] ss:$28 sps:$4 sm:$0xff]   ;;  %v11449_v9 = vld [vmem:[#allocation4 + $0x49c] ss:$28 sps:$4 sm:$0xff]  }
  0xa5   : > { %v11439_v2 = vld [vmem:[#allocation4 + $0x188] ss:$28 sps:$4 sm:$0xff]   ;;  %2662 = vmatprep.subr.bf16.mxu1 %v11437_v1  ;;  %v11445_v6 = vld [vmem:[#allocation4 + $0x150] ss:$28 sps:$4 sm:$0xff]   ;;  %v11451_v10 = vld [vmem:[#allocation4 + $0x118] ss:$28 sps:$4 sm:$0xff]  }
  0xa6   : > { %v11440_v3 = vld [vmem:[#allocation4 + $0x508] ss:$28 sps:$4 sm:$0xff]   ;;  %2620 = vmatpush1.bf16.msra.mxu0 %v11439_v2  ;;  %v11446_v7 = vld [vmem:[#allocation4 + $0x4d0] ss:$28 sps:$4 sm:$0xff]   ;;  %v11452_v11 = vld [vmem:[#allocation4 + $0x498] ss:$28 sps:$4 sm:$0xff]  }
  0xa7   : > { %2663 = vmatpush1.bf16.msra.mxu1 %v11440_v3  ;;  %2621 = vmatprep.subr.bf16.mxu0 %v11441_v4  ;;  %v11453_v12 = vld [vmem:[#allocation4 + $0xe4] ss:$28 sps:$4 sm:$0xff]   ;;  %v11459_v16 = vld [vmem:[#allocation4 + $0xac] ss:$28 sps:$4 sm:$0xff]   ;;  %v11465_v20 = vld [vmem:[#allocation4 + $0x74] ss:$28 sps:$4 sm:$0xff]  }
  0xa8   : > { %2664 = vmatprep.subr.bf16.mxu1 %v11443_v5  ;;  %v11455_v13 = vld [vmem:[#allocation4 + $0x464] ss:$28 sps:$4 sm:$0xff]   ;;  %v11461_v17 = vld [vmem:[#allocation4 + $0x42c] ss:$28 sps:$4 sm:$0xff]   ;;  %v11467_v21 = vld [vmem:[#allocation4 + $0x3f4] ss:$28 sps:$4 sm:$0xff]  }
  0xa9   : > { %v11457_v14 = vld [vmem:[#allocation4 + $0xe0] ss:$28 sps:$4 sm:$0xff]   ;;  %v11463_v18 = vld [vmem:[#allocation4 + $0xa8] ss:$28 sps:$4 sm:$0xff]   ;;  %v11469_v22 = vld [vmem:[#allocation4 + $0x70] ss:$28 sps:$4 sm:$0xff]  }
  0xaa   : > { %2622 = vmatpush1.bf16.msra.mxu0 %v11445_v6  ;;  %v11458_v15 = vld [vmem:[#allocation4 + $0x460] ss:$28 sps:$4 sm:$0xff]   ;;  %v11464_v19 = vld [vmem:[#allocation4 + $0x428] ss:$28 sps:$4 sm:$0xff]   ;;  %v11470_v23 = vld [vmem:[#allocation4 + $0x3f0] ss:$28 sps:$4 sm:$0xff]  }
  0xab   : > { %2665 = vmatpush1.bf16.msra.mxu1 %v11446_v7  ;;  %2623 = vmatprep.subr.bf16.mxu0 %v11447_v8  ;;  %v11471_v24 = vld [vmem:[#allocation4 + $0x3c] ss:$28 sps:$4 sm:$0xff]   ;;  %v11477_v28 = vld [vmem:[#allocation4 + $0x4] ss:$28 sps:$4 sm:$0xff]   ;;  %v11483_v32 = vld [vmem:[#allocation4 + $0x34c] ss:$28 sps:$4 sm:$0xff]  }
  0xac   : > { %2666 = vmatprep.subr.bf16.mxu1 %v11449_v9  ;;  %v11473_v25 = vld [vmem:[#allocation4 + $0x3bc] ss:$28 sps:$4 sm:$0xff]   ;;  %v11479_v29 = vld [vmem:[#allocation4 + $0x384] ss:$28 sps:$4 sm:$0xff]   ;;  %v11485_v33 = vld [vmem:[#allocation4 + $0x6cc] ss:$28 sps:$4 sm:$0xff]  }
  0xad   : > { %v11475_v26 = vld [vmem:[#allocation4 + $0x38] ss:$28 sps:$4 sm:$0xff]   ;;  %v11481_v30 = vld [vmem:[#allocation4] ss:$28 sps:$4 sm:$0xff]   ;;  %v11487_v34 = vld [vmem:[#allocation4 + $0x348] ss:$28 sps:$4 sm:$0xff]  }
  0xae   : > { %2624 = vmatpush1.bf16.msra.mxu0 %v11451_v10  ;;  %v11476_v27 = vld [vmem:[#allocation4 + $0x3b8] ss:$28 sps:$4 sm:$0xff]   ;;  %v11482_v31 = vld [vmem:[#allocation4 + $0x380] ss:$28 sps:$4 sm:$0xff]   ;;  %v11488_v35 = vld [vmem:[#allocation4 + $0x6c8] ss:$28 sps:$4 sm:$0xff]  }
  0xaf   : > { %2667 = vmatpush1.bf16.msra.mxu1 %v11452_v11  ;;  %2625 = vmatprep.subr.bf16.mxu0 %v11453_v12  ;;  %v11489_v36 = vld [vmem:[#allocation4 + $0x314] ss:$28 sps:$4 sm:$0xff]   ;;  %v11495_v40 = vld [vmem:[#allocation4 + $0x2dc] ss:$28 sps:$4 sm:$0xff]   ;;  %v11501_v44 = vld [vmem:[#allocation4 + $0x2a4] ss:$28 sps:$4 sm:$0xff]  }
  0xb0   : > { %2668 = vmatprep.subr.bf16.mxu1 %v11455_v13  ;;  %v11491_v37 = vld [vmem:[#allocation4 + $0x694] ss:$28 sps:$4 sm:$0xff]   ;;  %v11497_v41 = vld [vmem:[#allocation4 + $0x65c] ss:$28 sps:$4 sm:$0xff]   ;;  %v11503_v45 = vld [vmem:[#allocation4 + $0x624] ss:$28 sps:$4 sm:$0xff]  }
  0xb1   : > { %v11493_v38 = vld [vmem:[#allocation4 + $0x310] ss:$28 sps:$4 sm:$0xff]   ;;  %v11499_v42 = vld [vmem:[#allocation4 + $0x2d8] ss:$28 sps:$4 sm:$0xff]   ;;  %v402_v46 = vld [vmem:[%s14675_s0 + $0x8] sm:$0xff]  ;;  %vm2615_vm0 = vcmask 130048  }
  0xb2   : > { %2626 = vmatpush1.bf16.msra.mxu0 %v11457_v14  ;;  %v11494_v39 = vld [vmem:[#allocation4 + $0x690] ss:$28 sps:$4 sm:$0xff]   ;;  %v11500_v43 = vld [vmem:[#allocation4 + $0x658] ss:$28 sps:$4 sm:$0xff]   ;;  %v11505_v50 = vld [vmem:[#allocation4 + $0x2a0] ss:$28 sps:$4 sm:$0xff]  }
  0xb3   : > { %2669 = vmatpush1.bf16.msra.mxu1 %v11458_v15  ;;  %2627 = vmatprep.subr.bf16.mxu0 %v11459_v16  ;;  %v409_v47 = vld [vmem:[%s14675_s0 + $0x40] sm:$0xff]  ;;  %v404_v48 = vld [vmem:[%s14675_s0 + $0x18] sm:$0xff]  ;;  %v411_v49 = vld [vmem:[%s14675_s0 + $0x50] sm:$0xff]  ;;  %vm13213_vm1 = vmmov 0   ;;  %vm3360_vm2 = vcmask 125952  }
  0xb4   : > { %2670 = vmatprep.subr.bf16.mxu1 %v11461_v17  ;;  %v11506_v51 = vld [vmem:[#allocation4 + $0x620] ss:$28 sps:$4 sm:$0xff]   ;;  %v11507_v52 = vld [vmem:[#allocation4 + $0x26c] ss:$28 sps:$4 sm:$0xff]   ;;  %v13486_v53 = vpack.c.bf16 %v409_v47, %v402_v46  ;;  %v13488_v54 = vpack.c.bf16 %v411_v49, %v404_v48  ;;  %v11513_v58 = vld [vmem:[#allocation4 + $0x234] ss:$28 sps:$4 sm:$0xff]  }
  0xb5   : > { %v11509_v55 = vld [vmem:[#allocation4 + $0x5ec] ss:$28 sps:$4 sm:$0xff]   ;;  %v11515_v59 = vld [vmem:[#allocation4 + $0x5b4] ss:$28 sps:$4 sm:$0xff]   ;;  %v11519_v62 = vld [vmem:[#allocation4 + $0x1fc] ss:$28 sps:$4 sm:$0xff]  }
  0xb6   : > { %2628 = vmatpush1.bf16.msra.mxu0 %v11463_v18  ;;  %2651 = vmatprep.mubr.bf16.mxu0 %v13486_v53  ;;  %v11511_v56 = vld [vmem:[#allocation4 + $0x268] ss:$28 sps:$4 sm:$0xff]   ;;  %v11517_v60 = vld [vmem:[#allocation4 + $0x230] ss:$28 sps:$4 sm:$0xff]   ;;  %v11521_v63 = vld [vmem:[#allocation4 + $0x57c] ss:$28 sps:$4 sm:$0xff]  }
  0xb7   : > { %2671 = vmatpush1.bf16.msra.mxu1 %v11464_v19  ;;  %2629 = vmatprep.subr.bf16.mxu0 %v11465_v20  ;;  %v11512_v57 = vld [vmem:[#allocation4 + $0x5e8] ss:$28 sps:$4 sm:$0xff]   ;;  %v11518_v61 = vld [vmem:[#allocation4 + $0x5b0] ss:$28 sps:$4 sm:$0xff]   ;;  %v11523_v0 = vld [vmem:[#allocation4 + $0x1f8] ss:$28 sps:$4 sm:$0xff]  }
  0xb8   : > { %2672 = vmatprep.subr.bf16.mxu1 %v11467_v21  ;;  %2694 = vmatprep.mubr.bf16.mxu1 %v13488_v54  ;;  %v11524_v1 = vld [vmem:[#allocation4 + $0x578] ss:$28 sps:$4 sm:$0xff]   ;;  %v11525_v2 = vld [vmem:[#allocation4 + $0x1c4] ss:$28 sps:$4 sm:$0xff]   ;;  %v403_v8 = vld [vmem:[%s14675_s0 + $0x10] sm:$0xff]  ;;  %v13211_v21 = vmov 0  }
  0xb9   : > { %v11527_v3 = vld [vmem:[#allocation4 + $0x544] ss:$28 sps:$4 sm:$0xff]   ;;  %v401_v6 = vld [vmem:[%s14675_s0] sm:$0xff]  ;;  %v408_v7 = vld [vmem:[%s14675_s0 + $0x38] sm:$0xff] }
  0xba   : > { %2630 = vmatpush1.bf16.msra.mxu0 %v11469_v22  ;;  %v11529_v4 = vld [vmem:[#allocation4 + $0x1c0] ss:$28 sps:$4 sm:$0xff]   ;;  %v11533_v10 = vld [vmem:[#allocation4 + $0x88c] ss:$28 sps:$4 sm:$0xff]   ;;  %v13504_v12 = vpack.c.bf16 %v408_v7, %v401_v6  ;;  %v11539_v16 = vld [vmem:[#allocation4 + $0x854] ss:$28 sps:$4 sm:$0xff]  }
  0xbb   : > { %2673 = vmatpush1.bf16.msra.mxu1 %v11470_v23  ;;  %2631 = vmatprep.subr.bf16.mxu0 %v11471_v24  ;;  %v11530_v5 = vld [vmem:[#allocation4 + $0x540] ss:$28 sps:$4 sm:$0xff]   ;;  %v11531_v14 = vld [vmem:[#allocation4 + $0x888] ss:$28 sps:$4 sm:$0xff]   ;;  %v11542_v17 = vld [vmem:[#allocation4 + $0x194] ss:$28 sps:$4 sm:$0xff]  }
  0xbc   : > { %2674 = vmatprep.subr.bf16.mxu1 %v11473_v25  ;;  %v410_v9 = vld [vmem:[%s14675_s0 + $0x48] sm:$0xff]  ;;  %v11537_v18 = vld [vmem:[#allocation4 + $0x850] ss:$28 sps:$4 sm:$0xff]   ;;  %v11545_v22 = vld [vmem:[#allocation4 + $0x81c] ss:$28 sps:$4 sm:$0xff]  }
  0xbd   : > { %v11536_v11 = vld [vmem:[#allocation4 + $0xa84] ss:$28 sps:$4 sm:$0xff]   ;;  %v13506_v13 = vpack.c.bf16 %v410_v9, %v403_v8  ;;  %v407_v19 = vld [vmem:[%s14675_s0 + $0x30] sm:$0xff]  ;;  %v11543_v25 = vld [vmem:[#allocation4 + $0x818] ss:$28 sps:$4 sm:$0xff]  }
  0xbe   : > { %2632 = vmatpush1.bf16.msra.mxu0 %v11475_v26  ;;  %v11534_v15 = vld [vmem:[#allocation4 + $0xa80] ss:$28 sps:$4 sm:$0xff]   ;;  %v11540_v24 = vld [vmem:[#allocation4 + $0x190] ss:$28 sps:$4 sm:$0xff]   ;;  %v11570_v47 = vld [vmem:[#allocation4 + $0x78] ss:$28 sps:$4 sm:$0xff]  }
  0xbf   : > { %2675 = vmatpush1.bf16.msra.mxu1 %v11476_v27  ;;  %2633 = vmatprep.subr.bf16.mxu0 %v11477_v28  ;;  %v414_v20 = vld [vmem:[%s14675_s0 + $0x68] sm:$0xff]  ;;  %v11548_v26 = vld [vmem:[#allocation4 + $0x15c] ss:$28 sps:$4 sm:$0xff]   ;;  %v11608_v7 = vld [vmem:[#allocation4 + $0x2ac] ss:$28 sps:$4 sm:$0xff]  }
  0xc0   : > { %2676 = vmatprep.subr.bf16.mxu1 %v11479_v29  ;;  %v13517_v23 = vpack.c.bf16 %v414_v20, %v407_v19  ;;  %v11551_v27 = vld [vmem:[#allocation4 + $0x7e4] ss:$28 sps:$4 sm:$0xff]   ;;  %v11546_v28 = vld [vmem:[#allocation4 + $0x158] ss:$28 sps:$4 sm:$0xff]  }
  0xc1   : > { %v11549_v29 = vld [vmem:[#allocation4 + $0x7e0] ss:$28 sps:$4 sm:$0xff]   ;;  %v11603_v6 = vld [vmem:[#allocation4 + $0x968] ss:$28 sps:$4 sm:$0xff]   ;;  %v11611_v8 = vld [vmem:[#allocation4 + $0x934] ss:$28 sps:$4 sm:$0xff]  }
  0xc2   : > { %2634 = vmatpush1.bf16.msra.mxu0 %v11481_v30  ;;  %v11554_v30 = vld [vmem:[#allocation4 + $0x124] ss:$28 sps:$4 sm:$0xff]   ;;  %v11618_v19 = vld [vmem:[#allocation4 + $0x238] ss:$28 sps:$4 sm:$0xff]  }
  0xc3   : > { %2677 = vmatpush1.bf16.msra.mxu1 %v11482_v31  ;;  %2635 = vmatprep.subr.bf16.mxu0 %v11483_v32  ;;  %v11557_v31 = vld [vmem:[#allocation4 + $0x7ac] ss:$28 sps:$4 sm:$0xff]   ;;  %v11552_v32 = vld [vmem:[#allocation4 + $0x120] ss:$28 sps:$4 sm:$0xff]  }
  0xc4   : > { %2678 = vmatprep.subr.bf16.mxu1 %v11485_v33  ;;  %v11555_v33 = vld [vmem:[#allocation4 + $0x7a8] ss:$28 sps:$4 sm:$0xff]   ;;  %v11573_v48 = vld [vmem:[#allocation4 + $0x700] ss:$28 sps:$4 sm:$0xff]  }
  0xc5   : > { %v11575_v46 = vld [vmem:[#allocation4 + $0x704] ss:$28 sps:$4 sm:$0xff]  }
  0xc6   : > { %2636 = vmatpush2.bf16.msra.mxu0 %v11487_v34  ;;  %v11560_v34 = vld [vmem:[#allocation4 + $0xec] ss:$28 sps:$4 sm:$0xff]   ;;  %v11578_v49 = vld [vmem:[#allocation4 + $0x44] ss:$28 sps:$4 sm:$0xff]  }
  0xc7   : > { %2679 = vmatpush2.bf16.msra.mxu1 %v11488_v35  ;;  %2637 = vmatprep.subr.bf16.mxu0 %v11489_v36  ;;  %v11563_v35 = vld [vmem:[#allocation4 + $0x774] ss:$28 sps:$4 sm:$0xff]   ;;  %v11558_v36 = vld [vmem:[#allocation4 + $0xe8] ss:$28 sps:$4 sm:$0xff]   ;;  %v11621_v20 = vld [vmem:[#allocation4 + $0x8c0] ss:$28 sps:$4 sm:$0xff]  }
  0xc8   : > { %2680 = vmatprep.subr.bf16.mxu1 %v11491_v37  ;;  %v11561_v37 = vld [vmem:[#allocation4 + $0x770] ss:$28 sps:$4 sm:$0xff]   ;;  %v11606_v9 = vld [vmem:[#allocation4 + $0x2a8] ss:$28 sps:$4 sm:$0xff]  }
  0xca   : > { %2638 = vmatpush2.bf16.msra.mxu0 %v11493_v38  ;;  %v11566_v38 = vld [vmem:[#allocation4 + $0xb4] ss:$28 sps:$4 sm:$0xff]  }
  0xcb   : > { %2681 = vmatpush2.bf16.msra.mxu1 %v11494_v39  ;;  %2639 = vmatprep.subr.bf16.mxu0 %v11495_v40  ;;  %v11569_v39 = vld [vmem:[#allocation4 + $0x73c] ss:$28 sps:$4 sm:$0xff]   ;;  %v11564_v40 = vld [vmem:[#allocation4 + $0xb0] ss:$28 sps:$4 sm:$0xff]  }
  0xcc   : > { %2682 = vmatprep.subr.bf16.mxu1 %v11497_v41  ;;  %v406_v41 = vld [vmem:[%s14675_s0 + $0x28] sm:$0xff] }
  0xce   : > { %2640 = vmatpush2.bf16.msra.mxu0 %v11499_v42  ;;  %v413_v42 = vld [vmem:[%s14675_s0 + $0x60] sm:$0xff] }
  0xcf   : > { %2683 = vmatpush2.bf16.msra.mxu1 %v11500_v43  ;;  %2641 = vmatprep.subr.bf16.mxu0 %v11501_v44  ;;  %v11567_v43 = vld [vmem:[#allocation4 + $0x738] ss:$28 sps:$4 sm:$0xff]   ;;  %v13528_v44 = vpack.c.bf16 %v413_v42, %v406_v41  ;;  %v11645_v41 = vld [vmem:[#allocation4 + $0x468] ss:$28 sps:$4 sm:$0xff]  }
  0xd0   : > { %2684 = vmatprep.subr.bf16.mxu1 %v11503_v45  ;;  %v11572_v45 = vld [vmem:[#allocation4 + $0x7c] ss:$28 sps:$4 sm:$0xff]   ;;  %v11650_v42 = vld [vmem:[#allocation4 + $0x824] ss:$28 sps:$4 sm:$0xff]  }
  0xd2   : > { %2642 = vmatpush2.bf16.msra.mxu0 %v11505_v50  ;;  %v11581_v50 = vld [vmem:[#allocation4 + $0xa4c] ss:$28 sps:$4 sm:$0xff]  }
  0xd3   : > { %2685 = vmatpush2.bf16.msra.mxu1 %v11506_v51  ;;  %2643 = vmatprep.subr.bf16.mxu0 %v11507_v52  ;;  %v11576_v51 = vld [vmem:[#allocation4 + $0x40] ss:$28 sps:$4 sm:$0xff]   ;;  %v11579_v52 = vld [vmem:[#allocation4 + $0xa48] ss:$28 sps:$4 sm:$0xff]  }
  0xd4   : > { %2686 = vmatprep.subr.bf16.mxu1 %v11509_v55  ;;  %v11584_v55 = vld [vmem:[#allocation4 + $0xc] ss:$28 sps:$4 sm:$0xff]  }
  0xd6   : > { %2644 = vmatpush2.bf16.msra.mxu0 %v11511_v56  ;;  %v11587_v56 = vld [vmem:[#allocation4 + $0xa14] ss:$28 sps:$4 sm:$0xff]  }
  0xd7   : > { %2687 = vmatpush2.bf16.msra.mxu1 %v11512_v57  ;;  %2645 = vmatprep.subr.bf16.mxu0 %v11513_v58  ;;  %v11582_v57 = vld [vmem:[#allocation4 + $0x8] ss:$28 sps:$4 sm:$0xff]   ;;  %v11585_v58 = vld [vmem:[#allocation4 + $0xa10] ss:$28 sps:$4 sm:$0xff]  }
  0xd8   : > { %2688 = vmatprep.subr.bf16.mxu1 %v11515_v59  ;;  %v11590_v59 = vld [vmem:[#allocation4 + $0x354] ss:$28 sps:$4 sm:$0xff]  }
  0xda   : > { %2646 = vmatpush2.bf16.msra.mxu0 %v11517_v60  ;;  %v11593_v60 = vld [vmem:[#allocation4 + $0x9dc] ss:$28 sps:$4 sm:$0xff]  }
  0xdb   : > { %2689 = vmatpush2.bf16.msra.mxu1 %v11518_v61  ;;  %2647 = vmatprep.subr.bf16.mxu0 %v11519_v62  ;;  %v11588_v61 = vld [vmem:[#allocation4 + $0x350] ss:$28 sps:$4 sm:$0xff]   ;;  %v11591_v62 = vld [vmem:[#allocation4 + $0x9d8] ss:$28 sps:$4 sm:$0xff]  }
  0xdc   : > { %2690 = vmatprep.subr.bf16.mxu1 %v11521_v63  ;;  %v11596_v63 = vld [vmem:[#allocation4 + $0x31c] ss:$28 sps:$4 sm:$0xff]  }
  0xde   : > { %2648 = vmatpush2.bf16.msra.mxu0 %v11523_v0  ;;  %v11599_v0 = vld [vmem:[#allocation4 + $0x9a4] ss:$28 sps:$4 sm:$0xff]  }
  0xdf   : > { %2691 = vmatpush2.bf16.msra.mxu1 %v11524_v1  ;;  %2649 = vmatprep.subr.bf16.mxu0 %v11525_v2  ;;  %v11594_v1 = vld [vmem:[#allocation4 + $0x318] ss:$28 sps:$4 sm:$0xff]   ;;  %v11597_v2 = vld [vmem:[#allocation4 + $0x9a0] ss:$28 sps:$4 sm:$0xff]  }
  0xe0   : > { %2692 = vmatprep.subr.bf16.mxu1 %v11527_v3  ;;  %v11602_v3 = vld [vmem:[#allocation4 + $0x2e4] ss:$28 sps:$4 sm:$0xff]  }
  0xe2   : > { %2650 = vmatpush2.bf16.msra.mxu0 %v11529_v4  ;;  %v11605_v4 = vld [vmem:[#allocation4 + $0x96c] ss:$28 sps:$4 sm:$0xff]  }
  0xe3   : > { %2693 = vmatpush2.bf16.msra.mxu1 %v11530_v5  ;;  %2705 = vmatprep.subr.bf16.mxu0 %v11533_v10  ;;  %v11600_v5 = vld [vmem:[#allocation4 + $0x2e0] ss:$28 sps:$4 sm:$0xff]   ;;  %v11609_v10 = vld [vmem:[#allocation4 + $0x930] ss:$28 sps:$4 sm:$0xff]  }
  0xe4   : > { %2762 = vmatprep.subr.bf16.mxu1 %v11536_v11  ;;  %v11614_v11 = vld [vmem:[#allocation4 + $0x274] ss:$28 sps:$4 sm:$0xff]  }
  0xe5   : > { %2652 = vmatmul.mubr.bf16.vlgmr.msra.gmra.mxu0 %v13504_v12 }
  0xe6   : > { %2695 = vmatmul.mubr.bf16.vlgmr.msra.gmra.mxu1 %v13506_v13  ;;  %2706 = vmatpush1.bf16.msra.mxu0 %v11531_v14  ;;  %v11617_v14 = vld [vmem:[#allocation4 + $0x8fc] ss:$28 sps:$4 sm:$0xff]  }
  0xe7   : > { %2763 = vmatpush1.bf16.msra.mxu1 %v11534_v15  ;;  %2707 = vmatprep.subr.bf16.mxu0 %v11539_v16  ;;  %v11612_v15 = vld [vmem:[#allocation4 + $0x270] ss:$28 sps:$4 sm:$0xff]   ;;  %v11615_v16 = vld [vmem:[#allocation4 + $0x8f8] ss:$28 sps:$4 sm:$0xff]  }
  0xe8   : > { %2780 = vmatprep.mubr.bf16.mxu1 %v13211_v21  ;;  %2791 = vmatprep.subr.bf16.mxu1 %v11542_v17  ;;  %v11620_v17 = vld [vmem:[#allocation4 + $0x23c] ss:$28 sps:$4 sm:$0xff]  }
  0xe9   : > { %2737 = vmatprep.mubr.bf16.mxu0 %v13528_v44 }
  0xea   : > { %2708 = vmatpush1.bf16.msra.mxu0 %v11537_v18  ;;  %v11623_v18 = vld [vmem:[#allocation4 + $0x8c4] ss:$28 sps:$4 sm:$0xff]  }
  0xeb   : > { %2709 = vmatprep.subr.bf16.mxu0 %v11545_v22  ;;  %v405_v22 = vld [vmem:[%s14675_s0 + $0x20] sm:$0xff] }
  0xee   : > { %10245 = vmatmul.mubr.msk.bf16.vlgmr.msra.gmra.mxu1 %vm2615_vm0, %v13517_v23  ;;  %2710 = vmatpush1.bf16.msra.mxu0 %v11543_v25  ;;  %v11626_v25 = vld [vmem:[#allocation4 + $0x204] ss:$28 sps:$4 sm:$0xff]  }
  0xef   : > { %2792 = vmatpush1.bf16.msra.mxu1 %v11540_v24  ;;  %2711 = vmatprep.subr.bf16.mxu0 %v11551_v27  ;;  %v412_v24 = vld [vmem:[%s14675_s0 + $0x58] sm:$0xff] }
  0xf0   : > { %2793 = vmatprep.subr.bf16.mxu1 %v11548_v26  ;;  %2823 = vmatprep.mubr.bf16.mxu1 %v13486_v53  ;;  %v11629_v26 = vld [vmem:[#allocation4 + $0x514] ss:$28 sps:$4 sm:$0xff]   ;;  %v13537_v27 = vpack.c.bf16 %v412_v24, %v405_v22  ;;  %v11702_v22 = vld [vmem:[#allocation4 + $0x9a8] ss:$28 sps:$4 sm:$0xff]  }
  0xf1   : > { %v11705_v24 = vld [vmem:[#allocation4 + $0x5b8] ss:$28 sps:$4 sm:$0xff]  }
  0xf2   : > { %2712 = vmatpush1.bf16.msra.mxu0 %v11549_v29  ;;  %v11627_v29 = vld [vmem:[#allocation4 + $0x510] ss:$28 sps:$4 sm:$0xff]  }
  0xf3   : > { %2794 = vmatpush1.bf16.msra.mxu1 %v11546_v28  ;;  %2713 = vmatprep.subr.bf16.mxu0 %v11557_v31  ;;  %v11624_v28 = vld [vmem:[#allocation4 + $0x200] ss:$28 sps:$4 sm:$0xff]  }
  0xf4   : > { %2795 = vmatprep.subr.bf16.mxu1 %v11554_v30  ;;  %v11632_v30 = vld [vmem:[#allocation4 + $0x1cc] ss:$28 sps:$4 sm:$0xff]   ;;  %v11635_v31 = vld [vmem:[#allocation4 + $0x4dc] ss:$28 sps:$4 sm:$0xff]  }
  0xf6   : > { %2714 = vmatpush1.bf16.msra.mxu0 %v11555_v33  ;;  %v11633_v33 = vld [vmem:[#allocation4 + $0x4d8] ss:$28 sps:$4 sm:$0xff]  }
  0xf7   : > { %2796 = vmatpush1.bf16.msra.mxu1 %v11552_v32  ;;  %2715 = vmatprep.subr.bf16.mxu0 %v11563_v35  ;;  %v11630_v32 = vld [vmem:[#allocation4 + $0x1c8] ss:$28 sps:$4 sm:$0xff]  }
  0xf8   : > { %2797 = vmatprep.subr.bf16.mxu1 %v11560_v34  ;;  %v11638_v34 = vld [vmem:[#allocation4 + $0x894] ss:$28 sps:$4 sm:$0xff]   ;;  %v11641_v35 = vld [vmem:[#allocation4 + $0x4a4] ss:$28 sps:$4 sm:$0xff]  }
  0xfa   : > { %2716 = vmatpush1.bf16.msra.mxu0 %v11561_v37  ;;  %v11639_v37 = vld [vmem:[#allocation4 + $0x4a0] ss:$28 sps:$4 sm:$0xff]  }
  0xfb   : > { %2798 = vmatpush1.bf16.msra.mxu1 %v11558_v36  ;;  %2717 = vmatprep.subr.bf16.mxu0 %v11569_v39  ;;  %v11636_v36 = vld [vmem:[#allocation4 + $0x890] ss:$28 sps:$4 sm:$0xff]  }
  0xfc   : > { %2799 = vmatprep.subr.bf16.mxu1 %v11566_v38  ;;  %v11644_v38 = vld [vmem:[#allocation4 + $0x85c] ss:$28 sps:$4 sm:$0xff]   ;;  %v11647_v39 = vld [vmem:[#allocation4 + $0x46c] ss:$28 sps:$4 sm:$0xff]  }
  0xfe   : > { %2718 = vmatpush1.bf16.msra.mxu0 %v11567_v43  ;;  %v11653_v43 = vld [vmem:[#allocation4 + $0x434] ss:$28 sps:$4 sm:$0xff]  }
  0xff   : > { %2800 = vmatpush1.bf16.msra.mxu1 %v11564_v40  ;;  %2719 = vmatprep.subr.bf16.mxu0 %v11575_v46  ;;  %v11642_v40 = vld [vmem:[#allocation4 + $0x858] ss:$28 sps:$4 sm:$0xff]   ;;  %v11651_v46 = vld [vmem:[#allocation4 + $0x430] ss:$28 sps:$4 sm:$0xff]  }
 0x100   : > { %2801 = vmatprep.subr.bf16.mxu1 %v11572_v45  ;;  %v11648_v45 = vld [vmem:[#allocation4 + $0x820] ss:$28 sps:$4 sm:$0xff]  }
 0x102   : > { %2720 = vmatpush1.bf16.msra.mxu0 %v11573_v48  ;;  %v11659_v48 = vld [vmem:[#allocation4 + $0x3fc] ss:$28 sps:$4 sm:$0xff]  }
 0x103   : > { %2802 = vmatpush1.bf16.msra.mxu1 %v11570_v47  ;;  %2721 = vmatprep.subr.bf16.mxu0 %v11581_v50  ;;  %v11656_v47 = vld [vmem:[#allocation4 + $0x7ec] ss:$28 sps:$4 sm:$0xff]   ;;  %v11657_v50 = vld [vmem:[#allocation4 + $0x3f8] ss:$28 sps:$4 sm:$0xff]  }
 0x104   : > { %2803 = vmatprep.subr.bf16.mxu1 %v11578_v49  ;;  %v11654_v49 = vld [vmem:[#allocation4 + $0x7e8] ss:$28 sps:$4 sm:$0xff]  }
 0x106   : > { %2722 = vmatpush2.bf16.msra.mxu0 %v11579_v52  ;;  %v11665_v52 = vld [vmem:[#allocation4 + $0x3c4] ss:$28 sps:$4 sm:$0xff]  }
 0x107   : > { %2804 = vmatpush1.bf16.msra.mxu1 %v11576_v51  ;;  %2723 = vmatprep.subr.bf16.mxu0 %v11587_v56  ;;  %v11662_v51 = vld [vmem:[#allocation4 + $0x7b4] ss:$28 sps:$4 sm:$0xff]   ;;  %v11663_v56 = vld [vmem:[#allocation4 + $0x3c0] ss:$28 sps:$4 sm:$0xff]  }
 0x108   : > { %2805 = vmatprep.subr.bf16.mxu1 %v11584_v55  ;;  %v11660_v55 = vld [vmem:[#allocation4 + $0x7b0] ss:$28 sps:$4 sm:$0xff]  }
 0x10a   : > { %2724 = vmatpush2.bf16.msra.mxu0 %v11585_v58  ;;  %v11671_v58 = vld [vmem:[#allocation4 + $0x38c] ss:$28 sps:$4 sm:$0xff]  }
 0x10b   : > { %2806 = vmatpush1.bf16.msra.mxu1 %v11582_v57  ;;  %2725 = vmatprep.subr.bf16.mxu0 %v11593_v60  ;;  %v11668_v57 = vld [vmem:[#allocation4 + $0x77c] ss:$28 sps:$4 sm:$0xff]   ;;  %v11669_v60 = vld [vmem:[#allocation4 + $0x388] ss:$28 sps:$4 sm:$0xff]  }
 0x10c   : > { %2807 = vmatprep.subr.bf16.mxu1 %v11590_v59  ;;  %v11666_v59 = vld [vmem:[#allocation4 + $0x778] ss:$28 sps:$4 sm:$0xff]  }
 0x10e   : > { %2726 = vmatpush2.bf16.msra.mxu0 %v11591_v62  ;;  %v11677_v62 = vld [vmem:[#allocation4 + $0x6d4] ss:$28 sps:$4 sm:$0xff]  }
 0x10f   : > { %2808 = vmatpush2.bf16.msra.mxu1 %v11588_v61  ;;  %2727 = vmatprep.subr.bf16.mxu0 %v11599_v0  ;;  %v11674_v61 = vld [vmem:[#allocation4 + $0x744] ss:$28 sps:$4 sm:$0xff]   ;;  %v11675_v0 = vld [vmem:[#allocation4 + $0x6d0] ss:$28 sps:$4 sm:$0xff]  }
 0x110   : > { %2809 = vmatprep.subr.bf16.mxu1 %v11596_v63  ;;  %v11672_v63 = vld [vmem:[#allocation4 + $0x740] ss:$28 sps:$4 sm:$0xff]  }
 0x112   : > { %2728 = vmatpush2.bf16.msra.mxu0 %v11597_v2  ;;  %v11683_v2 = vld [vmem:[#allocation4 + $0x69c] ss:$28 sps:$4 sm:$0xff]  }
 0x113   : > { %2810 = vmatpush2.bf16.msra.mxu1 %v11594_v1  ;;  %2729 = vmatprep.subr.bf16.mxu0 %v11605_v4  ;;  %v11680_v1 = vld [vmem:[#allocation4 + $0x70c] ss:$28 sps:$4 sm:$0xff]   ;;  %v11681_v4 = vld [vmem:[#allocation4 + $0x698] ss:$28 sps:$4 sm:$0xff]  }
 0x114   : > { %2811 = vmatprep.subr.bf16.mxu1 %v11602_v3  ;;  %v11678_v3 = vld [vmem:[#allocation4 + $0x708] ss:$28 sps:$4 sm:$0xff]  }
 0x116   : > { %2730 = vmatpush2.bf16.msra.mxu0 %v11603_v6  ;;  %v11689_v6 = vld [vmem:[#allocation4 + $0x664] ss:$28 sps:$4 sm:$0xff]  }
 0x117   : > { %2812 = vmatpush2.bf16.msra.mxu1 %v11600_v5  ;;  %2731 = vmatprep.subr.bf16.mxu0 %v11611_v8  ;;  %v11686_v5 = vld [vmem:[#allocation4 + $0xa54] ss:$28 sps:$4 sm:$0xff]   ;;  %v11687_v8 = vld [vmem:[#allocation4 + $0x660] ss:$28 sps:$4 sm:$0xff]  }
 0x118   : > { %2813 = vmatprep.subr.bf16.mxu1 %v11608_v7  ;;  %v11684_v7 = vld [vmem:[#allocation4 + $0xa50] ss:$28 sps:$4 sm:$0xff]  }
 0x11a   : > { %2732 = vmatpush2.bf16.msra.mxu0 %v11609_v10  ;;  %v11695_v10 = vld [vmem:[#allocation4 + $0x62c] ss:$28 sps:$4 sm:$0xff]  }
 0x11b   : > { %2814 = vmatpush2.bf16.msra.mxu1 %v11606_v9  ;;  %2733 = vmatprep.subr.bf16.mxu0 %v11617_v14  ;;  %v11692_v9 = vld [vmem:[#allocation4 + $0xa1c] ss:$28 sps:$4 sm:$0xff]   ;;  %v11693_v14 = vld [vmem:[#allocation4 + $0x628] ss:$28 sps:$4 sm:$0xff]  }
 0x11c   : > { %2815 = vmatprep.subr.bf16.mxu1 %v11614_v11  ;;  %v11690_v11 = vld [vmem:[#allocation4 + $0xa18] ss:$28 sps:$4 sm:$0xff]  }
 0x11e   : > { %2734 = vmatpush2.bf16.msra.mxu0 %v11615_v16  ;;  %v11701_v16 = vld [vmem:[#allocation4 + $0x5f4] ss:$28 sps:$4 sm:$0xff]  }
 0x11f   : > { %2816 = vmatpush2.bf16.msra.mxu1 %v11612_v15  ;;  %2735 = vmatprep.subr.bf16.mxu0 %v11623_v18  ;;  %v11698_v15 = vld [vmem:[#allocation4 + $0x9e4] ss:$28 sps:$4 sm:$0xff]   ;;  %v11699_v18 = vld [vmem:[#allocation4 + $0x5f0] ss:$28 sps:$4 sm:$0xff]  }
 0x120   : > { %2817 = vmatprep.subr.bf16.mxu1 %v11620_v17  ;;  %v11696_v17 = vld [vmem:[#allocation4 + $0x9e0] ss:$28 sps:$4 sm:$0xff]  }
 0x122   : > { %2736 = vmatpush2.bf16.msra.mxu0 %v11621_v20  ;;  %v11707_v20 = vld [vmem:[#allocation4 + $0x5bc] ss:$28 sps:$4 sm:$0xff]  }
 0x123   : > { %2818 = vmatpush2.bf16.msra.mxu1 %v11618_v19  ;;  %2834 = vmatprep.subr.bf16.mxu0 %v11629_v26  ;;  %v11704_v19 = vld [vmem:[#allocation4 + $0x9ac] ss:$28 sps:$4 sm:$0xff]   ;;  %v11713_v26 = vld [vmem:[#allocation4 + $0x584] ss:$28 sps:$4 sm:$0xff]  }
 0x124   : > { %2819 = vmatprep.subr.bf16.mxu1 %v11626_v25  ;;  %v11710_v25 = vld [vmem:[#allocation4 + $0x974] ss:$28 sps:$4 sm:$0xff]  }
 0x125   : > { %2738 = vmatmul.mubr.bf16.vlgmr.msra.gmra.mxu0 %v13537_v27 }
 0x126   : > { %2835 = vmatpush1.bf16.msra.mxu0 %v11627_v29  ;;  %2866 = vmatprep.mubr.bf16.mxu0 %v13488_v54  ;;  %v11711_v29 = vld [vmem:[#allocation4 + $0x580] ss:$28 sps:$4 sm:$0xff]  }
 0x127   : > { %2820 = vmatpush2.bf16.msra.mxu1 %v11624_v28  ;;  %2836 = vmatprep.subr.bf16.mxu0 %v11635_v31  ;;  %v11708_v28 = vld [vmem:[#allocation4 + $0x970] ss:$28 sps:$4 sm:$0xff]  }
 0x128   : > { %2821 = vmatprep.subr.bf16.mxu1 %v11632_v30  ;;  %v11716_v30 = vld [vmem:[#allocation4 + $0x93c] ss:$28 sps:$4 sm:$0xff]   ;;  %v11719_v31 = vld [vmem:[#allocation4 + $0x54c] ss:$28 sps:$4 sm:$0xff]  }
 0x12a   : > { %2837 = vmatpush1.bf16.msra.mxu0 %v11633_v33  ;;  %v11717_v33 = vld [vmem:[#allocation4 + $0x548] ss:$28 sps:$4 sm:$0xff]  }
 0x12b   : > { %2822 = vmatpush2.bf16.msra.mxu1 %v11630_v32  ;;  %2838 = vmatprep.subr.bf16.mxu0 %v11641_v35  ;;  %v11714_v32 = vld [vmem:[#allocation4 + $0x938] ss:$28 sps:$4 sm:$0xff]  }
 0x12c   : > { %2877 = vmatprep.subr.bf16.mxu1 %v11638_v34  ;;  %v11722_v34 = vld [vmem:[#allocation4 + $0x904] ss:$28 sps:$4 sm:$0xff]   ;;  %v11725_v35 = vld [vmem:[#allocation4 + $0x19c] ss:$28 sps:$4 sm:$0xff]  }
 0x12e   : > { %2824 = vmatmul.mubr.bf16.vlgmr.msra.gmra.mxu1 %v13504_v12  ;;  %2839 = vmatpush1.bf16.msra.mxu0 %v11639_v37  ;;  %v11723_v37 = vld [vmem:[#allocation4 + $0x198] ss:$28 sps:$4 sm:$0xff]  }
 0x12f   : > { %2878 = vmatpush1.bf16.msra.mxu1 %v11636_v36  ;;  %2840 = vmatprep.subr.bf16.mxu0 %v11647_v39  ;;  %v11720_v36 = vld [vmem:[#allocation4 + $0x900] ss:$28 sps:$4 sm:$0xff]  }
 0x130   : > { %2879 = vmatprep.subr.bf16.mxu1 %v11644_v38  ;;  %2909 = vmatprep.mubr.bf16.mxu1 %v13528_v44  ;;  %v11728_v38 = vld [vmem:[#allocation4 + $0x8cc] ss:$28 sps:$4 sm:$0xff]   ;;  %v11731_v39 = vld [vmem:[#allocation4 + $0x164] ss:$28 sps:$4 sm:$0xff]  }
 0x132   : > { %2841 = vmatpush1.bf16.msra.mxu0 %v11645_v41  ;;  %v11729_v41 = vld [vmem:[#allocation4 + $0x160] ss:$28 sps:$4 sm:$0xff]  }
 0x133   : > { %2880 = vmatpush1.bf16.msra.mxu1 %v11642_v40  ;;  %2842 = vmatprep.subr.bf16.mxu0 %v11653_v43  ;;  %v11726_v40 = vld [vmem:[#allocation4 + $0x8c8] ss:$28 sps:$4 sm:$0xff]  }
 0x134   : > { %2881 = vmatprep.subr.bf16.mxu1 %v11650_v42  ;;  %v11734_v42 = vld [vmem:[#allocation4 + $0x12c] ss:$28 sps:$4 sm:$0xff]  }
 0x135   : > { %v11737_v43 = vld [vmem:[#allocation4 + $0xa8c] ss:$28 sps:$4 sm:$0xff]  }
 0x136   : > { %2843 = vmatpush1.bf16.msra.mxu0 %v11651_v46  ;;  %v11735_v46 = vld [vmem:[#allocation4 + $0xa88] ss:$28 sps:$4 sm:$0xff]  }
 0x137   : > { %2882 = vmatpush1.bf16.msra.mxu1 %v11648_v45  ;;  %2844 = vmatprep.subr.bf16.mxu0 %v11659_v48  ;;  %v11732_v45 = vld [vmem:[#allocation4 + $0x128] ss:$28 sps:$4 sm:$0xff]   ;;  %v11743_v48 = vld [vmem:[#allocation4 + $0x51c] ss:$28 sps:$4 sm:$0xff]  }
 0x138   : > { %2883 = vmatprep.subr.bf16.mxu1 %v11656_v47  ;;  %v11740_v47 = vld [vmem:[#allocation4 + $0xf4] ss:$28 sps:$4 sm:$0xff]  }
 0x13a   : > { %2845 = vmatpush1.bf16.msra.mxu0 %v11657_v50  ;;  %v11746_v50 = vld [vmem:[#allocation4 + $0xbc] ss:$28 sps:$4 sm:$0xff]  }
 0x13b   : > { %2884 = vmatpush1.bf16.msra.mxu1 %v11654_v49  ;;  %2846 = vmatprep.subr.bf16.mxu0 %v11665_v52  ;;  %v11738_v49 = vld [vmem:[#allocation4 + $0xf0] ss:$28 sps:$4 sm:$0xff]   ;;  %v11744_v52 = vld [vmem:[#allocation4 + $0xb8] ss:$28 sps:$4 sm:$0xff]  }
 0x13c   : > { %2885 = vmatprep.subr.bf16.mxu1 %v11662_v51  ;;  %v11741_v51 = vld [vmem:[#allocation4 + $0x518] ss:$28 sps:$4 sm:$0xff]  }
 0x13e   : > { %2847 = vmatpush1.bf16.msra.mxu0 %v11663_v56  ;;  %v11752_v56 = vld [vmem:[#allocation4 + $0x84] ss:$28 sps:$4 sm:$0xff]  }
 0x13f   : > { %2886 = vmatpush1.bf16.msra.mxu1 %v11660_v55  ;;  %2848 = vmatprep.subr.bf16.mxu0 %v11671_v58  ;;  %v11749_v55 = vld [vmem:[#allocation4 + $0x4e4] ss:$28 sps:$4 sm:$0xff]  }
 0x140   : > { %2887 = vmatprep.subr.bf16.mxu1 %v11668_v57  ;;  %v11747_v57 = vld [vmem:[#allocation4 + $0x4e0] ss:$28 sps:$4 sm:$0xff]  }
 0x141   : > { %v11750_v58 = vld [vmem:[#allocation4 + $0x80] ss:$28 sps:$4 sm:$0xff]  }
 0x142   : > { %2849 = vmatpush1.bf16.msra.mxu0 %v11669_v60  ;;  %v11758_v60 = vld [vmem:[#allocation4 + $0x4c] ss:$28 sps:$4 sm:$0xff]  }
 0x143   : > { %2888 = vmatpush1.bf16.msra.mxu1 %v11666_v59  ;;  %2850 = vmatprep.subr.bf16.mxu0 %v11677_v62  ;;  %v11755_v59 = vld [vmem:[#allocation4 + $0x4ac] ss:$28 sps:$4 sm:$0xff]  }
 0x144   : > { %2889 = vmatprep.subr.bf16.mxu1 %v11674_v61  ;;  %v11753_v61 = vld [vmem:[#allocation4 + $0x4a8] ss:$28 sps:$4 sm:$0xff]  }
 0x145   : > { %v11756_v62 = vld [vmem:[#allocation4 + $0x48] ss:$28 sps:$4 sm:$0xff]  }
 0x146   : > { %2851 = vmatpush2.bf16.msra.mxu0 %v11675_v0  ;;  %v11764_v0 = vld [vmem:[#allocation4 + $0x14] ss:$28 sps:$4 sm:$0xff]  }
 0x147   : > { %2890 = vmatpush1.bf16.msra.mxu1 %v11672_v63  ;;  %2852 = vmatprep.subr.bf16.mxu0 %v11683_v2  ;;  %v11761_v63 = vld [vmem:[#allocation4 + $0x474] ss:$28 sps:$4 sm:$0xff]  }
 0x148   : > { %2891 = vmatprep.subr.bf16.mxu1 %v11680_v1  ;;  %v11759_v1 = vld [vmem:[#allocation4 + $0x470] ss:$28 sps:$4 sm:$0xff]  }
 0x149   : > { %v11762_v2 = vld [vmem:[#allocation4 + $0x10] ss:$28 sps:$4 sm:$0xff]  }
 0x14a   : > { %2853 = vmatpush2.bf16.msra.mxu0 %v11681_v4  ;;  %v11770_v4 = vld [vmem:[#allocation4 + $0x35c] ss:$28 sps:$4 sm:$0xff]  }
 0x14b   : > { %2892 = vmatpush1.bf16.msra.mxu1 %v11678_v3  ;;  %2854 = vmatprep.subr.bf16.mxu0 %v11689_v6  ;;  %v11767_v3 = vld [vmem:[#allocation4 + $0x43c] ss:$28 sps:$4 sm:$0xff]  }
 0x14c   : > { %2893 = vmatprep.subr.bf16.mxu1 %v11686_v5  ;;  %v11765_v5 = vld [vmem:[#allocation4 + $0x438] ss:$28 sps:$4 sm:$0xff]  }
 0x14d   : > { %v11768_v6 = vld [vmem:[#allocation4 + $0x358] ss:$28 sps:$4 sm:$0xff]  }
 0x14e   : > { %2855 = vmatpush2.bf16.msra.mxu0 %v11687_v8  ;;  %v11776_v8 = vld [vmem:[#allocation4 + $0x324] ss:$28 sps:$4 sm:$0xff]  }
 0x14f   : > { %2894 = vmatpush2.bf16.msra.mxu1 %v11684_v7  ;;  %2856 = vmatprep.subr.bf16.mxu0 %v11695_v10  ;;  %v11773_v7 = vld [vmem:[#allocation4 + $0x404] ss:$28 sps:$4 sm:$0xff]  }
 0x150   : > { %2895 = vmatprep.subr.bf16.mxu1 %v11692_v9  ;;  %v11771_v9 = vld [vmem:[#allocation4 + $0x400] ss:$28 sps:$4 sm:$0xff]  }
 0x151   : > { %v11774_v10 = vld [vmem:[#allocation4 + $0x320] ss:$28 sps:$4 sm:$0xff]  }
 0x152   : > { %2857 = vmatpush2.bf16.msra.mxu0 %v11693_v14  ;;  %v11782_v14 = vld [vmem:[#allocation4 + $0x2ec] ss:$28 sps:$4 sm:$0xff]  }
 0x153   : > { %2896 = vmatpush2.bf16.msra.mxu1 %v11690_v11  ;;  %2858 = vmatprep.subr.bf16.mxu0 %v11701_v16  ;;  %v11779_v11 = vld [vmem:[#allocation4 + $0x3cc] ss:$28 sps:$4 sm:$0xff]  }
 0x154   : > { %2897 = vmatprep.subr.bf16.mxu1 %v11698_v15  ;;  %v11777_v15 = vld [vmem:[#allocation4 + $0x3c8] ss:$28 sps:$4 sm:$0xff]  }
 0x155   : > { %v11780_v16 = vld [vmem:[#allocation4 + $0x2e8] ss:$28 sps:$4 sm:$0xff]  }
 0x156   : > { %2859 = vmatpush2.bf16.msra.mxu0 %v11699_v18  ;;  %v11788_v18 = vld [vmem:[#allocation4 + $0x2b4] ss:$28 sps:$4 sm:$0xff]  }
 0x157   : > { %2898 = vmatpush2.bf16.msra.mxu1 %v11696_v17  ;;  %2860 = vmatprep.subr.bf16.mxu0 %v11707_v20  ;;  %v11785_v17 = vld [vmem:[#allocation4 + $0x394] ss:$28 sps:$4 sm:$0xff]  }
 0x158   : > { %2899 = vmatprep.subr.bf16.mxu1 %v11704_v19  ;;  %v11783_v19 = vld [vmem:[#allocation4 + $0x390] ss:$28 sps:$4 sm:$0xff]  }
 0x159   : > { %v11786_v20 = vld [vmem:[#allocation4 + $0x2b0] ss:$28 sps:$4 sm:$0xff]  }
 0x15a   : > { %2861 = vmatpush2.bf16.msra.mxu0 %v11705_v24  ;;  %v11794_v24 = vld [vmem:[#allocation4 + $0x27c] ss:$28 sps:$4 sm:$0xff]  }
 0x15b   : > { %2900 = vmatpush2.bf16.msra.mxu1 %v11702_v22  ;;  %2862 = vmatprep.subr.bf16.mxu0 %v11713_v26  ;;  %v11791_v22 = vld [vmem:[#allocation4 + $0x6dc] ss:$28 sps:$4 sm:$0xff]  }
 0x15c   : > { %2901 = vmatprep.subr.bf16.mxu1 %v11710_v25  ;;  %v11789_v25 = vld [vmem:[#allocation4 + $0x6d8] ss:$28 sps:$4 sm:$0xff]  }
 0x15d   : > { %v11792_v26 = vld [vmem:[#allocation4 + $0x278] ss:$28 sps:$4 sm:$0xff]  }
 0x15e   : > { %2863 = vmatpush2.bf16.msra.mxu0 %v11711_v29  ;;  %v11800_v29 = vld [vmem:[#allocation4 + $0x244] ss:$28 sps:$4 sm:$0xff]  }
 0x15f   : > { %2902 = vmatpush2.bf16.msra.mxu1 %v11708_v28  ;;  %2864 = vmatprep.subr.bf16.mxu0 %v11719_v31  ;;  %v11797_v28 = vld [vmem:[#allocation4 + $0x6a4] ss:$28 sps:$4 sm:$0xff]  }
 0x160   : > { %2903 = vmatprep.subr.bf16.mxu1 %v11716_v30  ;;  %v11795_v30 = vld [vmem:[#allocation4 + $0x6a0] ss:$28 sps:$4 sm:$0xff]  }
 0x161   : > { %v11798_v31 = vld [vmem:[#allocation4 + $0x240] ss:$28 sps:$4 sm:$0xff]  }
 0x162   : > { %2865 = vmatpush2.bf16.msra.mxu0 %v11717_v33  ;;  %v11806_v33 = vld [vmem:[#allocation4 + $0x20c] ss:$28 sps:$4 sm:$0xff]  }
 0x163   : > { %2904 = vmatpush2.bf16.msra.mxu1 %v11714_v32  ;;  %2963 = vmatprep.subr.bf16.mxu0 %v11725_v35  ;;  %v11803_v32 = vld [vmem:[#allocation4 + $0x66c] ss:$28 sps:$4 sm:$0xff]  }
 0x164   : > { %2905 = vmatprep.subr.bf16.mxu1 %v11722_v34  ;;  %v11801_v34 = vld [vmem:[#allocation4 + $0x668] ss:$28 sps:$4 sm:$0xff]  }
 0x165   : > { %2867 = vmatmul.mubr.bf16.vlgmr.msra.gmra.mxu0 %v13506_v13  ;;  %v11804_v35 = vld [vmem:[#allocation4 + $0x208] ss:$28 sps:$4 sm:$0xff]  }
 0x166   : > { %2964 = vmatpush1.bf16.msra.mxu0 %v11723_v37  ;;  %2995 = vmatprep.mubr.bf16.mxu0 %v13486_v53  ;;  %v11812_v37 = vld [vmem:[#allocation4 + $0x1d4] ss:$28 sps:$4 sm:$0xff]  }
 0x167   : > { %2906 = vmatpush2.bf16.msra.mxu1 %v11720_v36  ;;  %2965 = vmatprep.subr.bf16.mxu0 %v11731_v39  ;;  %v11809_v36 = vld [vmem:[#allocation4 + $0x634] ss:$28 sps:$4 sm:$0xff]  }
 0x168   : > { %2907 = vmatprep.subr.bf16.mxu1 %v11728_v38  ;;  %v13212_v38 = vmov 0.0   ;;  %v11807_v39 = vld [vmem:[#allocation4 + $0x630] ss:$28 sps:$4 sm:$0xff]  }
 0x169   : > { %3366 = vst [vmem:[#allocation3] sm:$0xff] %v13212_v38  ;;  %3367 = vst [vmem:[#allocation3 + $0x8] sm:$0xff] %v13212_v38 }
 0x16a   : > { %2966 = vmatpush1.bf16.msra.mxu0 %v11729_v41  ;;  %v11815_v41 = vld [vmem:[#allocation4 + $0x5fc] ss:$28 sps:$4 sm:$0xff]  }
 0x16b   : > { %2908 = vmatpush2.bf16.msra.mxu1 %v11726_v40  ;;  %2967 = vmatprep.subr.bf16.mxu0 %v11734_v42  ;;  %v11810_v40 = vld [vmem:[#allocation4 + $0x1d0] ss:$28 sps:$4 sm:$0xff]   ;;  %v11818_v42 = vld [vmem:[#allocation4 + $0x89c] ss:$28 sps:$4 sm:$0xff]  }
 0x16c   : > { %2934 = vmatprep.subr.bf16.mxu1 %v11737_v43  ;;  %v11813_v43 = vld [vmem:[#allocation4 + $0x5f8] ss:$28 sps:$4 sm:$0xff]  }
 0x16e   : > { %2910 = vmatmul.mubr.bf16.vlgmr.msra.gmra.mxu1 %v13537_v27  ;;  %2968 = vmatpush1.bf16.msra.mxu0 %v11732_v45  ;;  %v11816_v45 = vld [vmem:[#allocation4 + $0x898] ss:$28 sps:$4 sm:$0xff]  }
 0x16f   : > { %2935 = vmatpush1.bf16.msra.mxu1 %v11735_v46  ;;  %2969 = vmatprep.subr.bf16.mxu0 %v11740_v47  ;;  %v11821_v46 = vld [vmem:[#allocation4 + $0x5c4] ss:$28 sps:$4 sm:$0xff]  }
 0x170   : > { %2952 = vmatprep.mubr.bf16.mxu1 %v13211_v21  ;;  %3006 = vmatprep.subr.bf16.mxu1 %v11743_v48  ;;  %v11824_v47 = vld [vmem:[#allocation4 + $0x864] ss:$28 sps:$4 sm:$0xff]  }
 0x171   : > { %v11819_v48 = vld [vmem:[#allocation4 + $0x5c0] ss:$28 sps:$4 sm:$0xff]  }
 0x172   : > { %2970 = vmatpush1.bf16.msra.mxu0 %v11738_v49  ;;  %v11822_v49 = vld [vmem:[#allocation4 + $0x860] ss:$28 sps:$4 sm:$0xff]  }
 0x173   : > { %2971 = vmatprep.subr.bf16.mxu0 %v11746_v50  ;;  %v11827_v50 = vld [vmem:[#allocation4 + $0x58c] ss:$28 sps:$4 sm:$0xff]  }
 0x176   : > { %10246 = vmatmul.mubr.msk.bf16.vlgmr.msra.gmra.mxu1 %vm2615_vm0, %v13517_v23  ;;  %2972 = vmatpush1.bf16.msra.mxu0 %v11744_v52  ;;  %v11825_v52 = vld [vmem:[#allocation4 + $0x588] ss:$28 sps:$4 sm:$0xff]  }
 0x177   : > { %3007 = vmatpush1.bf16.msra.mxu1 %v11741_v51  ;;  %2973 = vmatprep.subr.bf16.mxu0 %v11752_v56  ;;  %v11830_v51 = vld [vmem:[#allocation4 + $0x82c] ss:$28 sps:$4 sm:$0xff]   ;;  %v11833_v56 = vld [vmem:[#allocation4 + $0x554] ss:$28 sps:$4 sm:$0xff]  }
 0x178   : > { %3008 = vmatprep.subr.bf16.mxu1 %v11749_v55  ;;  %3038 = vmatprep.mubr.bf16.mxu1 %v13488_v54  ;;  %v11828_v55 = vld [vmem:[#allocation4 + $0x828] ss:$28 sps:$4 sm:$0xff]  }
 0x17a   : > { %2974 = vmatpush1.bf16.msra.mxu0 %v11750_v58  ;;  %v11831_v58 = vld [vmem:[#allocation4 + $0x550] ss:$28 sps:$4 sm:$0xff]  }
 0x17b   : > { %3009 = vmatpush1.bf16.msra.mxu1 %v11747_v57  ;;  %2975 = vmatprep.subr.bf16.mxu0 %v11758_v60  ;;  %v11836_v57 = vld [vmem:[#allocation4 + $0x7f4] ss:$28 sps:$4 sm:$0xff]   ;;  %v11839_v60 = vld [vmem:[#allocation4 + $0x7bc] ss:$28 sps:$4 sm:$0xff]  }
 0x17c   : > { %3010 = vmatprep.subr.bf16.mxu1 %v11755_v59  ;;  %v11834_v59 = vld [vmem:[#allocation4 + $0x7f0] ss:$28 sps:$4 sm:$0xff]  }
 0x17e   : > { %2976 = vmatpush1.bf16.msra.mxu0 %v11756_v62  ;;  %v11837_v62 = vld [vmem:[#allocation4 + $0x7b8] ss:$28 sps:$4 sm:$0xff]  }
 0x17f   : > { %3011 = vmatpush1.bf16.msra.mxu1 %v11753_v61  ;;  %2977 = vmatprep.subr.bf16.mxu0 %v11764_v0  ;;  %v11842_v61 = vld [vmem:[#allocation4 + $0xa94] ss:$28 sps:$4 sm:$0xff]   ;;  %v11845_v0 = vld [vmem:[#allocation4 + $0x784] ss:$28 sps:$4 sm:$0xff]  }
 0x180   : > { %3012 = vmatprep.subr.bf16.mxu1 %v11761_v63  ;;  %v11840_v63 = vld [vmem:[#allocation4 + $0xa90] ss:$28 sps:$4 sm:$0xff]  }
 0x182   : > { %2978 = vmatpush1.bf16.msra.mxu0 %v11762_v2  ;;  %v11843_v2 = vld [vmem:[#allocation4 + $0x780] ss:$28 sps:$4 sm:$0xff]  }
 0x183   : > { %3013 = vmatpush1.bf16.msra.mxu1 %v11759_v1  ;;  %2979 = vmatprep.subr.bf16.mxu0 %v11770_v4  ;;  %v11846_v1 = vld [vmem:[#allocation4 + $0x360] ss:$28 sps:$4 sm:$0xff]  }
 0x184   : > { %3014 = vmatprep.subr.bf16.mxu1 %v11767_v3  ;;  %v11850_v3 = vld [vmem:[#allocation4 + $0x74c] ss:$28 sps:$4 sm:$0xff]   ;;  %v11847_v4 = vld [vmem:[#allocation4 + $0x1a0] ss:$28 sps:$4 sm:$0xff]  }
 0x186   : > { %2980 = vmatpush2.bf16.msra.mxu0 %v11768_v6  ;;  %v11851_v6 = vld [vmem:[#allocation4 + $0x328] ss:$28 sps:$4 sm:$0xff]  }
 0x187   : > { %3015 = vmatpush1.bf16.msra.mxu1 %v11765_v5  ;;  %2981 = vmatprep.subr.bf16.mxu0 %v11776_v8  ;;  %v11848_v5 = vld [vmem:[#allocation4 + $0x748] ss:$28 sps:$4 sm:$0xff]  }
 0x188   : > { %3016 = vmatprep.subr.bf16.mxu1 %v11773_v7  ;;  %v11855_v7 = vld [vmem:[#allocation4 + $0x714] ss:$28 sps:$4 sm:$0xff]   ;;  %v11852_v8 = vld [vmem:[#allocation4 + $0x168] ss:$28 sps:$4 sm:$0xff]  }
 0x18a   : > { %2982 = vmatpush2.bf16.msra.mxu0 %v11774_v10  ;;  %v11856_v10 = vld [vmem:[#allocation4 + $0x2f0] ss:$28 sps:$4 sm:$0xff]  }
 0x18b   : > { %3017 = vmatpush1.bf16.msra.mxu1 %v11771_v9  ;;  %2983 = vmatprep.subr.bf16.mxu0 %v11782_v14  ;;  %v11853_v9 = vld [vmem:[#allocation4 + $0x710] ss:$28 sps:$4 sm:$0xff]   ;;  %v11858_v14 = vld [vmem:[#allocation4 + $0xa58] ss:$28 sps:$4 sm:$0xff]  }
 0x18c   : > { %3018 = vmatprep.subr.bf16.mxu1 %v11779_v11  ;;  %v11860_v11 = vld [vmem:[#allocation4 + $0xa5c] ss:$28 sps:$4 sm:$0xff]  }
 0x18e   : > { %2984 = vmatpush2.bf16.msra.mxu0 %v11780_v16  ;;  %v11865_v16 = vld [vmem:[#allocation4 + $0xa24] ss:$28 sps:$4 sm:$0xff]  }
 0x18f   : > { %3019 = vmatpush1.bf16.msra.mxu1 %v11777_v15  ;;  %2985 = vmatprep.subr.bf16.mxu0 %v11788_v18  ;;  %v11861_v15 = vld [vmem:[#allocation4 + $0x2b8] ss:$28 sps:$4 sm:$0xff]   ;;  %v11863_v18 = vld [vmem:[#allocation4 + $0xa20] ss:$28 sps:$4 sm:$0xff]  }
 0x190   : > { %3020 = vmatprep.subr.bf16.mxu1 %v11785_v17  ;;  %v11862_v17 = vld [vmem:[#allocation4 + $0xf8] ss:$28 sps:$4 sm:$0xff]  }
 0x192   : > { %2986 = vmatpush2.bf16.msra.mxu0 %v11786_v20  ;;  %v11870_v20 = vld [vmem:[#allocation4 + $0x9ec] ss:$28 sps:$4 sm:$0xff]  }
 0x193   : > { %3021 = vmatpush1.bf16.msra.mxu1 %v11783_v19  ;;  %2987 = vmatprep.subr.bf16.mxu0 %v11794_v24  ;;  %v11866_v19 = vld [vmem:[#allocation4 + $0x280] ss:$28 sps:$4 sm:$0xff]   ;;  %v11871_v24 = vld [vmem:[#allocation4 + $0x248] ss:$28 sps:$4 sm:$0xff]  }
 0x194   : > { %3022 = vmatprep.subr.bf16.mxu1 %v11791_v22  ;;  %v11867_v22 = vld [vmem:[#allocation4 + $0xc0] ss:$28 sps:$4 sm:$0xff]  }
 0x196   : > { %2988 = vmatpush2.bf16.msra.mxu0 %v11792_v26  ;;  %v11872_v26 = vld [vmem:[#allocation4 + $0x88] ss:$28 sps:$4 sm:$0xff]  }
 0x197   : > { %3023 = vmatpush2.bf16.msra.mxu1 %v11789_v25  ;;  %2989 = vmatprep.subr.bf16.mxu0 %v11800_v29  ;;  %v11875_v25 = vld [vmem:[#allocation4 + $0x9b4] ss:$28 sps:$4 sm:$0xff]  }
 0x198   : > { %3024 = vmatprep.subr.bf16.mxu1 %v11797_v28  ;;  %v11873_v28 = vld [vmem:[#allocation4 + $0x9b0] ss:$28 sps:$4 sm:$0xff]  }
 0x199   : > { %v11876_v29 = vld [vmem:[#allocation4 + $0x210] ss:$28 sps:$4 sm:$0xff]  }
 0x19a   : > { %2990 = vmatpush2.bf16.msra.mxu0 %v11798_v31  ;;  %v816_v31 = vlaneseq }
 0x19b   : > { %3025 = vmatpush2.bf16.msra.mxu1 %v11795_v30  ;;  %2991 = vmatprep.subr.bf16.mxu0 %v11806_v33  ;;  %v11880_v30 = vld [vmem:[#allocation4 + $0x97c] ss:$28 sps:$4 sm:$0xff]   ;;  %v11877_v33 = vld [vmem:[#allocation4 + $0x50] ss:$28 sps:$4 sm:$0xff]  }
 0x19c   : > { %3026 = vmatprep.subr.bf16.mxu1 %v11803_v32 }
 0x19e   : > { %2992 = vmatpush2.bf16.msra.mxu0 %v11804_v35  ;;  %v11881_v35 = vld [vmem:[#allocation4 + $0x1d8] ss:$28 sps:$4 sm:$0xff]  }
 0x19f   : > { %3027 = vmatpush2.bf16.msra.mxu1 %v11801_v34  ;;  %2993 = vmatprep.subr.bf16.mxu0 %v11812_v37  ;;  %v11878_v34 = vld [vmem:[#allocation4 + $0x978] ss:$28 sps:$4 sm:$0xff]   ;;  %v13559_v37 = vshrl.u32 %v816_v31, 7  ;;  %v11908_v31 = vld [vmem:[#allocation4 + $0x830] ss:$28 sps:$4 sm:$0xff]  }
 0x1a0   : > { %3028 = vmatprep.subr.bf16.mxu1 %v11809_v36  ;;  %v11885_v36 = vld [vmem:[#allocation4 + $0x944] ss:$28 sps:$4 sm:$0xff]  }
 0x1a2   : > { %2994 = vmatpush2.bf16.msra.mxu0 %v11810_v40  ;;  %v11882_v40 = vld [vmem:[#allocation4 + $0x18] ss:$28 sps:$4 sm:$0xff]  }
 0x1a3   : > { %3029 = vmatpush2.bf16.msra.mxu1 %v11807_v39  ;;  %3049 = vmatprep.subr.bf16.mxu0 %v11818_v42 }
 0x1a4   : > { %3030 = vmatprep.subr.bf16.mxu1 %v11815_v41  ;;  %v11883_v41 = vld [vmem:[#allocation4 + $0x940] ss:$28 sps:$4 sm:$0xff]  }
 0x1a5   : > { %2996 = vmatmul.mubr.bf16.vlgmr.msra.gmra.mxu0 %v13504_v12  ;;  %v2653_v42 = vpop.f32.mrf.mxu0 }
 0x1a6   : > { %3050 = vmatpush1.bf16.msra.mxu0 %v11816_v45  ;;  %3081 = vmatprep.mubr.bf16.mxu0 %v13528_v44  ;;  %v2696_v32 = vpop.f32.mrf.mxu1  ;;  %v11890_v45 = vld [vmem:[#allocation4 + $0x90c] ss:$28 sps:$4 sm:$0xff]  }
 0x1a7   : > { %3031 = vmatpush2.bf16.msra.mxu1 %v11813_v43  ;;  %3051 = vmatprep.subr.bf16.mxu0 %v11824_v47  ;;  %v11886_v43 = vld [vmem:[#allocation4 + $0x6e0] ss:$28 sps:$4 sm:$0xff]  }
 0x1a8   : > { %3032 = vmatprep.subr.bf16.mxu1 %v11821_v46  ;;  %v2698_v39 = vpop.f32.mrf.mxu1  ;;  %v818_v46 = vsub.s32 0, %v13559_v37  ;;  %v13562_v47 = vld [vmem:[#allocation6] sm:$0x7f] }
 0x1aa   : > { %3052 = vmatpush1.bf16.msra.mxu0 %v11822_v49  ;;  %v822_v49 = vsub.s32 1, %v13559_v37 }
 0x1ab   : > { %3033 = vmatpush2.bf16.msra.mxu1 %v11819_v48  ;;  %3053 = vmatprep.subr.bf16.mxu0 %v11830_v51  ;;  %v2700_v48 = vpop.f32.mrf.mxu1  ;;  %v11888_v51 = vld [vmem:[#allocation4 + $0x908] ss:$28 sps:$4 sm:$0xff]  }
 0x1ac   : > { %3034 = vmatprep.subr.bf16.mxu1 %v11827_v50  ;;  %v11887_v50 = vld [vmem:[#allocation4 + $0x520] ss:$28 sps:$4 sm:$0xff]  }
 0x1ae   : > { %3054 = vmatpush1.bf16.msra.mxu0 %v11828_v55  ;;  %v11891_v55 = vld [vmem:[#allocation4 + $0x6a8] ss:$28 sps:$4 sm:$0xff]  }
 0x1af   : > { %3035 = vmatpush2.bf16.msra.mxu1 %v11825_v52  ;;  %3055 = vmatprep.subr.bf16.mxu0 %v11836_v57  ;;  %v2655_v52 = vpop.f32.mrf.mxu0  ;;  %v819_v57 = vrot.slane %v13562_v47, %v818_v46  ;;  %v11911_v46 = vld [vmem:[#allocation4 + $0x590] ss:$28 sps:$4 sm:$0xff]  }
 0x1b0   : > { %3036 = vmatprep.subr.bf16.mxu1 %v11833_v56  ;;  %v11895_v56 = vld [vmem:[#allocation4 + $0x8d4] ss:$28 sps:$4 sm:$0xff]  }
 0x1b2   : > { %3056 = vmatpush1.bf16.msra.mxu0 %v11834_v59  ;;  %v823_v59 = vrot.slane %v13562_v47, %v822_v49 }
 0x1b3   : > { %3037 = vmatpush2.bf16.msra.mxu1 %v11831_v58  ;;  %3057 = vmatprep.subr.bf16.mxu0 %v11839_v60  ;;  %v2702_v58 = vpop.f32.mrf.mxu1  ;;  %v11892_v60 = vld [vmem:[#allocation4 + $0x4e8] ss:$28 sps:$4 sm:$0xff]  }
 0x1b4   : > { %3106 = vmatprep.subr.bf16.mxu1 %v11842_v61  ;;  %v11893_v61 = vld [vmem:[#allocation4 + $0x8d0] ss:$28 sps:$4 sm:$0xff]  }
 0x1b6   : > { %3039 = vmatmul.mubr.bf16.vlgmr.msra.gmra.mxu1 %v13506_v13  ;;  %3058 = vmatpush1.bf16.msra.mxu0 %v11837_v62  ;;  %v2657_v62 = vpop.f32.mrf.mxu0 }
 0x1b7   : > { %3107 = vmatpush1.bf16.msra.mxu1 %v11840_v63  ;;  %3059 = vmatprep.subr.bf16.mxu0 %v11845_v0  ;;  %v11896_v63 = vld [vmem:[#allocation4 + $0x670] ss:$28 sps:$4 sm:$0xff]   ;;  %v11898_v0 = vld [vmem:[#allocation4 + $0xa60] ss:$28 sps:$4 sm:$0xff]  }
 0x1b8   : > { %3124 = vmatprep.mubr.bf16.mxu1 %v13211_v21  ;;  %11027 = vmatprep.subr.bf16.mxu1 %v11846_v1  ;;  %v11857_v21 = vld [vmem:[#allocation4 + $0x130] ss:$28 sps:$4 sm:$0xff]   ;;  %v2654_v1 = vadd.f32 %v2653_v42, %v819_v57 }
 0x1ba   : > { %3060 = vmatpush1.bf16.msra.mxu0 %v11843_v2  ;;  %v2782_v2 = vpop.f32.mrf.mxu1 }
 0x1bb   : > { %3061 = vmatprep.subr.bf16.mxu0 %v11850_v3  ;;  %v2656_v3 = vadd.f32 %v2655_v52, %v823_v59  ;;  %v11913_v52 = vld [vmem:[#allocation4 + $0x3d0] ss:$28 sps:$4 sm:$0xff]  }
 0x1be   : > { %10247 = vmatmul.mubr.msk.bf16.vlgmr.msra.gmra.mxu1 %vm2615_vm0, %v13517_v23  ;;  %3062 = vmatpush1.bf16.msra.mxu0 %v11848_v5  ;;  %v2659_v5 = vpop.f32.mrf.mxu0 }
 0x1bf   : > { %11028 = vmatpush3.bf16.msra.mxu1 %v11847_v4  ;;  %3063 = vmatprep.subr.bf16.mxu0 %v11855_v7  ;;  %v11897_v4 = vld [vmem:[#allocation4 + $0x4b0] ss:$28 sps:$4 sm:$0xff]   ;;  %v11902_v7 = vld [vmem:[#allocation4 + $0xa28] ss:$28 sps:$4 sm:$0xff]  }
 0x1c0   : > { %11029 = vmatprep.subr.bf16.mxu1 %v11851_v6  ;;  %3167 = vmatprep.mubr.bf16.mxu1 %v13486_v53  ;;  %v11868_v53 = vld [vmem:[#allocation4 + $0x9e8] ss:$28 sps:$4 sm:$0xff]   ;;  %v11899_v6 = vld [vmem:[#allocation4 + $0x638] ss:$28 sps:$4 sm:$0xff]  }
 0x1c2   : > { %3064 = vmatpush1.bf16.msra.mxu0 %v11853_v9  ;;  %v2658_v9 = vadd.f32 %v2657_v62, %v819_v57  ;;  %v11918_v57 = vld [vmem:[#allocation4 + $0x948] ss:$28 sps:$4 sm:$0xff]   ;;  %v11924_v62 = vld [vmem:[#allocation4 + $0xa98] ss:$28 sps:$4 sm:$0xff]  }
 0x1c3   : > { %11030 = vmatpush3.bf16.msra.mxu1 %v11852_v8  ;;  %3065 = vmatprep.subr.bf16.mxu0 %v11860_v11  ;;  %v2697_v8 = vadd.f32 %v2696_v32, %v2654_v1 }
 0x1c4   : > { %11031 = vmatprep.subr.bf16.mxu1 %v11856_v10  ;;  %v2784_v10 = vpop.f32.mrf.mxu1 }
 0x1c6   : > { %3066 = vmatpush2.bf16.msra.mxu0 %v11858_v14  ;;  %v2660_v14 = vadd.f32 %v2659_v5, %v823_v59  ;;  %v11919_v59 = vld [vmem:[#allocation4 + $0x788] ss:$28 sps:$4 sm:$0xff]  }
 0x1c7   : > { %11032 = vmatpush3.bf16.msra.mxu1 %v11857_v21  ;;  %3067 = vmatprep.subr.bf16.mxu0 %v11865_v16  ;;  %v2699_v21 = vadd.f32 %v2698_v39, %v2656_v3  ;;  %v11904_v16 = vld [vmem:[#allocation4 + $0x868] ss:$28 sps:$4 sm:$0xff]  }
 0x1c8   : > { %11033 = vmatprep.subr.bf16.mxu1 %v11861_v15  ;;  %v11901_v15 = vld [vmem:[#allocation4 + $0x478] ss:$28 sps:$4 sm:$0xff]  }
 0x1ca   : > { %3068 = vmatpush2.bf16.msra.mxu0 %v11863_v18  ;;  %v11903_v18 = vld [vmem:[#allocation4 + $0x600] ss:$28 sps:$4 sm:$0xff]  }
 0x1cb   : > { %11034 = vmatpush3.bf16.msra.mxu1 %v11862_v17  ;;  %3069 = vmatprep.subr.bf16.mxu0 %v11870_v20  ;;  %v2701_v20 = vadd.f32 %v2700_v48, %v2658_v9  ;;  %v11914_v48 = vld [vmem:[#allocation4 + $0x980] ss:$28 sps:$4 sm:$0xff]  }
 0x1cc   : > { %11035 = vmatprep.subr.bf16.mxu1 %v11866_v19  ;;  %v11906_v19 = vld [vmem:[#allocation4 + $0x9f0] ss:$28 sps:$4 sm:$0xff]  }
 0x1ce   : > { %3070 = vmatpush2.bf16.msra.mxu0 %v11868_v53 }
 0x1cf   : > { %11036 = vmatpush3.bf16.msra.mxu1 %v11867_v22  ;;  %3071 = vmatprep.subr.bf16.mxu0 %v11875_v25 }
 0x1d0   : > { %11037 = vmatprep.subr.bf16.mxu1 %v11871_v24  ;;  %v2786_v24 = vpop.f32.mrf.mxu1 }
 0x1d2   : > { %3072 = vmatpush2.bf16.msra.mxu0 %v11873_v28 }
 0x1d3   : > { %11038 = vmatpush3.bf16.msra.mxu1 %v11872_v26  ;;  %3073 = vmatprep.subr.bf16.mxu0 %v11880_v30  ;;  %v2703_v26 = vadd.f32 %v2702_v58, %v2660_v14  ;;  %v11905_v30 = vld [vmem:[#allocation4 + $0x440] ss:$28 sps:$4 sm:$0xff]   ;;  %v11917_v58 = vld [vmem:[#allocation4 + $0x398] ss:$28 sps:$4 sm:$0xff]  }
 0x1d4   : > { %11039 = vmatprep.subr.bf16.mxu1 %v11876_v29 }
 0x1d6   : > { %3074 = vmatpush2.bf16.msra.mxu0 %v11878_v34  ;;  %v11910_v34 = vld [vmem:[#allocation4 + $0x9b8] ss:$28 sps:$4 sm:$0xff]  }
 0x1d7   : > { %11040 = vmatpush3.bf16.msra.mxu1 %v11877_v33  ;;  %3075 = vmatprep.subr.bf16.mxu0 %v11885_v36  ;;  %v11907_v33 = vld [vmem:[#allocation4 + $0x5c8] ss:$28 sps:$4 sm:$0xff]  }
 0x1d8   : > { %11041 = vmatprep.subr.bf16.mxu1 %v11881_v35 }
 0x1da   : > { %3076 = vmatpush2.bf16.msra.mxu0 %v11883_v41  ;;  %v2788_v41 = vpop.f32.mrf.mxu1 }
 0x1db   : > { %11042 = vmatpush3.bf16.msra.mxu1 %v11882_v40  ;;  %3077 = vmatprep.subr.bf16.mxu0 %v11890_v45  ;;  %v11912_v45 = vld [vmem:[#allocation4 + $0x7f8] ss:$28 sps:$4 sm:$0xff]  }
 0x1dc   : > { %11049 = vmatprep.subr.bf16.mxu1 %v11886_v43  ;;  %v11909_v43 = vld [vmem:[#allocation4 + $0x408] ss:$28 sps:$4 sm:$0xff]  }
 0x1de   : > { %3168 = vmatmul.mubr.bf16.vlgmr.msra.gmra.mxu1 %v13504_v12  ;;  %3078 = vmatpush2.bf16.msra.mxu0 %v11888_v51  ;;  %v11900_v12 = vld [vmem:[#allocation4 + $0x8a0] ss:$28 sps:$4 sm:$0xff]  }
 0x1df   : > { %11050 = vmatpush3.bf16.msra.mxu1 %v11887_v50  ;;  %3079 = vmatprep.subr.bf16.mxu0 %v11895_v56  ;;  %v11915_v56 = vld [vmem:[#allocation4 + $0x558] ss:$28 sps:$4 sm:$0xff]  }
 0x1e0   : > { %11051 = vmatprep.subr.bf16.mxu1 %v11891_v55  ;;  %3208 = vmatprep.mubr.bf16.mxu1 %v13488_v54  ;;  %v11916_v55 = vld [vmem:[#allocation4 + $0x7c0] ss:$28 sps:$4 sm:$0xff]  }
 0x1e2   : > { %3080 = vmatpush2.bf16.msra.mxu0 %v11893_v61  ;;  %v11921_v61 = vld [vmem:[#allocation4 + $0x750] ss:$28 sps:$4 sm:$0xff]  }
 0x1e3   : > { %11052 = vmatpush3.bf16.msra.mxu1 %v11892_v60  ;;  %11071 = vmatprep.subr.bf16.mxu0 %v11898_v0  ;;  %v11920_v60 = vld [vmem:[#allocation4 + $0x910] ss:$28 sps:$4 sm:$0xff]   ;;  %v11923_v0 = vld [vmem:[#allocation4 + $0x718] ss:$28 sps:$4 sm:$0xff]  }
 0x1e4   : > { %11053 = vmatprep.subr.bf16.mxu1 %v11896_v63  ;;  %v11922_v63 = vld [vmem:[#allocation4 + $0x8d8] ss:$28 sps:$4 sm:$0xff]  }
 0x1e5   : > { %v2739_v11 = vpop.f32.mrf.mxu0  ;;  %3082 = vmatmul.mubr.bf16.vlgmr.msra.gmra.mxu0 %v13537_v27 }
 0x1e6   : > { %v2740_v54 = vadd.f32 %v2739_v11, %v2697_v8  ;;  %11072 = vmatpush3.bf16.msra.mxu0 %v11900_v12  ;;  %3249 = vmatprep.mubr.bf16.mxu0 %v13528_v44 }
 0x1e7   : > { %11054 = vmatpush3.bf16.msra.mxu1 %v11897_v4  ;;  %v2741_v17 = vpop.f32.mrf.mxu0  ;;  %11073 = vmatprep.subr.bf16.mxu0 %v11902_v7  ;;  %v826_v4 = vsub.s32 2, %v13559_v37 }
 0x1e8   : > { %11055 = vmatprep.subr.bf16.mxu1 %v11899_v6  ;;  %v2783_v22 = vadd.f32 %v2782_v2, %v2740_v54  ;;  %v2742_v53 = vadd.f32 %v2741_v17, %v2699_v21 }
 0x1e9   : > { %v2743_v25 = vpop.f32.mrf.mxu0  ;;  %v827_v6 = vrot.slane %v13562_v47, %v826_v4 }
 0x1ea   : > { %v2785_v28 = vadd.f32 %v2784_v10, %v2742_v53  ;;  %v2744_v29 = vadd.f32 %v2743_v25, %v2701_v20  ;;  %11074 = vmatpush3.bf16.msra.mxu0 %v11904_v16  ;;  %v3299_v35 = vmax.f32 %v2783_v22, 0.0 }
 0x1eb   : > { %11056 = vmatpush3.bf16.msra.mxu1 %v11901_v15  ;;  %v2745_v32 = vpop.f32.mrf.mxu0  ;;  %11075 = vmatprep.subr.bf16.mxu0 %v11906_v19 }
 0x1ec   : > { %11057 = vmatprep.subr.bf16.mxu1 %v11903_v18  ;;  %v3300_v36 = vmax.f32 %v2785_v28, 0.0  ;;  %v2787_v39 = vadd.f32 %v2786_v24, %v2744_v29  ;;  %v2746_v40 = vadd.f32 %v2745_v32, %v2703_v26 }
 0x1ee   : > { %v11019_v44 = vpack.c.bf16 %v3300_v36, %v3299_v35  ;;  %v2789_v42 = vadd.f32 %v2788_v41, %v2746_v40  ;;  %11076 = vmatpush3.bf16.msra.mxu0 %v11908_v31  ;;  %v3306_v49 = vmax.f32 %v2787_v39, 0.0  ;;  %v2825_v1 = vpop.f32.mrf.mxu1 }
 0x1ef   : > { %11058 = vmatpush3.bf16.msra.mxu1 %v11905_v30  ;;  %11077 = vmatprep.subr.bf16.mxu0 %v11910_v34 }
 0x1f0   : > { %11059 = vmatprep.subr.bf16.mxu1 %v11907_v33  ;;  %3357 = vst [vmem:[#allocation2] sm:$0xff] %v11019_v44  ;;  %v3307_v50 = vmax.f32 %v2789_v42, 0.0  ;;  %v2827_v2 = vpop.f32.mrf.mxu1 }
 0x1f2   : > { %v11023_v51 = vpack.c.bf16 %v3307_v50, %v3306_v49  ;;  %11078 = vmatpush3.bf16.msra.mxu0 %v11912_v45  ;;  %v2829_v3 = vpop.f32.mrf.mxu1  ;;  %v834_v45 = vsub.s32 4, %v13559_v37  ;;  %v838_v49 = vsub.s32 5, %v13559_v37 }
 0x1f3   : > { %11060 = vmatpush3.bf16.msra.mxu1 %v11909_v43  ;;  %11079 = vmatprep.subr.bf16.mxu0 %v11914_v48  ;;  %v2830_v54 = vadd.f32 %v2829_v3, %v827_v6 }
 0x1f4   : > { %11061 = vmatprep.subr.bf16.mxu1 %v11911_v46  ;;  %3362 = vst [vmem:[#allocation2 + $0x1c] sm:$0xff] %v11023_v51  ;;  %v2831_v5 = vpop.f32.mrf.mxu1  ;;  %v835_v50 = vrot.slane %v13562_v47, %v834_v45 }
 0x1f6   : > { %11080 = vmatpush3.bf16.msra.mxu0 %v11916_v55  ;;  %v839_v55 = vrot.slane %v13562_v47, %v838_v49 }
 0x1f7   : > { %11062 = vmatpush3.bf16.msra.mxu1 %v11913_v52  ;;  %11081 = vmatprep.subr.bf16.mxu0 %v11918_v57 }
 0x1f8   : > { %11063 = vmatprep.subr.bf16.mxu1 %v11915_v56 }
 0x1fa   : > { %11082 = vmatpush3.bf16.msra.mxu0 %v11919_v59 }
 0x1fb   : > { %11064 = vmatpush3.bf16.msra.mxu1 %v11917_v58  ;;  %11083 = vmatprep.subr.bf16.mxu0 %v11920_v60 }
 0x1fc   : > { %11304 = vmatprep.subr.bf16.mxu1 %v13212_v38 }
 0x1fe   : > { %3209 = vmatmul.mubr.bf16.vlgmr.msra.gmra.mxu1 %v13506_v13  ;;  %11084 = vmatpush3.bf16.msra.mxu0 %v11921_v61  ;;  %v830_v13 = vsub.s32 3, %v13559_v37 }
 0x1ff   : > { %11305 = vmatpush3.bf16.msra.mxu1 %v11924_v62  ;;  %11085 = vmatprep.subr.bf16.mxu0 %v11922_v63 }
 0x200   : > { %11306 = vmatprep.mubr.msk.bf16.mxu1 %vm13213_vm1, %v13212_v38  ;;  %v831_v38 = vrot.slane %v13562_v47, %v830_v13 }
 0x202   : > { %11086 = vmatpush3.bf16.msra.mxu0 %v11923_v0  ;;  %v2832_v19 = vadd.f32 %v2831_v5, %v831_v38 }
 0x205   : > { %3250 = vmatmul.mubr.bf16.vlgmr.msra.gmra.mxu0 %v13537_v27  ;;  %v2826_v27 = vadd.f32 %v2825_v1, %v827_v6 }
 0x206   : > { %11307 = vmatmul.mubr.msk.bf16.vlgmr.msra.gmra.mxu1 %vm2615_vm0, %v13517_v23  ;;  %v2828_v23 = vadd.f32 %v2827_v2, %v831_v38 }
 0x225   : > { %v2868_v12 = vpop.f32.mrf.mxu0 }
 0x226   : > { %v2869_v21 = vadd.f32 %v2868_v12, %v2826_v27 }
 0x227   : > { %v2870_v7 = vpop.f32.mrf.mxu0 }
 0x228   : > { %v2871_v15 = vadd.f32 %v2870_v7, %v2828_v23 }
 0x229   : > { %v2872_v10 = vpop.f32.mrf.mxu0 }
 0x22a   : > { %v2873_v20 = vadd.f32 %v2872_v10, %v2830_v54 }
 0x22b   : > { %v2874_v17 = vpop.f32.mrf.mxu0 }
 0x22c   : > { %v2875_v25 = vadd.f32 %v2874_v17, %v2832_v19 }
 0x22e   : > { %v2911_v8 = vpop.f32.mrf.mxu1 }
 0x22f   : > { %v2912_v16 = vadd.f32 %v2911_v8, %v2869_v21 }
 0x230   : > { %v2913_v9 = vpop.f32.mrf.mxu1 }
 0x231   : > { %v2914_v22 = vadd.f32 %v2913_v9, %v2871_v15 }
 0x232   : > { %v2915_v11 = vpop.f32.mrf.mxu1 }
 0x233   : > { %v2916_v26 = vadd.f32 %v2915_v11, %v2873_v20 }
 0x234   : > { %v2917_v14 = vpop.f32.mrf.mxu1 }
 0x235   : > { %v2918_v30 = vadd.f32 %v2917_v14, %v2875_v25 }
 0x236   : > { %v2954_v18 = vpop.f32.mrf.mxu1 }
 0x237   : > { %v2955_v53 = vadd.f32 %v2954_v18, %v2912_v16 }
 0x238   : > { %v2956_v24 = vpop.f32.mrf.mxu1 }
 0x239   : > { %v2957_v28 = vadd.f32 %v2956_v24, %v2914_v22  ;;  %v3301_v31 = vmax.f32 %v2955_v53, 0.0  ;;  %v842_v24 = vsub.s32 6, %v13559_v37 }
 0x23a   : > { %v2958_v29 = vpop.f32.mrf.mxu1 }
 0x23b   : > { %v3302_v32 = vmax.f32 %v2957_v28, 0.0  ;;  %v2959_v33 = vadd.f32 %v2958_v29, %v2916_v26  ;;  %v843_v28 = vrot.slane %v13562_v47, %v842_v24 }
 0x23c   : > { %v2960_v34 = vpop.f32.mrf.mxu1 }
 0x23d   : > { %v11020_v35 = vpack.c.bf16 %v3302_v32, %v3301_v31  ;;  %v2961_v36 = vadd.f32 %v2960_v34, %v2918_v30  ;;  %v3308_v39 = vmax.f32 %v2959_v33, 0.0 }
 0x23f   : > { %3358 = vst [vmem:[#allocation2 + $0x8] sm:$0xff] %v11020_v35  ;;  %v3309_v40 = vmax.f32 %v2961_v36, 0.0 }
 0x241   : > { %v11024_v41 = vpack.c.bf16 %v3309_v40, %v3308_v39 }
 0x243   : > { %3363 = vst [vmem:[#allocation2 + $0x24] sm:$0xff] %v11024_v41 }
 0x265   : > { %v2997_v42 = vpop.f32.mrf.mxu0 }
 0x266   : > { %v2998_v57 = vadd.f32 %v2997_v42, %v835_v50 }
 0x267   : > { %v2999_v46 = vpop.f32.mrf.mxu0 }
 0x268   : > { %v3000_v59 = vadd.f32 %v2999_v46, %v839_v55 }
 0x269   : > { %v3001_v51 = vpop.f32.mrf.mxu0 }
 0x26a   : > { %v3002_v63 = vadd.f32 %v3001_v51, %v835_v50 }
 0x26b   : > { %v3003_v58 = vpop.f32.mrf.mxu0 }
 0x26c   : > { %v3004_v3 = vadd.f32 %v3003_v58, %v839_v55 }
 0x276   : > { %v3040_v44 = vpop.f32.mrf.mxu1 }
 0x277   : > { %v3041_v60 = vadd.f32 %v3040_v44, %v2998_v57 }
 0x278   : > { %v3042_v43 = vpop.f32.mrf.mxu1 }
 0x279   : > { %v3043_v0 = vadd.f32 %v3042_v43, %v3000_v59 }
 0x27a   : > { %v3044_v48 = vpop.f32.mrf.mxu1 }
 0x27b   : > { %v3045_v4 = vadd.f32 %v3044_v48, %v3002_v63 }
 0x27c   : > { %v3046_v52 = vpop.f32.mrf.mxu1 }
 0x27d   : > { %v3047_v7 = vadd.f32 %v3046_v52, %v3004_v3 }
 0x27e   : > { %v3126_v56 = vpop.f32.mrf.mxu1 }
 0x280   : > { %v3128_v61 = vpop.f32.mrf.mxu1 }
 0x282   : > { %v3130_v5 = vpop.f32.mrf.mxu1 }
 0x284   : > { %v3132_v21 = vpop.f32.mrf.mxu1 }
 0x29e   : > { %v11043_v15 = vpop.f32.mrf.mxu1 }
 0x2a0   : > { %v11044_v19 = vpop.f32.mrf.mxu1 }
 0x2a1   : > { %v11045_v29 = vadd.f32 %v11044_v19, %v11043_v15 }
 0x2a2   : > { %v11046_v20 = vpop.f32.mrf.mxu1 }
 0x2a3   : > { %v3170_v34 = vadd.f32 %v11045_v29, %v843_v28 }
 0x2a4   : > { %v11047_v22 = vpop.f32.mrf.mxu1 }
 0x2a5   : > { %v3083_v62 = vpop.f32.mrf.mxu0  ;;  %v11048_v35 = vadd.f32 %v11047_v22, %v11046_v20 }
 0x2a6   : > { %v3084_v1 = vadd.f32 %v3083_v62, %v3041_v60 }
 0x2a7   : > { %v3085_v2 = vpop.f32.mrf.mxu0  ;;  %v3173_v45 = vadd.f32 %v11048_v35, %v843_v28 }
 0x2a8   : > { %v3127_v12 = vadd.f32 %v3126_v56, %v3084_v1  ;;  %v3086_v13 = vadd.f32 %v3085_v2, %v3043_v0 }
 0x2a9   : > { %v3087_v6 = vpop.f32.mrf.mxu0 }
 0x2aa   : > { %v3129_v8 = vadd.f32 %v3128_v61, %v3086_v13  ;;  %v3088_v38 = vadd.f32 %v3087_v6, %v3045_v4  ;;  %v3303_v27 = vmax.f32 %v3127_v12, 0.0 }
 0x2ab   : > { %v3089_v9 = vpop.f32.mrf.mxu0 }
 0x2ac   : > { %v3304_v10 = vmax.f32 %v3129_v8, 0.0  ;;  %v3131_v11 = vadd.f32 %v3130_v5, %v3088_v38  ;;  %v3090_v23 = vadd.f32 %v3089_v9, %v3047_v7 }
 0x2ae   : > { %v11021_v14 = vpack.c.bf16 %v3304_v10, %v3303_v27  ;;  %v3133_v54 = vadd.f32 %v3132_v21, %v3090_v23  ;;  %v3310_v16 = vmax.f32 %v3131_v11, 0.0 }
 0x2b0   : > { %3359 = vst [vmem:[#allocation2 + $0x10] sm:$0xff] %v11021_v14  ;;  %v3311_v17 = vmax.f32 %v3133_v54, 0.0 }
 0x2b2   : > { %v11025_v18 = vpack.c.bf16 %v3311_v17, %v3310_v16 }
 0x2b4   : > { %3364 = vst [vmem:[#allocation2 + $0x2c] sm:$0xff] %v11025_v18 }
 0x2be   : > { %v11065_v53 = vpop.f32.mrf.mxu1 }
 0x2c0   : > { %v11066_v25 = vpop.f32.mrf.mxu1 }
 0x2c1   : > { %v11067_v31 = vadd.f32 %v11066_v25, %v11065_v53 }
 0x2c2   : > { %v11068_v26 = vpop.f32.mrf.mxu1 }
 0x2c3   : > { %v3211_v40 = vadd.f32 %v11067_v31, %v3170_v34 }
 0x2c4   : > { %v11069_v30 = vpop.f32.mrf.mxu1 }
 0x2c5   : > { %v11087_v32 = vpop.f32.mrf.mxu0  ;;  %v11070_v41 = vadd.f32 %v11069_v30, %v11068_v26 }
 0x2c6   : > { %v3292_v33 = vpop.f32.mrf.mxu1 }
 0x2c7   : > { %v11088_v36 = vpop.f32.mrf.mxu0  ;;  %v3214_v49 = vadd.f32 %v11070_v41, %v3173_v45 }
 0x2c8   : > { %v11308_v39 = vpop.f32.mrf.mxu1  ;;  %v11089_v44 = vadd.f32 %v11088_v36, %v11087_v32 }
 0x2c9   : > { %v11090_v42 = vpop.f32.mrf.mxu0 }
 0x2ca   : > { %v3295_v43 = vpop.f32.mrf.mxu1  ;;  %v3252_v37 = vadd.f32 %v11089_v44, %v3211_v40 }
 0x2cb   : > { %v11091_v46 = vpop.f32.mrf.mxu0 }
 0x2cc   : > { %v11309_v48 = vpop.f32.mrf.mxu1  ;;  %v3293_v47 = vadd.f32 %v3292_v33, %v3252_v37  ;;  %v11092_v50 = vadd.f32 %v11091_v46, %v11090_v42 }
 0x2ce   : > { %v3305_v51 = vmax.f32 %v3293_v47, 0.0  ;;  %v3255_v52 = vadd.f32 %v11092_v50, %v3214_v49 }
 0x2d0   : > { %v11022_v55 = vpack.c.bf16 %v3305_v51, %v3305_v51  ;;  %v3296_v56 = vadd.f32 %v3295_v43, %v3255_v52 }
 0x2d2   : > { %3361 = vst.msk [vmem:[#allocation2 + $0x18] sm:$0xf] %vm3360_vm2, %v11022_v55  ;;  %v3312_v57 = vmax.f32 %v3296_v56, 0.0 }
 0x2d4   : > { %v11026_v58 = vpack.c.bf16 %v3312_v57, %v3312_v57 }
 0x2d6   : > { %3365 = vst.msk [vmem:[#allocation2 + $0x34] sm:$0xf] %vm3360_vm2, %v11026_v58 }
 0x2d7 PF: > { %v11925_v59 = vld [vmem:[%s13458_s20 + $0x2dc] ss:$52 sps:$4 sm:$0xff]   ;;  %v11929_v61 = vld [vmem:[%s13458_s20 + $0x2d8] ss:$52 sps:$4 sm:$0xff]   ;;  %v11931_v63 = vld [vmem:[%s13458_s20 + $0x274] ss:$52 sps:$4 sm:$0xff]  }
 0x2d8   : > { %v11927_v60 = vld [vmem:[%s13458_s20 + $0x95c] ss:$52 sps:$4 sm:$0xff]   ;;  %7404 = vmatprep.subr.bf16.mxu0 %v11925_v59  ;;  %v11930_v62 = vld [vmem:[%s13458_s20 + $0x958] ss:$52 sps:$4 sm:$0xff]   ;;  %v11933_v0 = vld [vmem:[%s13458_s20 + $0x8f4] ss:$52 sps:$4 sm:$0xff]  }
 0x2d9   : > { %7447 = vmatprep.subr.bf16.mxu1 %v11927_v60  ;;  %7405 = vmatpush1.bf16.msra.mxu0 %v11929_v61  ;;  %v11935_v1 = vld [vmem:[%s13458_s20 + $0x270] ss:$52 sps:$4 sm:$0xff]   ;;  %v11937_v3 = vld [vmem:[%s13458_s20 + $0x20c] ss:$52 sps:$4 sm:$0xff]   ;;  %v11941_v12 = vld [vmem:[%s13458_s20 + $0x208] ss:$52 sps:$4 sm:$0xff]  }
 0x2da   : > { %7448 = vmatpush1.bf16.msra.mxu1 %v11930_v62  ;;  %7406 = vmatprep.subr.bf16.mxu0 %v11931_v63  ;;  %v11936_v2 = vld [vmem:[%s13458_s20 + $0x8f0] ss:$52 sps:$4 sm:$0xff]   ;;  %v11939_v4 = vld [vmem:[%s13458_s20 + $0x88c] ss:$52 sps:$4 sm:$0xff]   ;;  %v11942_v13 = vld [vmem:[%s13458_s20 + $0x888] ss:$52 sps:$4 sm:$0xff]  }
 0x2db   : > { %7449 = vmatprep.subr.bf16.mxu1 %v11933_v0  ;;  %v11943_v5 = vld [vmem:[%s13458_s20 + $0x1a4] ss:$52 sps:$4 sm:$0xff]   ;;  %v11947_v7 = vld [vmem:[%s13458_s20 + $0x1a0] ss:$52 sps:$4 sm:$0xff]   ;;  %v11949_v38 = vld [vmem:[%s13458_s20 + $0x13c] ss:$52 sps:$4 sm:$0xff]  }
 0x2dc   : > { %v11945_v6 = vld [vmem:[%s13458_s20 + $0x824] ss:$52 sps:$4 sm:$0xff]   ;;  %v11948_v8 = vld [vmem:[%s13458_s20 + $0x820] ss:$52 sps:$4 sm:$0xff]   ;;  %v11951_v9 = vld [vmem:[%s13458_s20 + $0x7bc] ss:$52 sps:$4 sm:$0xff]  }
 0x2dd   : > { %7407 = vmatpush1.bf16.msra.mxu0 %v11935_v1  ;;  %v11953_v27 = vld [vmem:[%s13458_s20 + $0x138] ss:$52 sps:$4 sm:$0xff]   ;;  %v11955_v11 = vld [vmem:[%s13458_s20 + $0xd4] ss:$52 sps:$4 sm:$0xff]   ;;  %v11959_v21 = vld [vmem:[%s13458_s20 + $0xd0] ss:$52 sps:$4 sm:$0xff]  }
 0x2de   : > { %7450 = vmatpush1.bf16.msra.mxu1 %v11936_v2  ;;  %7408 = vmatprep.subr.bf16.mxu0 %v11937_v3  ;;  %v11954_v10 = vld [vmem:[%s13458_s20 + $0x7b8] ss:$52 sps:$4 sm:$0xff]   ;;  %v11957_v23 = vld [vmem:[%s13458_s20 + $0x754] ss:$52 sps:$4 sm:$0xff]   ;;  %v11960_v14 = vld [vmem:[%s13458_s20 + $0x750] ss:$52 sps:$4 sm:$0xff]  }
 0x2df   : > { %7451 = vmatprep.subr.bf16.mxu1 %v11939_v4  ;;  %v11961_v54 = vld [vmem:[%s13458_s20 + $0x6c] ss:$52 sps:$4 sm:$0xff]   ;;  %v11965_v16 = vld [vmem:[%s13458_s20 + $0x68] ss:$52 sps:$4 sm:$0xff]   ;;  %v11967_v18 = vld [vmem:[%s13458_s20 + $0x4] ss:$52 sps:$4 sm:$0xff]  }
 0x2e0   : > { %v11963_v15 = vld [vmem:[%s13458_s20 + $0x6ec] ss:$52 sps:$4 sm:$0xff]   ;;  %v11966_v17 = vld [vmem:[%s13458_s20 + $0x6e8] ss:$52 sps:$4 sm:$0xff]   ;;  %v11969_v19 = vld [vmem:[%s13458_s20 + $0x684] ss:$52 sps:$4 sm:$0xff]  }
 0x2e1   : > { %7409 = vmatpush1.bf16.msra.mxu0 %v11941_v12  ;;  %v11971_v20 = vld [vmem:[%s13458_s20] ss:$52 sps:$4 sm:$0xff]   ;;  %v11973_v53 = vld [vmem:[%s13458_s20 + $0x61c] ss:$52 sps:$4 sm:$0xff]   ;;  %v11977_v25 = vld [vmem:[%s13458_s20 + $0x618] ss:$52 sps:$4 sm:$0xff]  }
 0x2e2   : > { %7452 = vmatpush1.bf16.msra.mxu1 %v11942_v13  ;;  %7410 = vmatprep.subr.bf16.mxu0 %v11943_v5  ;;  %v11972_v22 = vld [vmem:[%s13458_s20 + $0x680] ss:$52 sps:$4 sm:$0xff]   ;;  %v11975_v24 = vld [vmem:[%s13458_s20 + $0xc9c] ss:$52 sps:$4 sm:$0xff]   ;;  %v11978_v26 = vld [vmem:[%s13458_s20 + $0xc98] ss:$52 sps:$4 sm:$0xff]  }
 0x2e3   : > { %7453 = vmatprep.subr.bf16.mxu1 %v11945_v6  ;;  %v11979_v28 = vld [vmem:[%s13458_s20 + $0x5b4] ss:$52 sps:$4 sm:$0xff]   ;;  %v11983_v30 = vld [vmem:[%s13458_s20 + $0x5b0] ss:$52 sps:$4 sm:$0xff]   ;;  %v11985_v32 = vld [vmem:[%s13458_s20 + $0x54c] ss:$52 sps:$4 sm:$0xff]  }
 0x2e4   : > { %v11981_v29 = vld [vmem:[%s13458_s20 + $0xc34] ss:$52 sps:$4 sm:$0xff]   ;;  %v11984_v31 = vld [vmem:[%s13458_s20 + $0xc30] ss:$52 sps:$4 sm:$0xff]   ;;  %v11987_v33 = vld [vmem:[%s13458_s20 + $0xbcc] ss:$52 sps:$4 sm:$0xff]  }
 0x2e5   : > { %7411 = vmatpush1.bf16.msra.mxu0 %v11947_v7  ;;  %v11989_v34 = vld [vmem:[%s13458_s20 + $0x548] ss:$52 sps:$4 sm:$0xff]   ;;  %v11991_v36 = vld [vmem:[%s13458_s20 + $0x4e4] ss:$52 sps:$4 sm:$0xff]   ;;  %v11995_v40 = vld [vmem:[%s13458_s20 + $0x4e0] ss:$52 sps:$4 sm:$0xff]  }
 0x2e6   : > { %7454 = vmatpush1.bf16.msra.mxu1 %v11948_v8  ;;  %7412 = vmatprep.subr.bf16.mxu0 %v11949_v38  ;;  %v11990_v35 = vld [vmem:[%s13458_s20 + $0xbc8] ss:$52 sps:$4 sm:$0xff]   ;;  %v11993_v39 = vld [vmem:[%s13458_s20 + $0xb64] ss:$52 sps:$4 sm:$0xff]   ;;  %v11996_v41 = vld [vmem:[%s13458_s20 + $0xb60] ss:$52 sps:$4 sm:$0xff]  }
 0x2e7   : > { %7455 = vmatprep.subr.bf16.mxu1 %v11951_v9  ;;  %v13635_v44 = vld [vmem:[#allocation2 + $0x4] ss:$28 sps:$4 sm:$0xff]   ;;  %v13638_v43 = vld [vmem:[#allocation2 + $0xc] ss:$28 sps:$4 sm:$0xff]   ;;  %v13214_v13 = vmov 0   ;;  %vm7400_vm3 = vcmask 130048  }
 0x2e8   : > { %v11997_v42 = vld [vmem:[%s13458_s20 + $0x47c] ss:$52 sps:$4 sm:$0xff]   ;;  %7436 = vmatprep.mubr.bf16.mxu0 %v13635_v44  ;;  %7479 = vmatprep.mubr.bf16.mxu1 %v13638_v43  ;;  %v12001_v37 = vld [vmem:[%s13458_s20 + $0x478] ss:$52 sps:$4 sm:$0xff]   ;;  %v12003_v48 = vld [vmem:[%s13458_s20 + $0x414] ss:$52 sps:$4 sm:$0xff]  }
 0x2e9   : > { %7413 = vmatpush1.bf16.msra.mxu0 %v11953_v27  ;;  %v11999_v45 = vld [vmem:[%s13458_s20 + $0xafc] ss:$52 sps:$4 sm:$0xff]   ;;  %v12002_v46 = vld [vmem:[%s13458_s20 + $0xaf8] ss:$52 sps:$4 sm:$0xff]   ;;  %v12005_v49 = vld [vmem:[%s13458_s20 + $0xa94] ss:$52 sps:$4 sm:$0xff]  }
 0x2ea   : > { %7456 = vmatpush1.bf16.msra.mxu1 %v11954_v10  ;;  %7414 = vmatprep.subr.bf16.mxu0 %v11955_v11  ;;  %v12007_v47 = vld [vmem:[%s13458_s20 + $0x410] ss:$52 sps:$4 sm:$0xff]   ;;  %v12009_v51 = vld [vmem:[%s13458_s20 + $0x3ac] ss:$52 sps:$4 sm:$0xff]   ;;  %v12013_v55 = vld [vmem:[%s13458_s20 + $0x3a8] ss:$52 sps:$4 sm:$0xff]  }
 0x2eb   : > { %7457 = vmatprep.subr.bf16.mxu1 %v11957_v23  ;;  %v12008_v50 = vld [vmem:[%s13458_s20 + $0xa90] ss:$52 sps:$4 sm:$0xff]   ;;  %v12011_v52 = vld [vmem:[%s13458_s20 + $0xa2c] ss:$52 sps:$4 sm:$0xff]   ;;  %v12014_v56 = vld [vmem:[%s13458_s20 + $0xa28] ss:$52 sps:$4 sm:$0xff]  }
 0x2ec   : > { %v12015_v57 = vld [vmem:[%s13458_s20 + $0x344] ss:$52 sps:$4 sm:$0xff]   ;;  %v12019_v59 = vld [vmem:[%s13458_s20 + $0x340] ss:$52 sps:$4 sm:$0xff]   ;;  %v12029_v61 = vld [vmem:[%s13458_s20 + $0xfdc] ss:$52 sps:$4 sm:$0xff]  }
 0x2ed   : > { %7415 = vmatpush1.bf16.msra.mxu0 %v11959_v21  ;;  %v12017_v58 = vld [vmem:[%s13458_s20 + $0x9c4] ss:$52 sps:$4 sm:$0xff]   ;;  %v12020_v60 = vld [vmem:[%s13458_s20 + $0x9c0] ss:$52 sps:$4 sm:$0xff]   ;;  %v12039_v8 = vld [vmem:[%s13458_s20 + $0xf08] ss:$52 sps:$4 sm:$0xff]  }
 0x2ee   : > { %7458 = vmatpush1.bf16.msra.mxu1 %v11960_v14  ;;  %7416 = vmatprep.subr.bf16.mxu0 %v11961_v54  ;;  %v12032_v62 = vld [vmem:[%s13458_s20 + $0x1384] ss:$52 sps:$4 sm:$0xff]   ;;  %v12030_v2 = vld [vmem:[%s13458_s20 + $0x1380] ss:$52 sps:$4 sm:$0xff]   ;;  %v12045_v38 = vld [vmem:[%s13458_s20 + $0x27c] ss:$52 sps:$4 sm:$0xff]  }
 0x2ef   : > { %7459 = vmatprep.subr.bf16.mxu1 %v11963_v15  ;;  %v13659_v63 = vld [vmem:[#allocation2] ss:$28 sps:$4 sm:$0xff]   ;;  %v13661_v0 = vld [vmem:[#allocation2 + $0x8] ss:$28 sps:$4 sm:$0xff]   ;;  %v13673_v7 = vld [vmem:[#allocation2 + $0x18] ss:$28 sps:$4 sm:$0xff]  }
 0x2f0   : > { %v12027_v1 = vld [vmem:[%s13458_s20 + $0xfd8] ss:$52 sps:$4 sm:$0xff]   ;;  %v12035_v3 = vld [vmem:[%s13458_s20 + $0xf74] ss:$52 sps:$4 sm:$0xff]   ;;  %v12033_v12 = vld [vmem:[%s13458_s20 + $0xf70] ss:$52 sps:$4 sm:$0xff]  }
 0x2f1   : > { %7417 = vmatpush1.bf16.msra.mxu0 %v11965_v16  ;;  %v12038_v4 = vld [vmem:[%s13458_s20 + $0x2e4] ss:$52 sps:$4 sm:$0xff]   ;;  %v12041_v5 = vld [vmem:[%s13458_s20 + $0xf0c] ss:$52 sps:$4 sm:$0xff]   ;;  %v12051_v11 = vld [vmem:[%s13458_s20 + $0x214] ss:$52 sps:$4 sm:$0xff]  }
 0x2f2   : > { %7460 = vmatpush1.bf16.msra.mxu1 %v11966_v17  ;;  %7418 = vmatprep.subr.bf16.mxu0 %v11967_v18  ;;  %v12036_v6 = vld [vmem:[%s13458_s20 + $0x2e0] ss:$52 sps:$4 sm:$0xff]   ;;  %v12048_v9 = vld [vmem:[%s13458_s20 + $0xea4] ss:$52 sps:$4 sm:$0xff]   ;;  %v12054_v23 = vld [vmem:[%s13458_s20 + $0xe3c] ss:$52 sps:$4 sm:$0xff]  }
 0x2f3   : > { %7461 = vmatprep.subr.bf16.mxu1 %v11969_v19  ;;  %v12043_v27 = vld [vmem:[%s13458_s20 + $0x278] ss:$52 sps:$4 sm:$0xff]   ;;  %v12046_v10 = vld [vmem:[%s13458_s20 + $0xea0] ss:$52 sps:$4 sm:$0xff]   ;;  %v12049_v21 = vld [vmem:[%s13458_s20 + $0x210] ss:$52 sps:$4 sm:$0xff]  }
 0x2f4   : > { %v12052_v14 = vld [vmem:[%s13458_s20 + $0xe38] ss:$52 sps:$4 sm:$0xff]   ;;  %v12060_v15 = vld [vmem:[%s13458_s20 + $0xdd4] ss:$52 sps:$4 sm:$0xff]   ;;  %v12058_v17 = vld [vmem:[%s13458_s20 + $0xdd0] ss:$52 sps:$4 sm:$0xff]  }
 0x2f5   : > { %7419 = vmatpush1.bf16.msra.mxu0 %v11971_v20  ;;  %v12057_v54 = vld [vmem:[%s13458_s20 + $0x1ac] ss:$52 sps:$4 sm:$0xff]   ;;  %v12055_v16 = vld [vmem:[%s13458_s20 + $0x1a8] ss:$52 sps:$4 sm:$0xff]   ;;  %v12063_v18 = vld [vmem:[%s13458_s20 + $0x144] ss:$52 sps:$4 sm:$0xff]  }
 0x2f6   : > { %7462 = vmatpush1.bf16.msra.mxu1 %v11972_v22  ;;  %7420 = vmatprep.subr.bf16.mxu0 %v11973_v53  ;;  %v12066_v19 = vld [vmem:[%s13458_s20 + $0xd6c] ss:$52 sps:$4 sm:$0xff]   ;;  %v12064_v22 = vld [vmem:[%s13458_s20 + $0xd68] ss:$52 sps:$4 sm:$0xff]   ;;  %vm13216_vm4 = vmmov 0   ;;  %p11012_p3 = scmp.ne.s32.totalorder %s13276_s28, 1 }
 0x2f7   : > { %7463 = vmatprep.subr.bf16.mxu1 %v11975_v24  ;;  %v12061_v20 = vld [vmem:[%s13458_s20 + $0x140] ss:$52 sps:$4 sm:$0xff]   ;;  %v12069_v24 = vld [vmem:[%s13458_s20 + $0xdc] ss:$52 sps:$4 sm:$0xff]  }
 0x2f8   : > { %v13695_v53 = vld [vmem:[#allocation2 + $0x14] ss:$28 sps:$4 sm:$0xff]  }
 0x2f9   : > { %7421 = vmatpush2.bf16.msra.mxu0 %v11977_v25  ;;  %v12072_v25 = vld [vmem:[%s13458_s20 + $0xd04] ss:$52 sps:$4 sm:$0xff]  }
 0x2fa   : > { %7464 = vmatpush2.bf16.msra.mxu1 %v11978_v26  ;;  %7422 = vmatprep.subr.bf16.mxu0 %v11979_v28  ;;  %v12067_v26 = vld [vmem:[%s13458_s20 + $0xd8] ss:$52 sps:$4 sm:$0xff]   ;;  %v12070_v28 = vld [vmem:[%s13458_s20 + $0xd00] ss:$52 sps:$4 sm:$0xff]  }
 0x2fb   : > { %7465 = vmatprep.subr.bf16.mxu1 %v11981_v29  ;;  %v12075_v29 = vld [vmem:[%s13458_s20 + $0x74] ss:$52 sps:$4 sm:$0xff]  }
 0x2fd   : > { %7423 = vmatpush2.bf16.msra.mxu0 %v11983_v30  ;;  %v12078_v30 = vld [vmem:[%s13458_s20 + $0x131c] ss:$52 sps:$4 sm:$0xff]  }
 0x2fe   : > { %7466 = vmatpush2.bf16.msra.mxu1 %v11984_v31  ;;  %7424 = vmatprep.subr.bf16.mxu0 %v11985_v32  ;;  %v12073_v31 = vld [vmem:[%s13458_s20 + $0x70] ss:$52 sps:$4 sm:$0xff]   ;;  %v12076_v32 = vld [vmem:[%s13458_s20 + $0x1318] ss:$52 sps:$4 sm:$0xff]  }
 0x2ff   : > { %7467 = vmatprep.subr.bf16.mxu1 %v11987_v33  ;;  %v12081_v33 = vld [vmem:[%s13458_s20 + $0xc] ss:$52 sps:$4 sm:$0xff]  }
 0x301   : > { %7425 = vmatpush2.bf16.msra.mxu0 %v11989_v34  ;;  %v12084_v34 = vld [vmem:[%s13458_s20 + $0x12b4] ss:$52 sps:$4 sm:$0xff]  }
 0x302   : > { %7468 = vmatpush2.bf16.msra.mxu1 %v11990_v35  ;;  %7426 = vmatprep.subr.bf16.mxu0 %v11991_v36  ;;  %v12079_v35 = vld [vmem:[%s13458_s20 + $0x8] ss:$52 sps:$4 sm:$0xff]   ;;  %v12082_v36 = vld [vmem:[%s13458_s20 + $0x12b0] ss:$52 sps:$4 sm:$0xff]  }
 0x303   : > { %7469 = vmatprep.subr.bf16.mxu1 %v11993_v39  ;;  %v12087_v39 = vld [vmem:[%s13458_s20 + $0x624] ss:$52 sps:$4 sm:$0xff]  }
 0x305   : > { %7427 = vmatpush2.bf16.msra.mxu0 %v11995_v40  ;;  %v12090_v40 = vld [vmem:[%s13458_s20 + $0x124c] ss:$52 sps:$4 sm:$0xff]  }
 0x306   : > { %7470 = vmatpush2.bf16.msra.mxu1 %v11996_v41  ;;  %7428 = vmatprep.subr.bf16.mxu0 %v11997_v42  ;;  %v12085_v41 = vld [vmem:[%s13458_s20 + $0x620] ss:$52 sps:$4 sm:$0xff]   ;;  %v12093_v42 = vld [vmem:[%s13458_s20 + $0x5bc] ss:$52 sps:$4 sm:$0xff]  }
 0x307   : > { %7471 = vmatprep.subr.bf16.mxu1 %v11999_v45  ;;  %v12096_v45 = vld [vmem:[%s13458_s20 + $0x11e4] ss:$52 sps:$4 sm:$0xff]  }
 0x309   : > { %7429 = vmatpush2.bf16.msra.mxu0 %v12001_v37  ;;  %v12091_v37 = vld [vmem:[%s13458_s20 + $0x5b8] ss:$52 sps:$4 sm:$0xff]  }
 0x30a   : > { %7472 = vmatpush2.bf16.msra.mxu1 %v12002_v46  ;;  %7430 = vmatprep.subr.bf16.mxu0 %v12003_v48  ;;  %v12094_v46 = vld [vmem:[%s13458_s20 + $0x11e0] ss:$52 sps:$4 sm:$0xff]  }
 0x30b   : > { %7473 = vmatprep.subr.bf16.mxu1 %v12005_v49  ;;  %v12099_v48 = vld [vmem:[%s13458_s20 + $0x554] ss:$52 sps:$4 sm:$0xff]   ;;  %v12102_v49 = vld [vmem:[%s13458_s20 + $0x117c] ss:$52 sps:$4 sm:$0xff]  }
 0x30d   : > { %7431 = vmatpush2.bf16.msra.mxu0 %v12007_v47  ;;  %v12097_v47 = vld [vmem:[%s13458_s20 + $0x550] ss:$52 sps:$4 sm:$0xff]  }
 0x30e   : > { %7474 = vmatpush2.bf16.msra.mxu1 %v12008_v50  ;;  %7432 = vmatprep.subr.bf16.mxu0 %v12009_v51  ;;  %v12100_v50 = vld [vmem:[%s13458_s20 + $0x1178] ss:$52 sps:$4 sm:$0xff]  }
 0x30f   : > { %7475 = vmatprep.subr.bf16.mxu1 %v12011_v52  ;;  %v12105_v51 = vld [vmem:[%s13458_s20 + $0x4ec] ss:$52 sps:$4 sm:$0xff]   ;;  %v12108_v52 = vld [vmem:[%s13458_s20 + $0x1114] ss:$52 sps:$4 sm:$0xff]  }
 0x311   : > { %7433 = vmatpush2.bf16.msra.mxu0 %v12013_v55  ;;  %v12103_v55 = vld [vmem:[%s13458_s20 + $0x4e8] ss:$52 sps:$4 sm:$0xff]  }
 0x312   : > { %7476 = vmatpush2.bf16.msra.mxu1 %v12014_v56  ;;  %7434 = vmatprep.subr.bf16.mxu0 %v12015_v57  ;;  %v12106_v56 = vld [vmem:[%s13458_s20 + $0x1110] ss:$52 sps:$4 sm:$0xff]  }
 0x313   : > { %7477 = vmatprep.subr.bf16.mxu1 %v12017_v58  ;;  %v12111_v57 = vld [vmem:[%s13458_s20 + $0x484] ss:$52 sps:$4 sm:$0xff]   ;;  %v12114_v58 = vld [vmem:[%s13458_s20 + $0x10ac] ss:$52 sps:$4 sm:$0xff]  }
 0x315   : > { %7435 = vmatpush2.bf16.msra.mxu0 %v12019_v59  ;;  %v12109_v59 = vld [vmem:[%s13458_s20 + $0x480] ss:$52 sps:$4 sm:$0xff]  }
 0x316   : > { %7478 = vmatpush2.bf16.msra.mxu1 %v12020_v60  ;;  %7490 = vmatprep.subr.bf16.mxu0 %v12029_v61  ;;  %v12112_v60 = vld [vmem:[%s13458_s20 + $0x10a8] ss:$52 sps:$4 sm:$0xff]  }
 0x317   : > { %7547 = vmatprep.subr.bf16.mxu1 %v12032_v62  ;;  %v12117_v61 = vld [vmem:[%s13458_s20 + $0x41c] ss:$52 sps:$4 sm:$0xff]   ;;  %v12120_v62 = vld [vmem:[%s13458_s20 + $0x1044] ss:$52 sps:$4 sm:$0xff]  }
 0x318   : > { %7437 = vmatmul.mubr.bf16.vlgmr.msra.gmra.mxu0 %v13659_v63 }
 0x319   : > { %7480 = vmatmul.mubr.bf16.vlgmr.msra.gmra.mxu1 %v13661_v0  ;;  %7491 = vmatpush1.bf16.msra.mxu0 %v12027_v1  ;;  %v12115_v1 = vld [vmem:[%s13458_s20 + $0x418] ss:$52 sps:$4 sm:$0xff]  }
 0x31a   : > { %7548 = vmatpush1.bf16.msra.mxu1 %v12030_v2  ;;  %7492 = vmatprep.subr.bf16.mxu0 %v12035_v3  ;;  %v12118_v2 = vld [vmem:[%s13458_s20 + $0x1040] ss:$52 sps:$4 sm:$0xff]  }
 0x31b   : > { %7565 = vmatprep.mubr.bf16.mxu1 %v13214_v13  ;;  %7576 = vmatprep.subr.bf16.mxu1 %v12038_v4  ;;  %v12125_v3 = vld [vmem:[%s13458_s20 + $0x3b4] ss:$52 sps:$4 sm:$0xff]   ;;  %v12129_v4 = vld [vmem:[%s13458_s20 + $0x964] ss:$52 sps:$4 sm:$0xff]  }
 0x31c   : > { %7522 = vmatprep.mubr.bf16.mxu0 %v13695_v53 }
 0x31d   : > { %7493 = vmatpush1.bf16.msra.mxu0 %v12033_v12  ;;  %v12123_v12 = vld [vmem:[%s13458_s20 + $0x3b0] ss:$52 sps:$4 sm:$0xff]  }
 0x31e   : > { %7494 = vmatprep.subr.bf16.mxu0 %v12041_v5  ;;  %v13737_v5 = vld [vmem:[#allocation2 + $0x10] ss:$28 sps:$4 sm:$0xff]  }
 0x321   : > { %10901 = vmatmul.mubr.msk.bf16.vlgmr.msra.gmra.mxu1 %vm7400_vm3, %v13673_v7  ;;  %7495 = vmatpush1.bf16.msra.mxu0 %v12039_v8  ;;  %v12132_v8 = vld [vmem:[%s13458_s20 + $0x34c] ss:$52 sps:$4 sm:$0xff]  }
 0x322   : > { %7577 = vmatpush1.bf16.msra.mxu1 %v12036_v6  ;;  %7496 = vmatprep.subr.bf16.mxu0 %v12048_v9  ;;  %v12127_v6 = vld [vmem:[%s13458_s20 + $0x960] ss:$52 sps:$4 sm:$0xff]   ;;  %v12130_v9 = vld [vmem:[%s13458_s20 + $0x348] ss:$52 sps:$4 sm:$0xff]  }
 0x323   : > { %7578 = vmatprep.subr.bf16.mxu1 %v12045_v38  ;;  %7608 = vmatprep.mubr.bf16.mxu1 %v13635_v44  ;;  %v12088_v44 = vld [vmem:[%s13458_s20 + $0x1248] ss:$52 sps:$4 sm:$0xff]  }
 0x324   : > { %v12135_v38 = vld [vmem:[%s13458_s20 + $0x8fc] ss:$52 sps:$4 sm:$0xff]  }
 0x325   : > { %7497 = vmatpush1.bf16.msra.mxu0 %v12046_v10  ;;  %v12138_v10 = vld [vmem:[%s13458_s20 + $0xfe4] ss:$52 sps:$4 sm:$0xff]  }
 0x326   : > { %7579 = vmatpush1.bf16.msra.mxu1 %v12043_v27  ;;  %7498 = vmatprep.subr.bf16.mxu0 %v12054_v23  ;;  %v12133_v27 = vld [vmem:[%s13458_s20 + $0x8f8] ss:$52 sps:$4 sm:$0xff]   ;;  %v12136_v23 = vld [vmem:[%s13458_s20 + $0xfe0] ss:$52 sps:$4 sm:$0xff]  }
 0x327   : > { %7580 = vmatprep.subr.bf16.mxu1 %v12051_v11  ;;  %v12141_v11 = vld [vmem:[%s13458_s20 + $0x894] ss:$52 sps:$4 sm:$0xff]  }
 0x329   : > { %7499 = vmatpush1.bf16.msra.mxu0 %v12052_v14  ;;  %v12144_v14 = vld [vmem:[%s13458_s20 + $0xf7c] ss:$52 sps:$4 sm:$0xff]  }
 0x32a   : > { %7581 = vmatpush1.bf16.msra.mxu1 %v12049_v21  ;;  %7500 = vmatprep.subr.bf16.mxu0 %v12060_v15  ;;  %v12139_v21 = vld [vmem:[%s13458_s20 + $0x890] ss:$52 sps:$4 sm:$0xff]   ;;  %v12142_v15 = vld [vmem:[%s13458_s20 + $0xf78] ss:$52 sps:$4 sm:$0xff]  }
 0x32b   : > { %7582 = vmatprep.subr.bf16.mxu1 %v12057_v54  ;;  %v12147_v54 = vld [vmem:[%s13458_s20 + $0x82c] ss:$52 sps:$4 sm:$0xff]  }
 0x32d   : > { %7501 = vmatpush1.bf16.msra.mxu0 %v12058_v17  ;;  %v12153_v17 = vld [vmem:[%s13458_s20 + $0x7c4] ss:$52 sps:$4 sm:$0xff]  }
 0x32e   : > { %7583 = vmatpush1.bf16.msra.mxu1 %v12055_v16  ;;  %7502 = vmatprep.subr.bf16.mxu0 %v12066_v19  ;;  %v12150_v16 = vld [vmem:[%s13458_s20 + $0xf14] ss:$52 sps:$4 sm:$0xff]   ;;  %v12156_v19 = vld [vmem:[%s13458_s20 + $0xeac] ss:$52 sps:$4 sm:$0xff]  }
 0x32f   : > { %7584 = vmatprep.subr.bf16.mxu1 %v12063_v18  ;;  %v12148_v18 = vld [vmem:[%s13458_s20 + $0xf10] ss:$52 sps:$4 sm:$0xff]  }
 0x331   : > { %7503 = vmatpush1.bf16.msra.mxu0 %v12064_v22  ;;  %v12154_v22 = vld [vmem:[%s13458_s20 + $0xea8] ss:$52 sps:$4 sm:$0xff]  }
 0x332   : > { %7585 = vmatpush1.bf16.msra.mxu1 %v12061_v20  ;;  %7504 = vmatprep.subr.bf16.mxu0 %v12072_v25  ;;  %v12159_v20 = vld [vmem:[%s13458_s20 + $0x75c] ss:$52 sps:$4 sm:$0xff]   ;;  %v12165_v25 = vld [vmem:[%s13458_s20 + $0x6f4] ss:$52 sps:$4 sm:$0xff]  }
 0x333   : > { %7586 = vmatprep.subr.bf16.mxu1 %v12069_v24  ;;  %v12157_v24 = vld [vmem:[%s13458_s20 + $0x758] ss:$52 sps:$4 sm:$0xff]  }
 0x335   : > { %7505 = vmatpush1.bf16.msra.mxu0 %v12070_v28  ;;  %v12163_v28 = vld [vmem:[%s13458_s20 + $0x6f0] ss:$52 sps:$4 sm:$0xff]  }
 0x336   : > { %7587 = vmatpush1.bf16.msra.mxu1 %v12067_v26  ;;  %7506 = vmatprep.subr.bf16.mxu0 %v12078_v30  ;;  %v12160_v26 = vld [vmem:[%s13458_s20 + $0xe40] ss:$52 sps:$4 sm:$0xff]  }
 0x337   : > { %7588 = vmatprep.subr.bf16.mxu1 %v12075_v29  ;;  %v12168_v29 = vld [vmem:[%s13458_s20 + $0xddc] ss:$52 sps:$4 sm:$0xff]   ;;  %v12171_v30 = vld [vmem:[%s13458_s20 + $0x68c] ss:$52 sps:$4 sm:$0xff]  }
 0x339   : > { %7507 = vmatpush2.bf16.msra.mxu0 %v12076_v32  ;;  %v12169_v32 = vld [vmem:[%s13458_s20 + $0x688] ss:$52 sps:$4 sm:$0xff]  }
 0x33a   : > { %7589 = vmatpush1.bf16.msra.mxu1 %v12073_v31  ;;  %7508 = vmatprep.subr.bf16.mxu0 %v12084_v34  ;;  %v12166_v31 = vld [vmem:[%s13458_s20 + $0xdd8] ss:$52 sps:$4 sm:$0xff]  }
 0x33b   : > { %7590 = vmatprep.subr.bf16.mxu1 %v12081_v33  ;;  %v12174_v33 = vld [vmem:[%s13458_s20 + $0xd74] ss:$52 sps:$4 sm:$0xff]   ;;  %v12177_v34 = vld [vmem:[%s13458_s20 + $0xca4] ss:$52 sps:$4 sm:$0xff]  }
 0x33d   : > { %7509 = vmatpush2.bf16.msra.mxu0 %v12082_v36  ;;  %v12175_v36 = vld [vmem:[%s13458_s20 + $0xca0] ss:$52 sps:$4 sm:$0xff]  }
 0x33e   : > { %7591 = vmatpush1.bf16.msra.mxu1 %v12079_v35  ;;  %7510 = vmatprep.subr.bf16.mxu0 %v12090_v40  ;;  %v12172_v35 = vld [vmem:[%s13458_s20 + $0xd70] ss:$52 sps:$4 sm:$0xff]  }
 0x33f   : > { %7592 = vmatprep.subr.bf16.mxu1 %v12087_v39  ;;  %v12180_v39 = vld [vmem:[%s13458_s20 + $0xd0c] ss:$52 sps:$4 sm:$0xff]   ;;  %v12183_v40 = vld [vmem:[%s13458_s20 + $0xc3c] ss:$52 sps:$4 sm:$0xff]  }
 0x341   : > { %7511 = vmatpush2.bf16.msra.mxu0 %v12088_v44  ;;  %v12181_v44 = vld [vmem:[%s13458_s20 + $0xc38] ss:$52 sps:$4 sm:$0xff]  }
 0x342   : > { %7593 = vmatpush2.bf16.msra.mxu1 %v12085_v41  ;;  %7512 = vmatprep.subr.bf16.mxu0 %v12096_v45  ;;  %v12178_v41 = vld [vmem:[%s13458_s20 + $0xd08] ss:$52 sps:$4 sm:$0xff]  }
 0x343   : > { %7594 = vmatprep.subr.bf16.mxu1 %v12093_v42  ;;  %v12186_v42 = vld [vmem:[%s13458_s20 + $0x1324] ss:$52 sps:$4 sm:$0xff]   ;;  %v12189_v45 = vld [vmem:[%s13458_s20 + $0xbd4] ss:$52 sps:$4 sm:$0xff]  }
 0x345   : > { %7513 = vmatpush2.bf16.msra.mxu0 %v12094_v46  ;;  %v12187_v46 = vld [vmem:[%s13458_s20 + $0xbd0] ss:$52 sps:$4 sm:$0xff]  }
 0x346   : > { %7595 = vmatpush2.bf16.msra.mxu1 %v12091_v37  ;;  %7514 = vmatprep.subr.bf16.mxu0 %v12102_v49  ;;  %v12184_v37 = vld [vmem:[%s13458_s20 + $0x1320] ss:$52 sps:$4 sm:$0xff]  }
 0x347   : > { %7596 = vmatprep.subr.bf16.mxu1 %v12099_v48  ;;  %v12192_v48 = vld [vmem:[%s13458_s20 + $0x12bc] ss:$52 sps:$4 sm:$0xff]   ;;  %v12195_v49 = vld [vmem:[%s13458_s20 + $0xb6c] ss:$52 sps:$4 sm:$0xff]  }
 0x349   : > { %7515 = vmatpush2.bf16.msra.mxu0 %v12100_v50  ;;  %v12193_v50 = vld [vmem:[%s13458_s20 + $0xb68] ss:$52 sps:$4 sm:$0xff]  }
 0x34a   : > { %7597 = vmatpush2.bf16.msra.mxu1 %v12097_v47  ;;  %7516 = vmatprep.subr.bf16.mxu0 %v12108_v52  ;;  %v12190_v47 = vld [vmem:[%s13458_s20 + $0x12b8] ss:$52 sps:$4 sm:$0xff]  }
 0x34b   : > { %7598 = vmatprep.subr.bf16.mxu1 %v12105_v51  ;;  %v12198_v51 = vld [vmem:[%s13458_s20 + $0x1254] ss:$52 sps:$4 sm:$0xff]   ;;  %v12201_v52 = vld [vmem:[%s13458_s20 + $0xb04] ss:$52 sps:$4 sm:$0xff]  }
 0x34d   : > { %7517 = vmatpush2.bf16.msra.mxu0 %v12106_v56  ;;  %v12199_v56 = vld [vmem:[%s13458_s20 + $0xb00] ss:$52 sps:$4 sm:$0xff]  }
 0x34e   : > { %7599 = vmatpush2.bf16.msra.mxu1 %v12103_v55  ;;  %7518 = vmatprep.subr.bf16.mxu0 %v12114_v58  ;;  %v12196_v55 = vld [vmem:[%s13458_s20 + $0x1250] ss:$52 sps:$4 sm:$0xff]  }
 0x34f   : > { %7600 = vmatprep.subr.bf16.mxu1 %v12111_v57  ;;  %v12204_v57 = vld [vmem:[%s13458_s20 + $0x11ec] ss:$52 sps:$4 sm:$0xff]   ;;  %v12207_v58 = vld [vmem:[%s13458_s20 + $0xa9c] ss:$52 sps:$4 sm:$0xff]  }
 0x351   : > { %7519 = vmatpush2.bf16.msra.mxu0 %v12112_v60  ;;  %v12205_v60 = vld [vmem:[%s13458_s20 + $0xa98] ss:$52 sps:$4 sm:$0xff]  }
 0x352   : > { %7601 = vmatpush2.bf16.msra.mxu1 %v12109_v59  ;;  %7520 = vmatprep.subr.bf16.mxu0 %v12120_v62  ;;  %v12202_v59 = vld [vmem:[%s13458_s20 + $0x11e8] ss:$52 sps:$4 sm:$0xff]  }
 0x353   : > { %7602 = vmatprep.subr.bf16.mxu1 %v12117_v61  ;;  %v12210_v61 = vld [vmem:[%s13458_s20 + $0x1184] ss:$52 sps:$4 sm:$0xff]   ;;  %v12213_v62 = vld [vmem:[%s13458_s20 + $0xa34] ss:$52 sps:$4 sm:$0xff]  }
 0x355   : > { %7521 = vmatpush2.bf16.msra.mxu0 %v12118_v2  ;;  %v12211_v2 = vld [vmem:[%s13458_s20 + $0xa30] ss:$52 sps:$4 sm:$0xff]  }
 0x356   : > { %7603 = vmatpush2.bf16.msra.mxu1 %v12115_v1  ;;  %7619 = vmatprep.subr.bf16.mxu0 %v12129_v4  ;;  %v12208_v1 = vld [vmem:[%s13458_s20 + $0x1180] ss:$52 sps:$4 sm:$0xff]  }
 0x357   : > { %7604 = vmatprep.subr.bf16.mxu1 %v12125_v3  ;;  %v12216_v3 = vld [vmem:[%s13458_s20 + $0x111c] ss:$52 sps:$4 sm:$0xff]   ;;  %v12219_v4 = vld [vmem:[%s13458_s20 + $0x9cc] ss:$52 sps:$4 sm:$0xff]  }
 0x358   : > { %7523 = vmatmul.mubr.bf16.vlgmr.msra.gmra.mxu0 %v13737_v5 }
 0x359   : > { %7620 = vmatpush1.bf16.msra.mxu0 %v12127_v6  ;;  %7651 = vmatprep.mubr.bf16.mxu0 %v13638_v43  ;;  %v12145_v43 = vld [vmem:[%s13458_s20 + $0x828] ss:$52 sps:$4 sm:$0xff]  }
 0x35a   : > { %7605 = vmatpush2.bf16.msra.mxu1 %v12123_v12  ;;  %7621 = vmatprep.subr.bf16.mxu0 %v12135_v38  ;;  %v12214_v12 = vld [vmem:[%s13458_s20 + $0x1118] ss:$52 sps:$4 sm:$0xff]   ;;  %v12217_v6 = vld [vmem:[%s13458_s20 + $0x9c8] ss:$52 sps:$4 sm:$0xff]  }
 0x35b   : > { %7606 = vmatprep.subr.bf16.mxu1 %v12132_v8  ;;  %v12222_v8 = vld [vmem:[%s13458_s20 + $0x10b4] ss:$52 sps:$4 sm:$0xff]   ;;  %v12225_v38 = vld [vmem:[%s13458_s20 + $0x138c] ss:$52 sps:$4 sm:$0xff]  }
 0x35d   : > { %7622 = vmatpush1.bf16.msra.mxu0 %v12133_v27  ;;  %v12223_v27 = vld [vmem:[%s13458_s20 + $0x1388] ss:$52 sps:$4 sm:$0xff]  }
 0x35e   : > { %7607 = vmatpush2.bf16.msra.mxu1 %v12130_v9  ;;  %7623 = vmatprep.subr.bf16.mxu0 %v12141_v11  ;;  %v12220_v9 = vld [vmem:[%s13458_s20 + $0x10b0] ss:$52 sps:$4 sm:$0xff]   ;;  %v12231_v11 = vld [vmem:[%s13458_s20 + $0x2ec] ss:$52 sps:$4 sm:$0xff]  }
 0x35f   : > { %7662 = vmatprep.subr.bf16.mxu1 %v12138_v10  ;;  %v12228_v10 = vld [vmem:[%s13458_s20 + $0x104c] ss:$52 sps:$4 sm:$0xff]  }
 0x361   : > { %7609 = vmatmul.mubr.bf16.vlgmr.msra.gmra.mxu1 %v13659_v63  ;;  %7624 = vmatpush1.bf16.msra.mxu0 %v12139_v21  ;;  %v12151_v63 = vld [vmem:[%s13458_s20 + $0x7c0] ss:$52 sps:$4 sm:$0xff]  }
 0x362   : > { %7663 = vmatpush1.bf16.msra.mxu1 %v12136_v23  ;;  %7625 = vmatprep.subr.bf16.mxu0 %v12147_v54  ;;  %v12226_v23 = vld [vmem:[%s13458_s20 + $0x1048] ss:$52 sps:$4 sm:$0xff]   ;;  %v12234_v21 = vld [vmem:[%s13458_s20 + $0x96c] ss:$52 sps:$4 sm:$0xff]  }
 0x363   : > { %7664 = vmatprep.subr.bf16.mxu1 %v12144_v14  ;;  %7694 = vmatprep.mubr.bf16.mxu1 %v13695_v53  ;;  %v12162_v53 = vld [vmem:[%s13458_s20 + $0xe44] ss:$52 sps:$4 sm:$0xff]   ;;  %v12229_v14 = vld [vmem:[%s13458_s20 + $0x2e8] ss:$52 sps:$4 sm:$0xff]  }
 0x364   : > { %v12232_v54 = vld [vmem:[%s13458_s20 + $0x968] ss:$52 sps:$4 sm:$0xff]  }
 0x365   : > { %7626 = vmatpush1.bf16.msra.mxu0 %v12145_v43  ;;  %v12240_v43 = vld [vmem:[%s13458_s20 + $0x904] ss:$52 sps:$4 sm:$0xff]  }
 0x366   : > { %7665 = vmatpush1.bf16.msra.mxu1 %v12142_v15  ;;  %7627 = vmatprep.subr.bf16.mxu0 %v12153_v17  ;;  %v12237_v15 = vld [vmem:[%s13458_s20 + $0x284] ss:$52 sps:$4 sm:$0xff]   ;;  %v12243_v17 = vld [vmem:[%s13458_s20 + $0x21c] ss:$52 sps:$4 sm:$0xff]  }
 0x367   : > { %7666 = vmatprep.subr.bf16.mxu1 %v12150_v16  ;;  %v12238_v16 = vld [vmem:[%s13458_s20 + $0x900] ss:$52 sps:$4 sm:$0xff]  }
 0x369   : > { %7628 = vmatpush1.bf16.msra.mxu0 %v12151_v63  ;;  %v13825_v63 = vld [vmem:[#allocation2 + $0x4] ss:$28 sps:$4 sm:$0xff]  }
 0x36a   : > { %7667 = vmatpush1.bf16.msra.mxu1 %v12148_v18  ;;  %7629 = vmatprep.subr.bf16.mxu0 %v12159_v20  ;;  %v12246_v18 = vld [vmem:[%s13458_s20 + $0x89c] ss:$52 sps:$4 sm:$0xff]   ;;  %v12249_v20 = vld [vmem:[%s13458_s20 + $0x1b4] ss:$52 sps:$4 sm:$0xff]  }
 0x36b   : > { %7668 = vmatprep.subr.bf16.mxu1 %v12156_v19  ;;  %v12244_v19 = vld [vmem:[%s13458_s20 + $0x898] ss:$52 sps:$4 sm:$0xff]  }
 0x36d   : > { %7630 = vmatpush1.bf16.msra.mxu0 %v12157_v24  ;;  %v12247_v24 = vld [vmem:[%s13458_s20 + $0x1b0] ss:$52 sps:$4 sm:$0xff]  }
 0x36e   : > { %7669 = vmatpush1.bf16.msra.mxu1 %v12154_v22  ;;  %7631 = vmatprep.subr.bf16.mxu0 %v12165_v25  ;;  %v12252_v22 = vld [vmem:[%s13458_s20 + $0x834] ss:$52 sps:$4 sm:$0xff]   ;;  %v12255_v25 = vld [vmem:[%s13458_s20 + $0x14c] ss:$52 sps:$4 sm:$0xff]  }
 0x36f   : > { %7670 = vmatprep.subr.bf16.mxu1 %v12162_v53  ;;  %v12250_v53 = vld [vmem:[%s13458_s20 + $0x830] ss:$52 sps:$4 sm:$0xff]  }
 0x371   : > { %7632 = vmatpush1.bf16.msra.mxu0 %v12163_v28  ;;  %v12253_v28 = vld [vmem:[%s13458_s20 + $0x148] ss:$52 sps:$4 sm:$0xff]  }
 0x372   : > { %7671 = vmatpush1.bf16.msra.mxu1 %v12160_v26  ;;  %7633 = vmatprep.subr.bf16.mxu0 %v12171_v30  ;;  %v12258_v26 = vld [vmem:[%s13458_s20 + $0x7cc] ss:$52 sps:$4 sm:$0xff]   ;;  %v12261_v30 = vld [vmem:[%s13458_s20 + $0xe4] ss:$52 sps:$4 sm:$0xff]  }
 0x373   : > { %7672 = vmatprep.subr.bf16.mxu1 %v12168_v29  ;;  %v12256_v29 = vld [vmem:[%s13458_s20 + $0x7c8] ss:$52 sps:$4 sm:$0xff]  }
 0x375   : > { %7634 = vmatpush1.bf16.msra.mxu0 %v12169_v32  ;;  %v12259_v32 = vld [vmem:[%s13458_s20 + $0xe0] ss:$52 sps:$4 sm:$0xff]  }
 0x376   : > { %7673 = vmatpush1.bf16.msra.mxu1 %v12166_v31  ;;  %7635 = vmatprep.subr.bf16.mxu0 %v12177_v34  ;;  %v12264_v31 = vld [vmem:[%s13458_s20 + $0x764] ss:$52 sps:$4 sm:$0xff]   ;;  %v12267_v34 = vld [vmem:[%s13458_s20 + $0x7c] ss:$52 sps:$4 sm:$0xff]  }
 0x377   : > { %7674 = vmatprep.subr.bf16.mxu1 %v12174_v33  ;;  %v12262_v33 = vld [vmem:[%s13458_s20 + $0x760] ss:$52 sps:$4 sm:$0xff]  }
 0x379   : > { %7636 = vmatpush2.bf16.msra.mxu0 %v12175_v36  ;;  %v12265_v36 = vld [vmem:[%s13458_s20 + $0x78] ss:$52 sps:$4 sm:$0xff]  }
 0x37a   : > { %7675 = vmatpush1.bf16.msra.mxu1 %v12172_v35  ;;  %7637 = vmatprep.subr.bf16.mxu0 %v12183_v40  ;;  %v12270_v35 = vld [vmem:[%s13458_s20 + $0x6fc] ss:$52 sps:$4 sm:$0xff]   ;;  %v12273_v40 = vld [vmem:[%s13458_s20 + $0x14] ss:$52 sps:$4 sm:$0xff]  }
 0x37b   : > { %7676 = vmatprep.subr.bf16.mxu1 %v12180_v39  ;;  %v12268_v39 = vld [vmem:[%s13458_s20 + $0x6f8] ss:$52 sps:$4 sm:$0xff]  }
 0x37d   : > { %7638 = vmatpush2.bf16.msra.mxu0 %v12181_v44  ;;  %v12271_v44 = vld [vmem:[%s13458_s20 + $0x10] ss:$52 sps:$4 sm:$0xff]  }
 0x37e   : > { %7677 = vmatpush1.bf16.msra.mxu1 %v12178_v41  ;;  %7639 = vmatprep.subr.bf16.mxu0 %v12189_v45  ;;  %v12276_v41 = vld [vmem:[%s13458_s20 + $0x694] ss:$52 sps:$4 sm:$0xff]   ;;  %v12279_v45 = vld [vmem:[%s13458_s20 + $0x62c] ss:$52 sps:$4 sm:$0xff]  }
 0x37f   : > { %7678 = vmatprep.subr.bf16.mxu1 %v12186_v42  ;;  %v12274_v42 = vld [vmem:[%s13458_s20 + $0x690] ss:$52 sps:$4 sm:$0xff]  }
 0x381   : > { %7640 = vmatpush2.bf16.msra.mxu0 %v12187_v46  ;;  %v12277_v46 = vld [vmem:[%s13458_s20 + $0x628] ss:$52 sps:$4 sm:$0xff]  }
 0x382   : > { %7679 = vmatpush2.bf16.msra.mxu1 %v12184_v37  ;;  %7641 = vmatprep.subr.bf16.mxu0 %v12195_v49  ;;  %v12282_v37 = vld [vmem:[%s13458_s20 + $0xcac] ss:$52 sps:$4 sm:$0xff]   ;;  %v12285_v49 = vld [vmem:[%s13458_s20 + $0x5c4] ss:$52 sps:$4 sm:$0xff]  }
 0x383   : > { %7680 = vmatprep.subr.bf16.mxu1 %v12192_v48  ;;  %v12280_v48 = vld [vmem:[%s13458_s20 + $0xca8] ss:$52 sps:$4 sm:$0xff]  }
 0x385   : > { %7642 = vmatpush2.bf16.msra.mxu0 %v12193_v50  ;;  %v12283_v50 = vld [vmem:[%s13458_s20 + $0x5c0] ss:$52 sps:$4 sm:$0xff]  }
 0x386   : > { %7681 = vmatpush2.bf16.msra.mxu1 %v12190_v47  ;;  %7643 = vmatprep.subr.bf16.mxu0 %v12201_v52  ;;  %v12288_v47 = vld [vmem:[%s13458_s20 + $0xc44] ss:$52 sps:$4 sm:$0xff]   ;;  %v12291_v52 = vld [vmem:[%s13458_s20 + $0x55c] ss:$52 sps:$4 sm:$0xff]  }
 0x387   : > { %7682 = vmatprep.subr.bf16.mxu1 %v12198_v51  ;;  %v12286_v51 = vld [vmem:[%s13458_s20 + $0xc40] ss:$52 sps:$4 sm:$0xff]  }
 0x389   : > { %7644 = vmatpush2.bf16.msra.mxu0 %v12199_v56  ;;  %v12289_v56 = vld [vmem:[%s13458_s20 + $0x558] ss:$52 sps:$4 sm:$0xff]  }
 0x38a   : > { %7683 = vmatpush2.bf16.msra.mxu1 %v12196_v55  ;;  %7645 = vmatprep.subr.bf16.mxu0 %v12207_v58  ;;  %v12294_v55 = vld [vmem:[%s13458_s20 + $0xbdc] ss:$52 sps:$4 sm:$0xff]   ;;  %v12297_v58 = vld [vmem:[%s13458_s20 + $0x4f4] ss:$52 sps:$4 sm:$0xff]  }
 0x38b   : > { %7684 = vmatprep.subr.bf16.mxu1 %v12204_v57  ;;  %v12292_v57 = vld [vmem:[%s13458_s20 + $0xbd8] ss:$52 sps:$4 sm:$0xff]  }
 0x38d   : > { %7646 = vmatpush2.bf16.msra.mxu0 %v12205_v60  ;;  %v12295_v60 = vld [vmem:[%s13458_s20 + $0x4f0] ss:$52 sps:$4 sm:$0xff]  }
 0x38e   : > { %7685 = vmatpush2.bf16.msra.mxu1 %v12202_v59  ;;  %7647 = vmatprep.subr.bf16.mxu0 %v12213_v62  ;;  %v12300_v59 = vld [vmem:[%s13458_s20 + $0xb74] ss:$52 sps:$4 sm:$0xff]   ;;  %v12303_v62 = vld [vmem:[%s13458_s20 + $0x48c] ss:$52 sps:$4 sm:$0xff]  }
 0x38f   : > { %7686 = vmatprep.subr.bf16.mxu1 %v12210_v61  ;;  %v12298_v61 = vld [vmem:[%s13458_s20 + $0xb70] ss:$52 sps:$4 sm:$0xff]  }
 0x391   : > { %7648 = vmatpush2.bf16.msra.mxu0 %v12211_v2  ;;  %v12301_v2 = vld [vmem:[%s13458_s20 + $0x488] ss:$52 sps:$4 sm:$0xff]  }
 0x392   : > { %7687 = vmatpush2.bf16.msra.mxu1 %v12208_v1  ;;  %7649 = vmatprep.subr.bf16.mxu0 %v12219_v4  ;;  %v12306_v1 = vld [vmem:[%s13458_s20 + $0xb0c] ss:$52 sps:$4 sm:$0xff]   ;;  %v12309_v4 = vld [vmem:[%s13458_s20 + $0x424] ss:$52 sps:$4 sm:$0xff]  }
 0x393   : > { %7688 = vmatprep.subr.bf16.mxu1 %v12216_v3  ;;  %v12304_v3 = vld [vmem:[%s13458_s20 + $0xb08] ss:$52 sps:$4 sm:$0xff]  }
 0x395   : > { %7650 = vmatpush2.bf16.msra.mxu0 %v12217_v6  ;;  %v12307_v6 = vld [vmem:[%s13458_s20 + $0x420] ss:$52 sps:$4 sm:$0xff]  }
 0x396   : > { %7689 = vmatpush2.bf16.msra.mxu1 %v12214_v12  ;;  %7719 = vmatprep.subr.bf16.mxu0 %v12225_v38  ;;  %v12312_v12 = vld [vmem:[%s13458_s20 + $0xaa4] ss:$52 sps:$4 sm:$0xff]   ;;  %v12315_v38 = vld [vmem:[%s13458_s20 + $0x3bc] ss:$52 sps:$4 sm:$0xff]  }
 0x397   : > { %7690 = vmatprep.subr.bf16.mxu1 %v12222_v8  ;;  %v12310_v8 = vld [vmem:[%s13458_s20 + $0xaa0] ss:$52 sps:$4 sm:$0xff]  }
 0x398   : > { %7652 = vmatmul.mubr.bf16.vlgmr.msra.gmra.mxu0 %v13661_v0  ;;  %v12235_v0 = vld [vmem:[%s13458_s20 + $0x280] ss:$52 sps:$4 sm:$0xff]  }
 0x399   : > { %7720 = vmatpush1.bf16.msra.mxu0 %v12223_v27  ;;  %7737 = vmatprep.mubr.bf16.mxu0 %v13214_v13  ;;  %v12313_v27 = vld [vmem:[%s13458_s20 + $0x3b8] ss:$52 sps:$4 sm:$0xff]  }
 0x39a   : > { %7691 = vmatpush2.bf16.msra.mxu1 %v12220_v9  ;;  %7748 = vmatprep.subr.bf16.mxu0 %v12231_v11  ;;  %v12318_v9 = vld [vmem:[%s13458_s20 + $0xa3c] ss:$52 sps:$4 sm:$0xff]   ;;  %v12321_v11 = vld [vmem:[%s13458_s20 + $0x354] ss:$52 sps:$4 sm:$0xff]  }
 0x39b   : > { %7692 = vmatprep.subr.bf16.mxu1 %v12228_v10  ;;  %v12316_v10 = vld [vmem:[%s13458_s20 + $0xa38] ss:$52 sps:$4 sm:$0xff]  }
 0x39e   : > { %7693 = vmatpush2.bf16.msra.mxu1 %v12226_v23  ;;  %v12324_v23 = vld [vmem:[%s13458_s20 + $0x9d4] ss:$52 sps:$4 sm:$0xff]  }
 0x39f   : > { %7791 = vmatprep.subr.bf16.mxu1 %v12234_v21  ;;  %v12319_v21 = vld [vmem:[%s13458_s20 + $0x350] ss:$52 sps:$4 sm:$0xff]  }
 0x3a0   : > { %10902 = vmatmul.mubr.msk.bf16.vlgmr.msra.gmra.mxu0 %vm7400_vm3, %v13673_v7  ;;  %v12241_v7 = vld [vmem:[%s13458_s20 + $0x218] ss:$52 sps:$4 sm:$0xff]  }
 0x3a1   : > { %7695 = vmatmul.mubr.bf16.vlgmr.msra.gmra.mxu1 %v13737_v5  ;;  %7749 = vmatpush1.bf16.msra.mxu0 %v12229_v14  ;;  %v13828_v5 = vld [vmem:[#allocation2 + $0xc] ss:$28 sps:$4 sm:$0xff]  }
 0x3a2   : > { %7792 = vmatpush1.bf16.msra.mxu1 %v12232_v54  ;;  %7750 = vmatprep.subr.bf16.mxu0 %v12237_v15  ;;  %v12322_v14 = vld [vmem:[%s13458_s20 + $0x9d0] ss:$52 sps:$4 sm:$0xff]   ;;  %v12327_v54 = vld [vmem:[%s13458_s20 + $0xfec] ss:$52 sps:$4 sm:$0xff]   ;;  %v12330_v15 = vld [vmem:[%s13458_s20 + $0x1394] ss:$52 sps:$4 sm:$0xff]  }
 0x3a3   : > { %7793 = vmatprep.subr.bf16.mxu1 %v12240_v43  ;;  %7780 = vmatprep.mubr.bf16.mxu0 %v13825_v63  ;;  %v12325_v43 = vld [vmem:[%s13458_s20 + $0xfe8] ss:$52 sps:$4 sm:$0xff]  }
 0x3a4   : > { %7823 = vmatprep.mubr.bf16.mxu1 %v13828_v5 }
 0x3a5   : > { %7751 = vmatpush1.bf16.msra.mxu0 %v12235_v0  ;;  %v12328_v0 = vld [vmem:[%s13458_s20 + $0x1390] ss:$52 sps:$4 sm:$0xff]  }
 0x3a6   : > { %7794 = vmatpush1.bf16.msra.mxu1 %v12238_v16  ;;  %7752 = vmatprep.subr.bf16.mxu0 %v12243_v17  ;;  %v12333_v16 = vld [vmem:[%s13458_s20 + $0xf84] ss:$52 sps:$4 sm:$0xff]   ;;  %v12336_v17 = vld [vmem:[%s13458_s20 + $0x2f4] ss:$52 sps:$4 sm:$0xff]  }
 0x3a7   : > { %7795 = vmatprep.subr.bf16.mxu1 %v12246_v18  ;;  %v13891_v18 = vld [vmem:[#allocation2] ss:$28 sps:$4 sm:$0xff]  }
 0x3a9   : > { %7753 = vmatpush1.bf16.msra.mxu0 %v12241_v7  ;;  %v12973_v7 = vld [vmem:[#allocation2 + $0x8] ss:$28 sps:$4 sm:$0xff]  }
 0x3aa   : > { %7796 = vmatpush1.bf16.msra.mxu1 %v12244_v19  ;;  %7754 = vmatprep.subr.bf16.mxu0 %v12249_v20  ;;  %v12331_v19 = vld [vmem:[%s13458_s20 + $0xf80] ss:$52 sps:$4 sm:$0xff]   ;;  %v12339_v20 = vld [vmem:[%s13458_s20 + $0xf1c] ss:$52 sps:$4 sm:$0xff]  }
 0x3ab   : > { %7797 = vmatprep.subr.bf16.mxu1 %v12252_v22  ;;  %v12334_v22 = vld [vmem:[%s13458_s20 + $0x2f0] ss:$52 sps:$4 sm:$0xff]  }
 0x3ad   : > { %7755 = vmatpush1.bf16.msra.mxu0 %v12247_v24  ;;  %v12337_v24 = vld [vmem:[%s13458_s20 + $0xf18] ss:$52 sps:$4 sm:$0xff]  }
 0x3ae   : > { %7798 = vmatpush1.bf16.msra.mxu1 %v12250_v53  ;;  %7756 = vmatprep.subr.bf16.mxu0 %v12255_v25  ;;  %v13899_v53 = vld [vmem:[#allocation2 + $0x14] ss:$28 sps:$4 sm:$0xff]  }
 0x3af   : > { %7799 = vmatprep.subr.bf16.mxu1 %v12258_v26  ;;  %v12342_v25 = vld [vmem:[%s13458_s20 + $0x28c] ss:$52 sps:$4 sm:$0xff]   ;;  %v12345_v26 = vld [vmem:[%s13458_s20 + $0xeb4] ss:$52 sps:$4 sm:$0xff]  }
 0x3b1   : > { %7757 = vmatpush1.bf16.msra.mxu0 %v12253_v28  ;;  %v12340_v28 = vld [vmem:[%s13458_s20 + $0x288] ss:$52 sps:$4 sm:$0xff]  }
 0x3b2   : > { %7800 = vmatpush1.bf16.msra.mxu1 %v12256_v29  ;;  %7758 = vmatprep.subr.bf16.mxu0 %v12261_v30  ;;  %v12343_v29 = vld [vmem:[%s13458_s20 + $0xeb0] ss:$52 sps:$4 sm:$0xff]  }
 0x3b3   : > { %7801 = vmatprep.subr.bf16.mxu1 %v12264_v31  ;;  %v12975_v30 = vld [vmem:[#allocation2 + $0x18] ss:$28 sps:$4 sm:$0xff]  }
 0x3b4   : > { %v12348_v31 = vld [vmem:[%s13458_s20 + $0x224] ss:$52 sps:$4 sm:$0xff]  }
 0x3b5   : > { %7759 = vmatpush1.bf16.msra.mxu0 %v12259_v32  ;;  %v12351_v32 = vld [vmem:[%s13458_s20 + $0xe4c] ss:$52 sps:$4 sm:$0xff]  }
 0x3b6   : > { %7802 = vmatpush1.bf16.msra.mxu1 %v12262_v33  ;;  %7760 = vmatprep.subr.bf16.mxu0 %v12267_v34  ;;  %v12346_v33 = vld [vmem:[%s13458_s20 + $0x220] ss:$52 sps:$4 sm:$0xff]   ;;  %v12349_v34 = vld [vmem:[%s13458_s20 + $0xe48] ss:$52 sps:$4 sm:$0xff]  }
 0x3b7   : > { %7803 = vmatprep.subr.bf16.mxu1 %v12270_v35  ;;  %v12354_v35 = vld [vmem:[%s13458_s20 + $0x1bc] ss:$52 sps:$4 sm:$0xff]  }
 0x3b9   : > { %7761 = vmatpush1.bf16.msra.mxu0 %v12265_v36  ;;  %v12357_v36 = vld [vmem:[%s13458_s20 + $0xde4] ss:$52 sps:$4 sm:$0xff]  }
 0x3ba   : > { %7804 = vmatpush1.bf16.msra.mxu1 %v12268_v39  ;;  %7762 = vmatprep.subr.bf16.mxu0 %v12273_v40  ;;  %v12352_v39 = vld [vmem:[%s13458_s20 + $0x1b8] ss:$52 sps:$4 sm:$0xff]   ;;  %v12355_v40 = vld [vmem:[%s13458_s20 + $0xde0] ss:$52 sps:$4 sm:$0xff]  }
 0x3bb   : > { %7805 = vmatprep.subr.bf16.mxu1 %v12276_v41  ;;  %v12363_v41 = vld [vmem:[%s13458_s20 + $0xd7c] ss:$52 sps:$4 sm:$0xff]  }
 0x3bd   : > { %7763 = vmatpush1.bf16.msra.mxu0 %v12271_v44  ;;  %v12358_v44 = vld [vmem:[%s13458_s20 + $0x150] ss:$52 sps:$4 sm:$0xff]  }
 0x3be   : > { %7806 = vmatpush1.bf16.msra.mxu1 %v12274_v42  ;;  %7764 = vmatprep.subr.bf16.mxu0 %v12279_v45  ;;  %v12361_v42 = vld [vmem:[%s13458_s20 + $0xd78] ss:$52 sps:$4 sm:$0xff]  }
 0x3bf   : > { %7807 = vmatprep.subr.bf16.mxu1 %v12282_v37  ;;  %v12366_v45 = vld [vmem:[%s13458_s20 + $0xec] ss:$52 sps:$4 sm:$0xff]   ;;  %v12369_v37 = vld [vmem:[%s13458_s20 + $0xd14] ss:$52 sps:$4 sm:$0xff]  }
 0x3c1   : > { %7765 = vmatpush2.bf16.msra.mxu0 %v12277_v46  ;;  %v12364_v46 = vld [vmem:[%s13458_s20 + $0xe8] ss:$52 sps:$4 sm:$0xff]  }
 0x3c2   : > { %7808 = vmatpush2.bf16.msra.mxu1 %v12280_v48  ;;  %7766 = vmatprep.subr.bf16.mxu0 %v12285_v49  ;;  %v12367_v48 = vld [vmem:[%s13458_s20 + $0xd10] ss:$52 sps:$4 sm:$0xff]  }
 0x3c3   : > { %7809 = vmatprep.subr.bf16.mxu1 %v12288_v47  ;;  %v12372_v49 = vld [vmem:[%s13458_s20 + $0x84] ss:$52 sps:$4 sm:$0xff]   ;;  %v12375_v47 = vld [vmem:[%s13458_s20 + $0x132c] ss:$52 sps:$4 sm:$0xff]  }
 0x3c5   : > { %7767 = vmatpush2.bf16.msra.mxu0 %v12283_v50  ;;  %v12370_v50 = vld [vmem:[%s13458_s20 + $0x80] ss:$52 sps:$4 sm:$0xff]  }
 0x3c6   : > { %7810 = vmatpush2.bf16.msra.mxu1 %v12286_v51  ;;  %7768 = vmatprep.subr.bf16.mxu0 %v12291_v52  ;;  %v12373_v51 = vld [vmem:[%s13458_s20 + $0x1328] ss:$52 sps:$4 sm:$0xff]  }
 0x3c7   : > { %7811 = vmatprep.subr.bf16.mxu1 %v12294_v55  ;;  %v12378_v52 = vld [vmem:[%s13458_s20 + $0x1c] ss:$52 sps:$4 sm:$0xff]   ;;  %v12381_v55 = vld [vmem:[%s13458_s20 + $0x12c4] ss:$52 sps:$4 sm:$0xff]  }
 0x3c9   : > { %7769 = vmatpush2.bf16.msra.mxu0 %v12289_v56  ;;  %v12376_v56 = vld [vmem:[%s13458_s20 + $0x18] ss:$52 sps:$4 sm:$0xff]  }
 0x3ca   : > { %7812 = vmatpush2.bf16.msra.mxu1 %v12292_v57  ;;  %7770 = vmatprep.subr.bf16.mxu0 %v12297_v58  ;;  %v12379_v57 = vld [vmem:[%s13458_s20 + $0x12c0] ss:$52 sps:$4 sm:$0xff]  }
 0x3cb   : > { %7813 = vmatprep.subr.bf16.mxu1 %v12300_v59  ;;  %v12384_v58 = vld [vmem:[%s13458_s20 + $0x634] ss:$52 sps:$4 sm:$0xff]   ;;  %v12387_v59 = vld [vmem:[%s13458_s20 + $0x125c] ss:$52 sps:$4 sm:$0xff]  }
 0x3cd   : > { %7771 = vmatpush2.bf16.msra.mxu0 %v12295_v60  ;;  %v12382_v60 = vld [vmem:[%s13458_s20 + $0x630] ss:$52 sps:$4 sm:$0xff]  }
 0x3ce   : > { %7814 = vmatpush2.bf16.msra.mxu1 %v12298_v61  ;;  %7772 = vmatprep.subr.bf16.mxu0 %v12303_v62  ;;  %v12385_v61 = vld [vmem:[%s13458_s20 + $0x1258] ss:$52 sps:$4 sm:$0xff]  }
 0x3cf   : > { %7815 = vmatprep.subr.bf16.mxu1 %v12306_v1  ;;  %v12390_v62 = vld [vmem:[%s13458_s20 + $0x5cc] ss:$52 sps:$4 sm:$0xff]   ;;  %v12393_v1 = vld [vmem:[%s13458_s20 + $0x11f4] ss:$52 sps:$4 sm:$0xff]  }
 0x3d1   : > { %7773 = vmatpush2.bf16.msra.mxu0 %v12301_v2  ;;  %v12388_v2 = vld [vmem:[%s13458_s20 + $0x5c8] ss:$52 sps:$4 sm:$0xff]  }
 0x3d2   : > { %7816 = vmatpush2.bf16.msra.mxu1 %v12304_v3  ;;  %7774 = vmatprep.subr.bf16.mxu0 %v12309_v4  ;;  %v12391_v3 = vld [vmem:[%s13458_s20 + $0x11f0] ss:$52 sps:$4 sm:$0xff]  }
 0x3d3   : > { %7817 = vmatprep.subr.bf16.mxu1 %v12312_v12  ;;  %v12396_v4 = vld [vmem:[%s13458_s20 + $0x564] ss:$52 sps:$4 sm:$0xff]   ;;  %v12399_v12 = vld [vmem:[%s13458_s20 + $0x118c] ss:$52 sps:$4 sm:$0xff]  }
 0x3d5   : > { %7775 = vmatpush2.bf16.msra.mxu0 %v12307_v6  ;;  %v12394_v6 = vld [vmem:[%s13458_s20 + $0x560] ss:$52 sps:$4 sm:$0xff]  }
 0x3d6   : > { %7818 = vmatpush2.bf16.msra.mxu1 %v12310_v8  ;;  %7776 = vmatprep.subr.bf16.mxu0 %v12315_v38  ;;  %v12397_v8 = vld [vmem:[%s13458_s20 + $0x1188] ss:$52 sps:$4 sm:$0xff]  }
 0x3d7   : > { %7819 = vmatprep.subr.bf16.mxu1 %v12318_v9  ;;  %v12402_v38 = vld [vmem:[%s13458_s20 + $0x4fc] ss:$52 sps:$4 sm:$0xff]   ;;  %v12405_v9 = vld [vmem:[%s13458_s20 + $0x1124] ss:$52 sps:$4 sm:$0xff]  }
 0x3d9   : > { %7777 = vmatpush2.bf16.msra.mxu0 %v12313_v27  ;;  %v12400_v27 = vld [vmem:[%s13458_s20 + $0x4f8] ss:$52 sps:$4 sm:$0xff]  }
 0x3da   : > { %7820 = vmatpush2.bf16.msra.mxu1 %v12316_v10  ;;  %7778 = vmatprep.subr.bf16.mxu0 %v12321_v11  ;;  %v12403_v10 = vld [vmem:[%s13458_s20 + $0x1120] ss:$52 sps:$4 sm:$0xff]  }
 0x3db   : > { %7821 = vmatprep.subr.bf16.mxu1 %v12324_v23  ;;  %v12408_v11 = vld [vmem:[%s13458_s20 + $0x494] ss:$52 sps:$4 sm:$0xff]   ;;  %v12411_v23 = vld [vmem:[%s13458_s20 + $0x10bc] ss:$52 sps:$4 sm:$0xff]  }
 0x3dd   : > { %7779 = vmatpush2.bf16.msra.mxu0 %v12319_v21  ;;  %v12406_v21 = vld [vmem:[%s13458_s20 + $0x490] ss:$52 sps:$4 sm:$0xff]  }
 0x3de   : > { %7822 = vmatpush2.bf16.msra.mxu1 %v12322_v14  ;;  %7834 = vmatprep.subr.bf16.mxu0 %v12327_v54  ;;  %v12409_v14 = vld [vmem:[%s13458_s20 + $0x10b8] ss:$52 sps:$4 sm:$0xff]  }
 0x3df   : > { %7891 = vmatprep.subr.bf16.mxu1 %v12330_v15  ;;  %v12414_v54 = vld [vmem:[%s13458_s20 + $0x42c] ss:$52 sps:$4 sm:$0xff]   ;;  %v12417_v15 = vld [vmem:[%s13458_s20 + $0x1054] ss:$52 sps:$4 sm:$0xff]  }
 0x3e0   : > { %7781 = vmatmul.mubr.bf16.vlgmr.msra.gmra.mxu0 %v13891_v18 }
 0x3e1   : > { %7824 = vmatmul.mubr.bf16.vlgmr.msra.gmra.mxu1 %v12973_v7  ;;  %7835 = vmatpush1.bf16.msra.mxu0 %v12325_v43  ;;  %v12412_v43 = vld [vmem:[%s13458_s20 + $0x428] ss:$52 sps:$4 sm:$0xff]   ;;  %v12418_v7 = vld [vmem:[%s13458_s20 + $0x3c0] ss:$52 sps:$4 sm:$0xff]  }
 0x3e2   : > { %7892 = vmatpush1.bf16.msra.mxu1 %v12328_v0  ;;  %7836 = vmatprep.subr.bf16.mxu0 %v12333_v16  ;;  %v12415_v0 = vld [vmem:[%s13458_s20 + $0x1050] ss:$52 sps:$4 sm:$0xff]  }
 0x3e3   : > { %7909 = vmatprep.mubr.bf16.mxu1 %v13214_v13  ;;  %7920 = vmatprep.subr.bf16.mxu1 %v12336_v17  ;;  %v12420_v16 = vld [vmem:[%s13458_s20 + $0x3c4] ss:$52 sps:$4 sm:$0xff]   ;;  %v12423_v17 = vld [vmem:[%s13458_s20 + $0x974] ss:$52 sps:$4 sm:$0xff]  }
 0x3e4   : > { %7866 = vmatprep.mubr.bf16.mxu0 %v13899_v53 }
 0x3e5   : > { %7837 = vmatpush1.bf16.msra.mxu0 %v12331_v19  ;;  %v12421_v19 = vld [vmem:[%s13458_s20 + $0x970] ss:$52 sps:$4 sm:$0xff]  }
 0x3e6   : > { %7838 = vmatprep.subr.bf16.mxu0 %v12339_v20  ;;  %v12426_v20 = vld [vmem:[%s13458_s20 + $0x35c] ss:$52 sps:$4 sm:$0xff]  }
 0x3e9   : > { %10903 = vmatmul.mubr.msk.bf16.vlgmr.msra.gmra.mxu1 %vm7400_vm3, %v12975_v30  ;;  %7839 = vmatpush1.bf16.msra.mxu0 %v12337_v24  ;;  %v12424_v24 = vld [vmem:[%s13458_s20 + $0x358] ss:$52 sps:$4 sm:$0xff]   ;;  %v12430_v30 = vld [vmem:[%s13458_s20 + $0xff0] ss:$52 sps:$4 sm:$0xff]  }
 0x3ea   : > { %7921 = vmatpush1.bf16.msra.mxu1 %v12334_v22  ;;  %7840 = vmatprep.subr.bf16.mxu0 %v12345_v26  ;;  %v12429_v22 = vld [vmem:[%s13458_s20 + $0x90c] ss:$52 sps:$4 sm:$0xff]  }
 0x3eb   : > { %7922 = vmatprep.subr.bf16.mxu1 %v12342_v25  ;;  %7952 = vmatprep.mubr.bf16.mxu1 %v13825_v63  ;;  %v12360_v63 = vld [vmem:[%s13458_s20 + $0x154] ss:$52 sps:$4 sm:$0xff]  }
 0x3ec   : > { %v12427_v25 = vld [vmem:[%s13458_s20 + $0x908] ss:$52 sps:$4 sm:$0xff]  }
 0x3ed   : > { %7841 = vmatpush1.bf16.msra.mxu0 %v12343_v29  ;;  %v13964_v26 = vld [vmem:[#allocation2 + $0x10] ss:$28 sps:$4 sm:$0xff]  }
 0x3ee   : > { %7923 = vmatpush1.bf16.msra.mxu1 %v12340_v28  ;;  %7842 = vmatprep.subr.bf16.mxu0 %v12351_v32  ;;  %v12432_v28 = vld [vmem:[%s13458_s20 + $0xff4] ss:$52 sps:$4 sm:$0xff]   ;;  %v12435_v29 = vld [vmem:[%s13458_s20 + $0x8a4] ss:$52 sps:$4 sm:$0xff]   ;;  %v12438_v32 = vld [vmem:[%s13458_s20 + $0xf8c] ss:$52 sps:$4 sm:$0xff]  }
 0x3ef   : > { %7924 = vmatprep.subr.bf16.mxu1 %v12348_v31  ;;  %v12433_v31 = vld [vmem:[%s13458_s20 + $0x8a0] ss:$52 sps:$4 sm:$0xff]  }
 0x3f1   : > { %7843 = vmatpush1.bf16.msra.mxu0 %v12349_v34  ;;  %v12436_v34 = vld [vmem:[%s13458_s20 + $0xf88] ss:$52 sps:$4 sm:$0xff]  }
 0x3f2   : > { %7925 = vmatpush1.bf16.msra.mxu1 %v12346_v33  ;;  %7844 = vmatprep.subr.bf16.mxu0 %v12357_v36  ;;  %v12441_v33 = vld [vmem:[%s13458_s20 + $0x83c] ss:$52 sps:$4 sm:$0xff]   ;;  %v12444_v36 = vld [vmem:[%s13458_s20 + $0xf24] ss:$52 sps:$4 sm:$0xff]  }
 0x3f3   : > { %7926 = vmatprep.subr.bf16.mxu1 %v12354_v35  ;;  %v12439_v35 = vld [vmem:[%s13458_s20 + $0x838] ss:$52 sps:$4 sm:$0xff]  }
 0x3f5   : > { %7845 = vmatpush1.bf16.msra.mxu0 %v12355_v40  ;;  %v12450_v40 = vld [vmem:[%s13458_s20 + $0xebc] ss:$52 sps:$4 sm:$0xff]  }
 0x3f6   : > { %7927 = vmatpush1.bf16.msra.mxu1 %v12352_v39  ;;  %7846 = vmatprep.subr.bf16.mxu0 %v12363_v41  ;;  %v12442_v39 = vld [vmem:[%s13458_s20 + $0xf20] ss:$52 sps:$4 sm:$0xff]   ;;  %v12448_v41 = vld [vmem:[%s13458_s20 + $0xeb8] ss:$52 sps:$4 sm:$0xff]  }
 0x3f7   : > { %7928 = vmatprep.subr.bf16.mxu1 %v12360_v63  ;;  %v12453_v63 = vld [vmem:[%s13458_s20 + $0x76c] ss:$52 sps:$4 sm:$0xff]  }
 0x3f9   : > { %7847 = vmatpush1.bf16.msra.mxu0 %v12361_v42  ;;  %v12459_v42 = vld [vmem:[%s13458_s20 + $0x704] ss:$52 sps:$4 sm:$0xff]  }
 0x3fa   : > { %7929 = vmatpush1.bf16.msra.mxu1 %v12358_v44  ;;  %7848 = vmatprep.subr.bf16.mxu0 %v12369_v37  ;;  %v12451_v44 = vld [vmem:[%s13458_s20 + $0x768] ss:$52 sps:$4 sm:$0xff]   ;;  %v12457_v37 = vld [vmem:[%s13458_s20 + $0x700] ss:$52 sps:$4 sm:$0xff]  }
 0x3fb   : > { %7930 = vmatprep.subr.bf16.mxu1 %v12366_v45  ;;  %v12454_v45 = vld [vmem:[%s13458_s20 + $0xe50] ss:$52 sps:$4 sm:$0xff]  }
 0x3fd   : > { %7849 = vmatpush1.bf16.msra.mxu0 %v12367_v48  ;;  %v12465_v48 = vld [vmem:[%s13458_s20 + $0x69c] ss:$52 sps:$4 sm:$0xff]  }
 0x3fe   : > { %7931 = vmatpush1.bf16.msra.mxu1 %v12364_v46  ;;  %7850 = vmatprep.subr.bf16.mxu0 %v12375_v47  ;;  %v12462_v46 = vld [vmem:[%s13458_s20 + $0xdec] ss:$52 sps:$4 sm:$0xff]  }
 0x3ff   : > { %7932 = vmatprep.subr.bf16.mxu1 %v12372_v49  ;;  %v12460_v49 = vld [vmem:[%s13458_s20 + $0xde8] ss:$52 sps:$4 sm:$0xff]   ;;  %v12463_v47 = vld [vmem:[%s13458_s20 + $0x698] ss:$52 sps:$4 sm:$0xff]  }
 0x401   : > { %7851 = vmatpush2.bf16.msra.mxu0 %v12373_v51  ;;  %v12471_v51 = vld [vmem:[%s13458_s20 + $0xcb4] ss:$52 sps:$4 sm:$0xff]  }
 0x402   : > { %7933 = vmatpush1.bf16.msra.mxu1 %v12370_v50  ;;  %7852 = vmatprep.subr.bf16.mxu0 %v12381_v55  ;;  %v12468_v50 = vld [vmem:[%s13458_s20 + $0xd84] ss:$52 sps:$4 sm:$0xff]  }
 0x403   : > { %7934 = vmatprep.subr.bf16.mxu1 %v12378_v52  ;;  %v12466_v52 = vld [vmem:[%s13458_s20 + $0xd80] ss:$52 sps:$4 sm:$0xff]   ;;  %v12469_v55 = vld [vmem:[%s13458_s20 + $0xcb0] ss:$52 sps:$4 sm:$0xff]  }
 0x405   : > { %7853 = vmatpush2.bf16.msra.mxu0 %v12379_v57  ;;  %v12477_v57 = vld [vmem:[%s13458_s20 + $0xc4c] ss:$52 sps:$4 sm:$0xff]  }
 0x406   : > { %7935 = vmatpush1.bf16.msra.mxu1 %v12376_v56  ;;  %7854 = vmatprep.subr.bf16.mxu0 %v12387_v59  ;;  %v12474_v56 = vld [vmem:[%s13458_s20 + $0xd1c] ss:$52 sps:$4 sm:$0xff]  }
 0x407   : > { %7936 = vmatprep.subr.bf16.mxu1 %v12384_v58  ;;  %v12472_v58 = vld [vmem:[%s13458_s20 + $0xd18] ss:$52 sps:$4 sm:$0xff]   ;;  %v12475_v59 = vld [vmem:[%s13458_s20 + $0xc48] ss:$52 sps:$4 sm:$0xff]  }
 0x409   : > { %7855 = vmatpush2.bf16.msra.mxu0 %v12385_v61  ;;  %v12483_v61 = vld [vmem:[%s13458_s20 + $0xbe4] ss:$52 sps:$4 sm:$0xff]  }
 0x40a   : > { %7937 = vmatpush2.bf16.msra.mxu1 %v12382_v60  ;;  %7856 = vmatprep.subr.bf16.mxu0 %v12393_v1  ;;  %v12480_v60 = vld [vmem:[%s13458_s20 + $0x1334] ss:$52 sps:$4 sm:$0xff]  }
 0x40b   : > { %7938 = vmatprep.subr.bf16.mxu1 %v12390_v62  ;;  %v12478_v62 = vld [vmem:[%s13458_s20 + $0x1330] ss:$52 sps:$4 sm:$0xff]   ;;  %v12481_v1 = vld [vmem:[%s13458_s20 + $0xbe0] ss:$52 sps:$4 sm:$0xff]  }
 0x40d   : > { %7857 = vmatpush2.bf16.msra.mxu0 %v12391_v3  ;;  %v12489_v3 = vld [vmem:[%s13458_s20 + $0xb7c] ss:$52 sps:$4 sm:$0xff]  }
 0x40e   : > { %7939 = vmatpush2.bf16.msra.mxu1 %v12388_v2  ;;  %7858 = vmatprep.subr.bf16.mxu0 %v12399_v12  ;;  %v12486_v2 = vld [vmem:[%s13458_s20 + $0x12cc] ss:$52 sps:$4 sm:$0xff]  }
 0x40f   : > { %7940 = vmatprep.subr.bf16.mxu1 %v12396_v4  ;;  %v12484_v4 = vld [vmem:[%s13458_s20 + $0x12c8] ss:$52 sps:$4 sm:$0xff]   ;;  %v12487_v12 = vld [vmem:[%s13458_s20 + $0xb78] ss:$52 sps:$4 sm:$0xff]  }
 0x411   : > { %7859 = vmatpush2.bf16.msra.mxu0 %v12397_v8  ;;  %v12495_v8 = vld [vmem:[%s13458_s20 + $0xb14] ss:$52 sps:$4 sm:$0xff]  }
 0x412   : > { %7941 = vmatpush2.bf16.msra.mxu1 %v12394_v6  ;;  %7860 = vmatprep.subr.bf16.mxu0 %v12405_v9  ;;  %v12492_v6 = vld [vmem:[%s13458_s20 + $0x1264] ss:$52 sps:$4 sm:$0xff]  }
 0x413   : > { %7942 = vmatprep.subr.bf16.mxu1 %v12402_v38  ;;  %v12490_v38 = vld [vmem:[%s13458_s20 + $0x1260] ss:$52 sps:$4 sm:$0xff]   ;;  %v12493_v9 = vld [vmem:[%s13458_s20 + $0xb10] ss:$52 sps:$4 sm:$0xff]  }
 0x415   : > { %7861 = vmatpush2.bf16.msra.mxu0 %v12403_v10  ;;  %v12501_v10 = vld [vmem:[%s13458_s20 + $0xaac] ss:$52 sps:$4 sm:$0xff]  }
 0x416   : > { %7943 = vmatpush2.bf16.msra.mxu1 %v12400_v27  ;;  %7862 = vmatprep.subr.bf16.mxu0 %v12411_v23  ;;  %v12498_v27 = vld [vmem:[%s13458_s20 + $0x11fc] ss:$52 sps:$4 sm:$0xff]  }
 0x417   : > { %7944 = vmatprep.subr.bf16.mxu1 %v12408_v11  ;;  %v12496_v11 = vld [vmem:[%s13458_s20 + $0x11f8] ss:$52 sps:$4 sm:$0xff]   ;;  %v12499_v23 = vld [vmem:[%s13458_s20 + $0xaa8] ss:$52 sps:$4 sm:$0xff]  }
 0x419   : > { %7863 = vmatpush2.bf16.msra.mxu0 %v12409_v14  ;;  %v12507_v14 = vld [vmem:[%s13458_s20 + $0xa44] ss:$52 sps:$4 sm:$0xff]  }
 0x41a   : > { %7945 = vmatpush2.bf16.msra.mxu1 %v12406_v21  ;;  %7864 = vmatprep.subr.bf16.mxu0 %v12417_v15  ;;  %v12504_v21 = vld [vmem:[%s13458_s20 + $0x1194] ss:$52 sps:$4 sm:$0xff]  }
 0x41b   : > { %7946 = vmatprep.subr.bf16.mxu1 %v12414_v54  ;;  %v12502_v54 = vld [vmem:[%s13458_s20 + $0x1190] ss:$52 sps:$4 sm:$0xff]   ;;  %v12505_v15 = vld [vmem:[%s13458_s20 + $0xa40] ss:$52 sps:$4 sm:$0xff]  }
 0x41d   : > { %7865 = vmatpush2.bf16.msra.mxu0 %v12415_v0  ;;  %v12513_v0 = vld [vmem:[%s13458_s20 + $0x9dc] ss:$52 sps:$4 sm:$0xff]  }
 0x41e   : > { %7947 = vmatpush2.bf16.msra.mxu1 %v12412_v43  ;;  %7963 = vmatprep.subr.bf16.mxu0 %v12423_v17  ;;  %v12510_v43 = vld [vmem:[%s13458_s20 + $0x112c] ss:$52 sps:$4 sm:$0xff]  }
 0x41f   : > { %7948 = vmatprep.subr.bf16.mxu1 %v12420_v16  ;;  %v12508_v16 = vld [vmem:[%s13458_s20 + $0x1128] ss:$52 sps:$4 sm:$0xff]   ;;  %v12511_v17 = vld [vmem:[%s13458_s20 + $0x9d8] ss:$52 sps:$4 sm:$0xff]  }
 0x420   : > { %7867 = vmatmul.mubr.bf16.vlgmr.msra.gmra.mxu0 %v13964_v26 }
 0x421   : > { %7964 = vmatpush1.bf16.msra.mxu0 %v12421_v19  ;;  %7995 = vmatprep.mubr.bf16.mxu0 %v13828_v5  ;;  %v12447_v5 = vld [vmem:[%s13458_s20 + $0x7d4] ss:$52 sps:$4 sm:$0xff]   ;;  %v12519_v19 = vld [vmem:[%s13458_s20 + $0x139c] ss:$52 sps:$4 sm:$0xff]  }
 0x422   : > { %7949 = vmatpush2.bf16.msra.mxu1 %v12418_v7  ;;  %7965 = vmatprep.subr.bf16.mxu0 %v12429_v22  ;;  %v12516_v7 = vld [vmem:[%s13458_s20 + $0x10c4] ss:$52 sps:$4 sm:$0xff]  }
 0x423   : > { %7950 = vmatprep.subr.bf16.mxu1 %v12426_v20  ;;  %v12514_v20 = vld [vmem:[%s13458_s20 + $0x10c0] ss:$52 sps:$4 sm:$0xff]   ;;  %v12517_v22 = vld [vmem:[%s13458_s20 + $0x1398] ss:$52 sps:$4 sm:$0xff]  }
 0x425   : > { %7966 = vmatpush1.bf16.msra.mxu0 %v12427_v25  ;;  %v12525_v25 = vld [vmem:[%s13458_s20 + $0x2fc] ss:$52 sps:$4 sm:$0xff]  }
 0x426   : > { %7951 = vmatpush2.bf16.msra.mxu1 %v12424_v24  ;;  %7967 = vmatprep.subr.bf16.mxu0 %v12435_v29  ;;  %v12522_v24 = vld [vmem:[%s13458_s20 + $0x105c] ss:$52 sps:$4 sm:$0xff]  }
 0x427   : > { %8006 = vmatprep.subr.bf16.mxu1 %v12432_v28  ;;  %v12520_v28 = vld [vmem:[%s13458_s20 + $0x1058] ss:$52 sps:$4 sm:$0xff]  }
 0x428   : > { %v14033_v29 = vld [vmem:[#allocation2 + $0x8] ss:$28 sps:$4 sm:$0xff]  }
 0x429   : > { %7953 = vmatmul.mubr.bf16.vlgmr.msra.gmra.mxu1 %v13891_v18  ;;  %7968 = vmatpush1.bf16.msra.mxu0 %v12433_v31  ;;  %v12445_v18 = vld [vmem:[%s13458_s20 + $0x7d0] ss:$52 sps:$4 sm:$0xff]   ;;  %v12523_v31 = vld [vmem:[%s13458_s20 + $0x2f8] ss:$52 sps:$4 sm:$0xff]  }
 0x42a   : > { %8007 = vmatpush1.bf16.msra.mxu1 %v12430_v30  ;;  %7969 = vmatprep.subr.bf16.mxu0 %v12441_v33  ;;  %v12528_v30 = vld [vmem:[%s13458_s20 + $0x97c] ss:$52 sps:$4 sm:$0xff]   ;;  %v12531_v33 = vld [vmem:[%s13458_s20 + $0x294] ss:$52 sps:$4 sm:$0xff]  }
 0x42b   : > { %8008 = vmatprep.subr.bf16.mxu1 %v12438_v32  ;;  %8038 = vmatprep.mubr.bf16.mxu1 %v13899_v53  ;;  %v12456_v53 = vld [vmem:[%s13458_s20 + $0xe54] ss:$52 sps:$4 sm:$0xff]   ;;  %v12526_v32 = vld [vmem:[%s13458_s20 + $0x978] ss:$52 sps:$4 sm:$0xff]  }
 0x42d   : > { %7970 = vmatpush1.bf16.msra.mxu0 %v12439_v35  ;;  %v12529_v35 = vld [vmem:[%s13458_s20 + $0x290] ss:$52 sps:$4 sm:$0xff]  }
 0x42e   : > { %8009 = vmatpush1.bf16.msra.mxu1 %v12436_v34  ;;  %7971 = vmatprep.subr.bf16.mxu0 %v12447_v5  ;;  %v12534_v34 = vld [vmem:[%s13458_s20 + $0x914] ss:$52 sps:$4 sm:$0xff]   ;;  %v12532_v5 = vld [vmem:[%s13458_s20 + $0x910] ss:$52 sps:$4 sm:$0xff]  }
 0x42f   : > { %8010 = vmatprep.subr.bf16.mxu1 %v12444_v36  ;;  %v14044_v36 = vld [vmem:[#allocation2 + $0x18] ss:$28 sps:$4 sm:$0xff]  }
 0x431   : > { %7972 = vmatpush1.bf16.msra.mxu0 %v12445_v18  ;;  %v12540_v18 = vld [vmem:[%s13458_s20 + $0x8ac] ss:$52 sps:$4 sm:$0xff]  }
 0x432   : > { %8011 = vmatpush1.bf16.msra.mxu1 %v12442_v39  ;;  %7973 = vmatprep.subr.bf16.mxu0 %v12453_v63  ;;  %v12537_v39 = vld [vmem:[%s13458_s20 + $0x22c] ss:$52 sps:$4 sm:$0xff]   ;;  %v14052_v63 = vld [vmem:[#allocation2 + $0x4] ss:$28 sps:$4 sm:$0xff]  }
 0x433   : > { %8012 = vmatprep.subr.bf16.mxu1 %v12450_v40  ;;  %v12535_v40 = vld [vmem:[%s13458_s20 + $0x228] ss:$52 sps:$4 sm:$0xff]  }
 0x435   : > { %7974 = vmatpush1.bf16.msra.mxu0 %v12451_v44  ;;  %v12543_v44 = vld [vmem:[%s13458_s20 + $0x1c4] ss:$52 sps:$4 sm:$0xff]  }
 0x436   : > { %8013 = vmatpush1.bf16.msra.mxu1 %v12448_v41  ;;  %7975 = vmatprep.subr.bf16.mxu0 %v12459_v42  ;;  %v12538_v41 = vld [vmem:[%s13458_s20 + $0x8a8] ss:$52 sps:$4 sm:$0xff]   ;;  %v12541_v42 = vld [vmem:[%s13458_s20 + $0x1c0] ss:$52 sps:$4 sm:$0xff]  }
 0x437   : > { %8014 = vmatprep.subr.bf16.mxu1 %v12456_v53  ;;  %v12546_v53 = vld [vmem:[%s13458_s20 + $0x844] ss:$52 sps:$4 sm:$0xff]  }
 0x439   : > { %7976 = vmatpush1.bf16.msra.mxu0 %v12457_v37  ;;  %v12549_v37 = vld [vmem:[%s13458_s20 + $0x15c] ss:$52 sps:$4 sm:$0xff]  }
 0x43a   : > { %8015 = vmatpush1.bf16.msra.mxu1 %v12454_v45  ;;  %7977 = vmatprep.subr.bf16.mxu0 %v12465_v48  ;;  %v12544_v45 = vld [vmem:[%s13458_s20 + $0x840] ss:$52 sps:$4 sm:$0xff]   ;;  %v12547_v48 = vld [vmem:[%s13458_s20 + $0x158] ss:$52 sps:$4 sm:$0xff]  }
 0x43b   : > { %8016 = vmatprep.subr.bf16.mxu1 %v12462_v46  ;;  %v12552_v46 = vld [vmem:[%s13458_s20 + $0x7dc] ss:$52 sps:$4 sm:$0xff]  }
 0x43d   : > { %7978 = vmatpush1.bf16.msra.mxu0 %v12463_v47  ;;  %v12555_v47 = vld [vmem:[%s13458_s20 + $0xf4] ss:$52 sps:$4 sm:$0xff]  }
 0x43e   : > { %8017 = vmatpush1.bf16.msra.mxu1 %v12460_v49  ;;  %7979 = vmatprep.subr.bf16.mxu0 %v12471_v51  ;;  %v12550_v49 = vld [vmem:[%s13458_s20 + $0x7d8] ss:$52 sps:$4 sm:$0xff]   ;;  %v12553_v51 = vld [vmem:[%s13458_s20 + $0xf0] ss:$52 sps:$4 sm:$0xff]  }
 0x43f   : > { %8018 = vmatprep.subr.bf16.mxu1 %v12468_v50  ;;  %v12558_v50 = vld [vmem:[%s13458_s20 + $0x774] ss:$52 sps:$4 sm:$0xff]  }
 0x441   : > { %7980 = vmatpush2.bf16.msra.mxu0 %v12469_v55  ;;  %v12561_v55 = vld [vmem:[%s13458_s20 + $0x8c] ss:$52 sps:$4 sm:$0xff]  }
 0x442   : > { %8019 = vmatpush1.bf16.msra.mxu1 %v12466_v52  ;;  %7981 = vmatprep.subr.bf16.mxu0 %v12477_v57  ;;  %v12556_v52 = vld [vmem:[%s13458_s20 + $0x770] ss:$52 sps:$4 sm:$0xff]   ;;  %v12559_v57 = vld [vmem:[%s13458_s20 + $0x88] ss:$52 sps:$4 sm:$0xff]  }
 0x443   : > { %8020 = vmatprep.subr.bf16.mxu1 %v12474_v56  ;;  %v12564_v56 = vld [vmem:[%s13458_s20 + $0x70c] ss:$52 sps:$4 sm:$0xff]  }
 0x445   : > { %7982 = vmatpush2.bf16.msra.mxu0 %v12475_v59  ;;  %v12567_v59 = vld [vmem:[%s13458_s20 + $0x24] ss:$52 sps:$4 sm:$0xff]  }
 0x446   : > { %8021 = vmatpush1.bf16.msra.mxu1 %v12472_v58  ;;  %7983 = vmatprep.subr.bf16.mxu0 %v12483_v61  ;;  %v12562_v58 = vld [vmem:[%s13458_s20 + $0x708] ss:$52 sps:$4 sm:$0xff]   ;;  %v12565_v61 = vld [vmem:[%s13458_s20 + $0x20] ss:$52 sps:$4 sm:$0xff]  }
 0x447   : > { %8022 = vmatprep.subr.bf16.mxu1 %v12480_v60  ;;  %v12570_v60 = vld [vmem:[%s13458_s20 + $0x6a4] ss:$52 sps:$4 sm:$0xff]  }
 0x449   : > { %7984 = vmatpush2.bf16.msra.mxu0 %v12481_v1  ;;  %v12573_v1 = vld [vmem:[%s13458_s20 + $0x63c] ss:$52 sps:$4 sm:$0xff]  }
 0x44a   : > { %8023 = vmatpush2.bf16.msra.mxu1 %v12478_v62  ;;  %7985 = vmatprep.subr.bf16.mxu0 %v12489_v3  ;;  %v12568_v62 = vld [vmem:[%s13458_s20 + $0x6a0] ss:$52 sps:$4 sm:$0xff]   ;;  %v12571_v3 = vld [vmem:[%s13458_s20 + $0x638] ss:$52 sps:$4 sm:$0xff]  }
 0x44b   : > { %8024 = vmatprep.subr.bf16.mxu1 %v12486_v2  ;;  %v12576_v2 = vld [vmem:[%s13458_s20 + $0xcbc] ss:$52 sps:$4 sm:$0xff]  }
 0x44d   : > { %7986 = vmatpush2.bf16.msra.mxu0 %v12487_v12  ;;  %v12579_v12 = vld [vmem:[%s13458_s20 + $0x5d4] ss:$52 sps:$4 sm:$0xff]  }
 0x44e   : > { %8025 = vmatpush2.bf16.msra.mxu1 %v12484_v4  ;;  %7987 = vmatprep.subr.bf16.mxu0 %v12495_v8  ;;  %v12574_v4 = vld [vmem:[%s13458_s20 + $0xcb8] ss:$52 sps:$4 sm:$0xff]   ;;  %v12577_v8 = vld [vmem:[%s13458_s20 + $0x5d0] ss:$52 sps:$4 sm:$0xff]  }
 0x44f   : > { %8026 = vmatprep.subr.bf16.mxu1 %v12492_v6  ;;  %v12582_v6 = vld [vmem:[%s13458_s20 + $0xc54] ss:$52 sps:$4 sm:$0xff]  }
 0x451   : > { %7988 = vmatpush2.bf16.msra.mxu0 %v12493_v9  ;;  %v12585_v9 = vld [vmem:[%s13458_s20 + $0x56c] ss:$52 sps:$4 sm:$0xff]  }
 0x452   : > { %8027 = vmatpush2.bf16.msra.mxu1 %v12490_v38  ;;  %7989 = vmatprep.subr.bf16.mxu0 %v12501_v10  ;;  %v12580_v38 = vld [vmem:[%s13458_s20 + $0xc50] ss:$52 sps:$4 sm:$0xff]   ;;  %v12583_v10 = vld [vmem:[%s13458_s20 + $0x568] ss:$52 sps:$4 sm:$0xff]  }
 0x453   : > { %8028 = vmatprep.subr.bf16.mxu1 %v12498_v27  ;;  %v12588_v27 = vld [vmem:[%s13458_s20 + $0xbec] ss:$52 sps:$4 sm:$0xff]  }
 0x455   : > { %7990 = vmatpush2.bf16.msra.mxu0 %v12499_v23  ;;  %v12591_v23 = vld [vmem:[%s13458_s20 + $0x504] ss:$52 sps:$4 sm:$0xff]  }
 0x456   : > { %8029 = vmatpush2.bf16.msra.mxu1 %v12496_v11  ;;  %7991 = vmatprep.subr.bf16.mxu0 %v12507_v14  ;;  %v12586_v11 = vld [vmem:[%s13458_s20 + $0xbe8] ss:$52 sps:$4 sm:$0xff]   ;;  %v12589_v14 = vld [vmem:[%s13458_s20 + $0x500] ss:$52 sps:$4 sm:$0xff]  }
 0x457   : > { %8030 = vmatprep.subr.bf16.mxu1 %v12504_v21  ;;  %v12594_v21 = vld [vmem:[%s13458_s20 + $0xb84] ss:$52 sps:$4 sm:$0xff]  }
 0x459   : > { %7992 = vmatpush2.bf16.msra.mxu0 %v12505_v15  ;;  %v12597_v15 = vld [vmem:[%s13458_s20 + $0x49c] ss:$52 sps:$4 sm:$0xff]  }
 0x45a   : > { %8031 = vmatpush2.bf16.msra.mxu1 %v12502_v54  ;;  %7993 = vmatprep.subr.bf16.mxu0 %v12513_v0  ;;  %v12592_v54 = vld [vmem:[%s13458_s20 + $0xb80] ss:$52 sps:$4 sm:$0xff]   ;;  %v12595_v0 = vld [vmem:[%s13458_s20 + $0x498] ss:$52 sps:$4 sm:$0xff]  }
 0x45b   : > { %8032 = vmatprep.subr.bf16.mxu1 %v12510_v43  ;;  %v12600_v43 = vld [vmem:[%s13458_s20 + $0xb1c] ss:$52 sps:$4 sm:$0xff]  }
 0x45d   : > { %7994 = vmatpush2.bf16.msra.mxu0 %v12511_v17  ;;  %v12603_v17 = vld [vmem:[%s13458_s20 + $0x434] ss:$52 sps:$4 sm:$0xff]  }
 0x45e   : > { %8033 = vmatpush2.bf16.msra.mxu1 %v12508_v16  ;;  %8063 = vmatprep.subr.bf16.mxu0 %v12519_v19  ;;  %v12598_v16 = vld [vmem:[%s13458_s20 + $0xb18] ss:$52 sps:$4 sm:$0xff]   ;;  %v12601_v19 = vld [vmem:[%s13458_s20 + $0x430] ss:$52 sps:$4 sm:$0xff]  }
 0x45f   : > { %8034 = vmatprep.subr.bf16.mxu1 %v12516_v7  ;;  %v12606_v7 = vld [vmem:[%s13458_s20 + $0xab4] ss:$52 sps:$4 sm:$0xff]  }
 0x460   : > { %7996 = vmatmul.mubr.bf16.vlgmr.msra.gmra.mxu0 %v14033_v29 }
 0x461   : > { %8064 = vmatpush1.bf16.msra.mxu0 %v12517_v22  ;;  %8081 = vmatprep.mubr.bf16.mxu0 %v13214_v13  ;;  %v12609_v22 = vld [vmem:[%s13458_s20 + $0x3cc] ss:$52 sps:$4 sm:$0xff]  }
 0x462   : > { %8035 = vmatpush2.bf16.msra.mxu1 %v12514_v20  ;;  %8092 = vmatprep.subr.bf16.mxu0 %v12525_v25  ;;  %v12604_v20 = vld [vmem:[%s13458_s20 + $0xab0] ss:$52 sps:$4 sm:$0xff]   ;;  %v12607_v25 = vld [vmem:[%s13458_s20 + $0x3c8] ss:$52 sps:$4 sm:$0xff]  }
 0x463   : > { %8036 = vmatprep.subr.bf16.mxu1 %v12522_v24  ;;  %v12612_v24 = vld [vmem:[%s13458_s20 + $0xa4c] ss:$52 sps:$4 sm:$0xff]  }
 0x466   : > { %8037 = vmatpush2.bf16.msra.mxu1 %v12520_v28  ;;  %v12610_v28 = vld [vmem:[%s13458_s20 + $0xa48] ss:$52 sps:$4 sm:$0xff]  }
 0x467   : > { %8135 = vmatprep.subr.bf16.mxu1 %v12528_v30  ;;  %v12615_v30 = vld [vmem:[%s13458_s20 + $0x364] ss:$52 sps:$4 sm:$0xff]  }
 0x468   : > { %10904 = vmatmul.mubr.msk.bf16.vlgmr.msra.gmra.mxu0 %vm7400_vm3, %v14044_v36 }
 0x469   : > { %8039 = vmatmul.mubr.bf16.vlgmr.msra.gmra.mxu1 %v13964_v26  ;;  %8093 = vmatpush1.bf16.msra.mxu0 %v12523_v31  ;;  %v14055_v26 = vld [vmem:[#allocation2 + $0xc] ss:$28 sps:$4 sm:$0xff]  }
 0x46a   : > { %8136 = vmatpush1.bf16.msra.mxu1 %v12526_v32  ;;  %8094 = vmatprep.subr.bf16.mxu0 %v12531_v33  ;;  %v12618_v31 = vld [vmem:[%s13458_s20 + $0x9e4] ss:$52 sps:$4 sm:$0xff]   ;;  %v12613_v32 = vld [vmem:[%s13458_s20 + $0x360] ss:$52 sps:$4 sm:$0xff]  }
 0x46b   : > { %8137 = vmatprep.subr.bf16.mxu1 %v12534_v34  ;;  %8124 = vmatprep.mubr.bf16.mxu0 %v14052_v63  ;;  %v12616_v33 = vld [vmem:[%s13458_s20 + $0x9e0] ss:$52 sps:$4 sm:$0xff]   ;;  %v12621_v34 = vld [vmem:[%s13458_s20 + $0xffc] ss:$52 sps:$4 sm:$0xff]  }
 0x46c   : > { %8167 = vmatprep.mubr.bf16.mxu1 %v14055_v26 }
 0x46d   : > { %8095 = vmatpush1.bf16.msra.mxu0 %v12529_v35  ;;  %v12624_v35 = vld [vmem:[%s13458_s20 + $0x13a4] ss:$52 sps:$4 sm:$0xff]  }
 0x46e   : > { %8138 = vmatpush1.bf16.msra.mxu1 %v12532_v5  ;;  %8096 = vmatprep.subr.bf16.mxu0 %v12537_v39  ;;  %v12619_v5 = vld [vmem:[%s13458_s20 + $0xff8] ss:$52 sps:$4 sm:$0xff]   ;;  %v12622_v39 = vld [vmem:[%s13458_s20 + $0x13a0] ss:$52 sps:$4 sm:$0xff]  }
 0x46f   : > { %8139 = vmatprep.subr.bf16.mxu1 %v12540_v18  ;;  %v12627_v18 = vld [vmem:[%s13458_s20 + $0xf94] ss:$52 sps:$4 sm:$0xff]  }
 0x471   : > { %8097 = vmatpush1.bf16.msra.mxu0 %v12535_v40  ;;  %v12630_v40 = vld [vmem:[%s13458_s20 + $0x304] ss:$52 sps:$4 sm:$0xff]  }
 0x472   : > { %8140 = vmatpush1.bf16.msra.mxu1 %v12538_v41  ;;  %8098 = vmatprep.subr.bf16.mxu0 %v12543_v44  ;;  %v14117_v41 = vld [vmem:[#allocation2] ss:$28 sps:$4 sm:$0xff]  }
 0x473   : > { %8141 = vmatprep.subr.bf16.mxu1 %v12546_v53  ;;  %v12625_v44 = vld [vmem:[%s13458_s20 + $0xf90] ss:$52 sps:$4 sm:$0xff]   ;;  %v12633_v53 = vld [vmem:[%s13458_s20 + $0xf2c] ss:$52 sps:$4 sm:$0xff]  }
 0x475   : > { %8099 = vmatpush1.bf16.msra.mxu0 %v12541_v42  ;;  %v12628_v42 = vld [vmem:[%s13458_s20 + $0x300] ss:$52 sps:$4 sm:$0xff]  }
 0x476   : > { %8142 = vmatpush1.bf16.msra.mxu1 %v12544_v45  ;;  %8100 = vmatprep.subr.bf16.mxu0 %v12549_v37  ;;  %v12631_v45 = vld [vmem:[%s13458_s20 + $0xf28] ss:$52 sps:$4 sm:$0xff]  }
 0x477   : > { %8143 = vmatprep.subr.bf16.mxu1 %v12552_v46  ;;  %v14126_v37 = vld [vmem:[#allocation2 + $0x14] ss:$28 sps:$4 sm:$0xff]  }
 0x478   : > { %v12639_v46 = vld [vmem:[%s13458_s20 + $0xec4] ss:$52 sps:$4 sm:$0xff]  }
 0x479   : > { %8101 = vmatpush1.bf16.msra.mxu0 %v12547_v48  ;;  %v12634_v48 = vld [vmem:[%s13458_s20 + $0x298] ss:$52 sps:$4 sm:$0xff]  }
 0x47a   : > { %8144 = vmatpush1.bf16.msra.mxu1 %v12550_v49  ;;  %8102 = vmatprep.subr.bf16.mxu0 %v12555_v47  ;;  %v12637_v49 = vld [vmem:[%s13458_s20 + $0xec0] ss:$52 sps:$4 sm:$0xff]  }
 0x47b   : > { %8145 = vmatprep.subr.bf16.mxu1 %v12558_v50  ;;  %v12642_v47 = vld [vmem:[%s13458_s20 + $0x234] ss:$52 sps:$4 sm:$0xff]   ;;  %v12645_v50 = vld [vmem:[%s13458_s20 + $0xe5c] ss:$52 sps:$4 sm:$0xff]  }
 0x47d   : > { %8103 = vmatpush1.bf16.msra.mxu0 %v12553_v51  ;;  %v12640_v51 = vld [vmem:[%s13458_s20 + $0x230] ss:$52 sps:$4 sm:$0xff]  }
 0x47e   : > { %8146 = vmatpush1.bf16.msra.mxu1 %v12556_v52  ;;  %8104 = vmatprep.subr.bf16.mxu0 %v12561_v55  ;;  %v12643_v52 = vld [vmem:[%s13458_s20 + $0xe58] ss:$52 sps:$4 sm:$0xff]   ;;  %v12651_v55 = vld [vmem:[%s13458_s20 + $0xdf4] ss:$52 sps:$4 sm:$0xff]  }
 0x47f   : > { %8147 = vmatprep.subr.bf16.mxu1 %v12564_v56  ;;  %v12646_v56 = vld [vmem:[%s13458_s20 + $0x1c8] ss:$52 sps:$4 sm:$0xff]  }
 0x481   : > { %8105 = vmatpush1.bf16.msra.mxu0 %v12559_v57  ;;  %v12649_v57 = vld [vmem:[%s13458_s20 + $0xdf0] ss:$52 sps:$4 sm:$0xff]  }
 0x482   : > { %8148 = vmatpush1.bf16.msra.mxu1 %v12562_v58  ;;  %8106 = vmatprep.subr.bf16.mxu0 %v12567_v59  ;;  %v12657_v58 = vld [vmem:[%s13458_s20 + $0xd8c] ss:$52 sps:$4 sm:$0xff]  }
 0x483   : > { %8149 = vmatprep.subr.bf16.mxu1 %v12570_v60  ;;  %v12652_v59 = vld [vmem:[%s13458_s20 + $0x160] ss:$52 sps:$4 sm:$0xff]   ;;  %v12655_v60 = vld [vmem:[%s13458_s20 + $0xd88] ss:$52 sps:$4 sm:$0xff]  }
 0x485   : > { %8107 = vmatpush1.bf16.msra.mxu0 %v12565_v61  ;;  %v12660_v61 = vld [vmem:[%s13458_s20 + $0xfc] ss:$52 sps:$4 sm:$0xff]  }
 0x486   : > { %8150 = vmatpush1.bf16.msra.mxu1 %v12568_v62  ;;  %8108 = vmatprep.subr.bf16.mxu0 %v12573_v1  ;;  %v12663_v62 = vld [vmem:[%s13458_s20 + $0xd24] ss:$52 sps:$4 sm:$0xff]  }
 0x487   : > { %8151 = vmatprep.subr.bf16.mxu1 %v12576_v2  ;;  %v12658_v1 = vld [vmem:[%s13458_s20 + $0xf8] ss:$52 sps:$4 sm:$0xff]   ;;  %v12661_v2 = vld [vmem:[%s13458_s20 + $0xd20] ss:$52 sps:$4 sm:$0xff]  }
 0x489   : > { %8109 = vmatpush2.bf16.msra.mxu0 %v12571_v3  ;;  %v12666_v3 = vld [vmem:[%s13458_s20 + $0x94] ss:$52 sps:$4 sm:$0xff]  }
 0x48a   : > { %8152 = vmatpush2.bf16.msra.mxu1 %v12574_v4  ;;  %8110 = vmatprep.subr.bf16.mxu0 %v12579_v12  ;;  %v12669_v4 = vld [vmem:[%s13458_s20 + $0x133c] ss:$52 sps:$4 sm:$0xff]  }
 0x48b   : > { %8153 = vmatprep.subr.bf16.mxu1 %v12582_v6  ;;  %v12664_v12 = vld [vmem:[%s13458_s20 + $0x90] ss:$52 sps:$4 sm:$0xff]   ;;  %v12667_v6 = vld [vmem:[%s13458_s20 + $0x1338] ss:$52 sps:$4 sm:$0xff]  }
 0x48d   : > { %8111 = vmatpush2.bf16.msra.mxu0 %v12577_v8  ;;  %v12672_v8 = vld [vmem:[%s13458_s20 + $0x2c] ss:$52 sps:$4 sm:$0xff]  }
 0x48e   : > { %8154 = vmatpush2.bf16.msra.mxu1 %v12580_v38  ;;  %8112 = vmatprep.subr.bf16.mxu0 %v12585_v9  ;;  %v12675_v38 = vld [vmem:[%s13458_s20 + $0x12d4] ss:$52 sps:$4 sm:$0xff]  }
 0x48f   : > { %8155 = vmatprep.subr.bf16.mxu1 %v12588_v27  ;;  %v12670_v9 = vld [vmem:[%s13458_s20 + $0x28] ss:$52 sps:$4 sm:$0xff]   ;;  %v12673_v27 = vld [vmem:[%s13458_s20 + $0x12d0] ss:$52 sps:$4 sm:$0xff]  }
 0x491   : > { %8113 = vmatpush2.bf16.msra.mxu0 %v12583_v10  ;;  %v12678_v10 = vld [vmem:[%s13458_s20 + $0x644] ss:$52 sps:$4 sm:$0xff]  }
 0x492   : > { %8156 = vmatpush2.bf16.msra.mxu1 %v12586_v11  ;;  %8114 = vmatprep.subr.bf16.mxu0 %v12591_v23  ;;  %v12681_v11 = vld [vmem:[%s13458_s20 + $0x126c] ss:$52 sps:$4 sm:$0xff]  }
 0x493   : > { %8157 = vmatprep.subr.bf16.mxu1 %v12594_v21  ;;  %v12676_v23 = vld [vmem:[%s13458_s20 + $0x640] ss:$52 sps:$4 sm:$0xff]   ;;  %v12679_v21 = vld [vmem:[%s13458_s20 + $0x1268] ss:$52 sps:$4 sm:$0xff]  }
 0x495   : > { %8115 = vmatpush2.bf16.msra.mxu0 %v12589_v14  ;;  %v12684_v14 = vld [vmem:[%s13458_s20 + $0x5dc] ss:$52 sps:$4 sm:$0xff]  }
 0x496   : > { %8158 = vmatpush2.bf16.msra.mxu1 %v12592_v54  ;;  %8116 = vmatprep.subr.bf16.mxu0 %v12597_v15  ;;  %v12687_v54 = vld [vmem:[%s13458_s20 + $0x1204] ss:$52 sps:$4 sm:$0xff]  }
 0x497   : > { %8159 = vmatprep.subr.bf16.mxu1 %v12600_v43  ;;  %v12682_v15 = vld [vmem:[%s13458_s20 + $0x5d8] ss:$52 sps:$4 sm:$0xff]   ;;  %v12685_v43 = vld [vmem:[%s13458_s20 + $0x1200] ss:$52 sps:$4 sm:$0xff]  }
 0x499   : > { %8117 = vmatpush2.bf16.msra.mxu0 %v12595_v0  ;;  %v12690_v0 = vld [vmem:[%s13458_s20 + $0x574] ss:$52 sps:$4 sm:$0xff]  }
 0x49a   : > { %8160 = vmatpush2.bf16.msra.mxu1 %v12598_v16  ;;  %8118 = vmatprep.subr.bf16.mxu0 %v12603_v17  ;;  %v12693_v16 = vld [vmem:[%s13458_s20 + $0x119c] ss:$52 sps:$4 sm:$0xff]  }
 0x49b   : > { %8161 = vmatprep.subr.bf16.mxu1 %v12606_v7  ;;  %v12688_v17 = vld [vmem:[%s13458_s20 + $0x570] ss:$52 sps:$4 sm:$0xff]   ;;  %v12691_v7 = vld [vmem:[%s13458_s20 + $0x1198] ss:$52 sps:$4 sm:$0xff]  }
 0x49d   : > { %8119 = vmatpush2.bf16.msra.mxu0 %v12601_v19  ;;  %v12696_v19 = vld [vmem:[%s13458_s20 + $0x50c] ss:$52 sps:$4 sm:$0xff]  }
 0x49e   : > { %8162 = vmatpush2.bf16.msra.mxu1 %v12604_v20  ;;  %8120 = vmatprep.subr.bf16.mxu0 %v12609_v22  ;;  %v12699_v20 = vld [vmem:[%s13458_s20 + $0x1134] ss:$52 sps:$4 sm:$0xff]  }
 0x49f   : > { %8163 = vmatprep.subr.bf16.mxu1 %v12612_v24  ;;  %v12694_v22 = vld [vmem:[%s13458_s20 + $0x508] ss:$52 sps:$4 sm:$0xff]   ;;  %v12697_v24 = vld [vmem:[%s13458_s20 + $0x1130] ss:$52 sps:$4 sm:$0xff]  }
 0x4a1   : > { %8121 = vmatpush2.bf16.msra.mxu0 %v12607_v25  ;;  %v12702_v25 = vld [vmem:[%s13458_s20 + $0x4a4] ss:$52 sps:$4 sm:$0xff]  }
 0x4a2   : > { %8164 = vmatpush2.bf16.msra.mxu1 %v12610_v28  ;;  %8122 = vmatprep.subr.bf16.mxu0 %v12615_v30  ;;  %v12705_v28 = vld [vmem:[%s13458_s20 + $0x10cc] ss:$52 sps:$4 sm:$0xff]  }
 0x4a3   : > { %8165 = vmatprep.subr.bf16.mxu1 %v12618_v31  ;;  %v12700_v30 = vld [vmem:[%s13458_s20 + $0x4a0] ss:$52 sps:$4 sm:$0xff]   ;;  %v12703_v31 = vld [vmem:[%s13458_s20 + $0x10c8] ss:$52 sps:$4 sm:$0xff]  }
 0x4a5   : > { %8123 = vmatpush2.bf16.msra.mxu0 %v12613_v32  ;;  %v12708_v32 = vld [vmem:[%s13458_s20 + $0x43c] ss:$52 sps:$4 sm:$0xff]  }
 0x4a6   : > { %8166 = vmatpush2.bf16.msra.mxu1 %v12616_v33  ;;  %8178 = vmatprep.subr.bf16.mxu0 %v12621_v34  ;;  %v12711_v33 = vld [vmem:[%s13458_s20 + $0x1064] ss:$52 sps:$4 sm:$0xff]  }
 0x4a7   : > { %8235 = vmatprep.subr.bf16.mxu1 %v12624_v35  ;;  %v12706_v34 = vld [vmem:[%s13458_s20 + $0x438] ss:$52 sps:$4 sm:$0xff]   ;;  %v12709_v35 = vld [vmem:[%s13458_s20 + $0x1060] ss:$52 sps:$4 sm:$0xff]  }
 0x4a8   : > { %8125 = vmatmul.mubr.bf16.vlgmr.msra.gmra.mxu0 %v14117_v41 }
 0x4a9   : > { %8168 = vmatmul.mubr.bf16.vlgmr.msra.gmra.mxu1 %v14033_v29  ;;  %8179 = vmatpush1.bf16.msra.mxu0 %v12619_v5  ;;  %v12636_v29 = vld [vmem:[%s13458_s20 + $0x29c] ss:$52 sps:$4 sm:$0xff]   ;;  %v12714_v5 = vld [vmem:[%s13458_s20 + $0x3d4] ss:$52 sps:$4 sm:$0xff]  }
 0x4aa   : > { %8236 = vmatpush1.bf16.msra.mxu1 %v12622_v39  ;;  %8180 = vmatprep.subr.bf16.mxu0 %v12627_v18  ;;  %v12717_v39 = vld [vmem:[%s13458_s20 + $0x984] ss:$52 sps:$4 sm:$0xff]  }
 0x4ab   : > { %8253 = vmatprep.mubr.bf16.mxu1 %v13214_v13  ;;  %8264 = vmatprep.subr.bf16.mxu1 %v12630_v40  ;;  %v12712_v18 = vld [vmem:[%s13458_s20 + $0x3d0] ss:$52 sps:$4 sm:$0xff]   ;;  %v12715_v40 = vld [vmem:[%s13458_s20 + $0x980] ss:$52 sps:$4 sm:$0xff]  }
 0x4ac   : > { %8210 = vmatprep.mubr.bf16.mxu0 %v14126_v37 }
 0x4ad   : > { %8181 = vmatpush1.bf16.msra.mxu0 %v12625_v44  ;;  %v12720_v44 = vld [vmem:[%s13458_s20 + $0x36c] ss:$52 sps:$4 sm:$0xff]  }
 0x4ae   : > { %8182 = vmatprep.subr.bf16.mxu0 %v12633_v53  ;;  %v12723_v53 = vld [vmem:[%s13458_s20 + $0x91c] ss:$52 sps:$4 sm:$0xff]  }
 0x4b1   : > { %10905 = vmatmul.mubr.msk.bf16.vlgmr.msra.gmra.mxu1 %vm7400_vm3, %v14044_v36  ;;  %8183 = vmatpush1.bf16.msra.mxu0 %v12631_v45  ;;  %v12648_v36 = vld [vmem:[%s13458_s20 + $0x1cc] ss:$52 sps:$4 sm:$0xff]   ;;  %v12718_v45 = vld [vmem:[%s13458_s20 + $0x368] ss:$52 sps:$4 sm:$0xff]  }
 0x4b2   : > { %8265 = vmatpush1.bf16.msra.mxu1 %v12628_v42  ;;  %8184 = vmatprep.subr.bf16.mxu0 %v12639_v46  ;;  %v14190_v42 = vld [vmem:[#allocation2 + $0x10] ss:$28 sps:$4 sm:$0xff]  }
 0x4b3   : > { %8266 = vmatprep.subr.bf16.mxu1 %v12636_v29  ;;  %8296 = vmatprep.mubr.bf16.mxu1 %v14052_v63  ;;  %v12654_v63 = vld [vmem:[%s13458_s20 + $0x164] ss:$52 sps:$4 sm:$0xff]  }
 0x4b4   : > { %v12721_v29 = vld [vmem:[%s13458_s20 + $0x918] ss:$52 sps:$4 sm:$0xff]  }
 0x4b5   : > { %8185 = vmatpush1.bf16.msra.mxu0 %v12637_v49  ;;  %v12726_v46 = vld [vmem:[%s13458_s20 + $0x1004] ss:$52 sps:$4 sm:$0xff]   ;;  %v12724_v49 = vld [vmem:[%s13458_s20 + $0x1000] ss:$52 sps:$4 sm:$0xff]  }
 0x4b6   : > { %8267 = vmatpush1.bf16.msra.mxu1 %v12634_v48  ;;  %8186 = vmatprep.subr.bf16.mxu0 %v12645_v50  ;;  %v12729_v48 = vld [vmem:[%s13458_s20 + $0x8b4] ss:$52 sps:$4 sm:$0xff]   ;;  %v12732_v50 = vld [vmem:[%s13458_s20 + $0xf9c] ss:$52 sps:$4 sm:$0xff]  }
 0x4b7   : > { %8268 = vmatprep.subr.bf16.mxu1 %v12642_v47  ;;  %v12727_v47 = vld [vmem:[%s13458_s20 + $0x8b0] ss:$52 sps:$4 sm:$0xff]  }
 0x4b9   : > { %8187 = vmatpush1.bf16.msra.mxu0 %v12643_v52  ;;  %v12730_v52 = vld [vmem:[%s13458_s20 + $0xf98] ss:$52 sps:$4 sm:$0xff]  }
 0x4ba   : > { %8269 = vmatpush1.bf16.msra.mxu1 %v12640_v51  ;;  %8188 = vmatprep.subr.bf16.mxu0 %v12651_v55  ;;  %v12735_v51 = vld [vmem:[%s13458_s20 + $0x84c] ss:$52 sps:$4 sm:$0xff]   ;;  %v12741_v55 = vld [vmem:[%s13458_s20 + $0x7e4] ss:$52 sps:$4 sm:$0xff]  }
 0x4bb   : > { %8270 = vmatprep.subr.bf16.mxu1 %v12648_v36  ;;  %v12738_v36 = vld [vmem:[%s13458_s20 + $0xf34] ss:$52 sps:$4 sm:$0xff]  }
 0x4bd   : > { %8189 = vmatpush1.bf16.msra.mxu0 %v12649_v57  ;;  %v12739_v57 = vld [vmem:[%s13458_s20 + $0x7e0] ss:$52 sps:$4 sm:$0xff]  }
 0x4be   : > { %8271 = vmatpush1.bf16.msra.mxu1 %v12646_v56  ;;  %8190 = vmatprep.subr.bf16.mxu0 %v12657_v58  ;;  %v12736_v56 = vld [vmem:[%s13458_s20 + $0xf30] ss:$52 sps:$4 sm:$0xff]  }
 0x4bf   : > { %8272 = vmatprep.subr.bf16.mxu1 %v12654_v63  ;;  %v12744_v63 = vld [vmem:[%s13458_s20 + $0xecc] ss:$52 sps:$4 sm:$0xff]   ;;  %v12747_v58 = vld [vmem:[%s13458_s20 + $0x77c] ss:$52 sps:$4 sm:$0xff]  }
 0x4c1   : > { %8191 = vmatpush1.bf16.msra.mxu0 %v12655_v60  ;;  %v12745_v60 = vld [vmem:[%s13458_s20 + $0x778] ss:$52 sps:$4 sm:$0xff]  }
 0x4c2   : > { %8273 = vmatpush1.bf16.msra.mxu1 %v12652_v59  ;;  %8192 = vmatprep.subr.bf16.mxu0 %v12663_v62  ;;  %v12742_v59 = vld [vmem:[%s13458_s20 + $0xec8] ss:$52 sps:$4 sm:$0xff]  }
 0x4c3   : > { %8274 = vmatprep.subr.bf16.mxu1 %v12660_v61  ;;  %v12750_v61 = vld [vmem:[%s13458_s20 + $0xe64] ss:$52 sps:$4 sm:$0xff]   ;;  %v12753_v62 = vld [vmem:[%s13458_s20 + $0x714] ss:$52 sps:$4 sm:$0xff]  }
 0x4c5   : > { %8193 = vmatpush1.bf16.msra.mxu0 %v12661_v2  ;;  %v12751_v2 = vld [vmem:[%s13458_s20 + $0x710] ss:$52 sps:$4 sm:$0xff]  }
 0x4c6   : > { %8275 = vmatpush1.bf16.msra.mxu1 %v12658_v1  ;;  %8194 = vmatprep.subr.bf16.mxu0 %v12669_v4  ;;  %v12748_v1 = vld [vmem:[%s13458_s20 + $0xe60] ss:$52 sps:$4 sm:$0xff]  }
 0x4c7   : > { %8276 = vmatprep.subr.bf16.mxu1 %v12666_v3  ;;  %v12756_v3 = vld [vmem:[%s13458_s20 + $0xdfc] ss:$52 sps:$4 sm:$0xff]   ;;  %v12759_v4 = vld [vmem:[%s13458_s20 + $0x6ac] ss:$52 sps:$4 sm:$0xff]  }
 0x4c9   : > { %8195 = vmatpush2.bf16.msra.mxu0 %v12667_v6  ;;  %v12757_v6 = vld [vmem:[%s13458_s20 + $0x6a8] ss:$52 sps:$4 sm:$0xff]  }
 0x4ca   : > { %8277 = vmatpush1.bf16.msra.mxu1 %v12664_v12  ;;  %8196 = vmatprep.subr.bf16.mxu0 %v12675_v38  ;;  %v12754_v12 = vld [vmem:[%s13458_s20 + $0xdf8] ss:$52 sps:$4 sm:$0xff]  }
 0x4cb   : > { %8278 = vmatprep.subr.bf16.mxu1 %v12672_v8  ;;  %v12762_v8 = vld [vmem:[%s13458_s20 + $0xd94] ss:$52 sps:$4 sm:$0xff]   ;;  %v12765_v38 = vld [vmem:[%s13458_s20 + $0xcc4] ss:$52 sps:$4 sm:$0xff]  }
 0x4cd   : > { %8197 = vmatpush2.bf16.msra.mxu0 %v12673_v27  ;;  %v12763_v27 = vld [vmem:[%s13458_s20 + $0xcc0] ss:$52 sps:$4 sm:$0xff]  }
 0x4ce   : > { %8279 = vmatpush1.bf16.msra.mxu1 %v12670_v9  ;;  %8198 = vmatprep.subr.bf16.mxu0 %v12681_v11  ;;  %v12760_v9 = vld [vmem:[%s13458_s20 + $0xd90] ss:$52 sps:$4 sm:$0xff]  }
 0x4cf   : > { %8280 = vmatprep.subr.bf16.mxu1 %v12678_v10  ;;  %v12768_v10 = vld [vmem:[%s13458_s20 + $0xd2c] ss:$52 sps:$4 sm:$0xff]   ;;  %v12771_v11 = vld [vmem:[%s13458_s20 + $0xc5c] ss:$52 sps:$4 sm:$0xff]  }
 0x4d1   : > { %8199 = vmatpush2.bf16.msra.mxu0 %v12679_v21  ;;  %v12769_v21 = vld [vmem:[%s13458_s20 + $0xc58] ss:$52 sps:$4 sm:$0xff]  }
 0x4d2   : > { %8281 = vmatpush2.bf16.msra.mxu1 %v12676_v23  ;;  %8200 = vmatprep.subr.bf16.mxu0 %v12687_v54  ;;  %v12766_v23 = vld [vmem:[%s13458_s20 + $0xd28] ss:$52 sps:$4 sm:$0xff]  }
 0x4d3   : > { %8282 = vmatprep.subr.bf16.mxu1 %v12684_v14  ;;  %v12774_v14 = vld [vmem:[%s13458_s20 + $0x1344] ss:$52 sps:$4 sm:$0xff]   ;;  %v12777_v54 = vld [vmem:[%s13458_s20 + $0xbf4] ss:$52 sps:$4 sm:$0xff]  }
 0x4d5   : > { %8201 = vmatpush2.bf16.msra.mxu0 %v12685_v43  ;;  %v12775_v43 = vld [vmem:[%s13458_s20 + $0xbf0] ss:$52 sps:$4 sm:$0xff]  }
 0x4d6   : > { %8283 = vmatpush2.bf16.msra.mxu1 %v12682_v15  ;;  %8202 = vmatprep.subr.bf16.mxu0 %v12693_v16  ;;  %v12772_v15 = vld [vmem:[%s13458_s20 + $0x1340] ss:$52 sps:$4 sm:$0xff]  }
 0x4d7   : > { %8284 = vmatprep.subr.bf16.mxu1 %v12690_v0  ;;  %v12780_v0 = vld [vmem:[%s13458_s20 + $0x12dc] ss:$52 sps:$4 sm:$0xff]   ;;  %v12783_v16 = vld [vmem:[%s13458_s20 + $0xb8c] ss:$52 sps:$4 sm:$0xff]  }
 0x4d9   : > { %8203 = vmatpush2.bf16.msra.mxu0 %v12691_v7  ;;  %v12781_v7 = vld [vmem:[%s13458_s20 + $0xb88] ss:$52 sps:$4 sm:$0xff]  }
 0x4da   : > { %8285 = vmatpush2.bf16.msra.mxu1 %v12688_v17  ;;  %8204 = vmatprep.subr.bf16.mxu0 %v12699_v20  ;;  %v12778_v17 = vld [vmem:[%s13458_s20 + $0x12d8] ss:$52 sps:$4 sm:$0xff]  }
 0x4db   : > { %8286 = vmatprep.subr.bf16.mxu1 %v12696_v19  ;;  %v12786_v19 = vld [vmem:[%s13458_s20 + $0x1274] ss:$52 sps:$4 sm:$0xff]   ;;  %v12789_v20 = vld [vmem:[%s13458_s20 + $0xb24] ss:$52 sps:$4 sm:$0xff]  }
 0x4dd   : > { %8205 = vmatpush2.bf16.msra.mxu0 %v12697_v24  ;;  %v14242_v24 = vpop.f32.mrf.mxu1 }
 0x4de   : > { %8287 = vmatpush2.bf16.msra.mxu1 %v12694_v22  ;;  %8206 = vmatprep.subr.bf16.mxu0 %v12705_v28  ;;  %v14240_v22 = vpop.f32.mrf.mxu0  ;;  %v12787_v28 = vld [vmem:[%s13458_s20 + $0xb20] ss:$52 sps:$4 sm:$0xff]  }
 0x4df   : > { %8288 = vmatprep.subr.bf16.mxu1 %v12702_v25  ;;  %v12784_v25 = vld [vmem:[%s13458_s20 + $0x1270] ss:$52 sps:$4 sm:$0xff]  }
 0x4e1   : > { %8207 = vmatpush2.bf16.msra.mxu0 %v12703_v31  ;;  %v12795_v31 = vld [vmem:[%s13458_s20 + $0xabc] ss:$52 sps:$4 sm:$0xff]  }
 0x4e2   : > { %8289 = vmatpush2.bf16.msra.mxu1 %v12700_v30  ;;  %8208 = vmatprep.subr.bf16.mxu0 %v12711_v33  ;;  %v12792_v30 = vld [vmem:[%s13458_s20 + $0x120c] ss:$52 sps:$4 sm:$0xff]   ;;  %v14250_v33 = vpop.f32.mrf.mxu1 }
 0x4e3   : > { %8290 = vmatprep.subr.bf16.mxu1 %v12708_v32  ;;  %v14248_v32 = vpop.f32.mrf.mxu0 }
 0x4e5   : > { %8209 = vmatpush2.bf16.msra.mxu0 %v12709_v35  ;;  %v12793_v35 = vld [vmem:[%s13458_s20 + $0xab8] ss:$52 sps:$4 sm:$0xff]  }
 0x4e6   : > { %8291 = vmatpush2.bf16.msra.mxu1 %v12706_v34  ;;  %8307 = vmatprep.subr.bf16.mxu0 %v12717_v39  ;;  %v12790_v34 = vld [vmem:[%s13458_s20 + $0x1208] ss:$52 sps:$4 sm:$0xff]  }
 0x4e7   : > { %8292 = vmatprep.subr.bf16.mxu1 %v12714_v5  ;;  %v12798_v5 = vld [vmem:[%s13458_s20 + $0x11a4] ss:$52 sps:$4 sm:$0xff]   ;;  %v12801_v39 = vld [vmem:[%s13458_s20 + $0xa54] ss:$52 sps:$4 sm:$0xff]  }
 0x4e8   : > { %8211 = vmatmul.mubr.bf16.vlgmr.msra.gmra.mxu0 %v14190_v42 }
 0x4e9   : > { %8308 = vmatpush1.bf16.msra.mxu0 %v12715_v40  ;;  %8339 = vmatprep.mubr.bf16.mxu0 %v14055_v26  ;;  %v12733_v26 = vld [vmem:[%s13458_s20 + $0x848] ss:$52 sps:$4 sm:$0xff]   ;;  %v14258_v40 = vpop.f32.mrf.mxu1 }
 0x4ea   : > { %8293 = vmatpush2.bf16.msra.mxu1 %v12712_v18  ;;  %8309 = vmatprep.subr.bf16.mxu0 %v12723_v53  ;;  %v14256_v18 = vpop.f32.mrf.mxu0  ;;  %v12799_v53 = vld [vmem:[%s13458_s20 + $0xa50] ss:$52 sps:$4 sm:$0xff]  }
 0x4eb   : > { %8294 = vmatprep.subr.bf16.mxu1 %v12720_v44  ;;  %v12796_v44 = vld [vmem:[%s13458_s20 + $0x11a0] ss:$52 sps:$4 sm:$0xff]  }
 0x4ed   : > { %8310 = vmatpush1.bf16.msra.mxu0 %v12721_v29  ;;  %v12807_v29 = vld [vmem:[%s13458_s20 + $0x9ec] ss:$52 sps:$4 sm:$0xff]  }
 0x4ee   : > { %8295 = vmatpush2.bf16.msra.mxu1 %v12718_v45  ;;  %8311 = vmatprep.subr.bf16.mxu0 %v12729_v48  ;;  %v12804_v45 = vld [vmem:[%s13458_s20 + $0x113c] ss:$52 sps:$4 sm:$0xff]   ;;  %v14266_v48 = vpop.f32.mrf.mxu1 }
 0x4ef   : > { %8350 = vmatprep.subr.bf16.mxu1 %v12726_v46  ;;  %v14264_v46 = vpop.f32.mrf.mxu0 }
 0x4f1   : > { %8297 = vmatmul.mubr.bf16.vlgmr.msra.gmra.mxu1 %v14117_v41  ;;  %8312 = vmatpush1.bf16.msra.mxu0 %v12727_v47  ;;  %v14270_v47 = vpop.f32.mrf.mxu0 }
 0x4f2   : > { %8351 = vmatpush1.bf16.msra.mxu1 %v12724_v49  ;;  %8313 = vmatprep.subr.bf16.mxu0 %v12735_v51  ;;  %v14268_v49 = vpop.f32.mrf.mxu1  ;;  %v12805_v51 = vld [vmem:[%s13458_s20 + $0x9e8] ss:$52 sps:$4 sm:$0xff]  }
 0x4f3   : > { %8352 = vmatprep.subr.bf16.mxu1 %v12732_v50  ;;  %8382 = vmatprep.mubr.bf16.mxu1 %v14126_v37  ;;  %v12802_v50 = vld [vmem:[%s13458_s20 + $0x1138] ss:$52 sps:$4 sm:$0xff]  }
 0x4f5   : > { %8314 = vmatpush1.bf16.msra.mxu0 %v12733_v26  ;;  %v12813_v26 = vld [vmem:[%s13458_s20 + $0x13ac] ss:$52 sps:$4 sm:$0xff]  }
 0x4f6   : > { %8353 = vmatpush1.bf16.msra.mxu1 %v12730_v52  ;;  %8315 = vmatprep.subr.bf16.mxu0 %v12741_v55  ;;  %v12810_v52 = vld [vmem:[%s13458_s20 + $0x10d4] ss:$52 sps:$4 sm:$0xff]   ;;  %v14278_v55 = vpop.f32.mrf.mxu0 }
 0x4f7   : > { %8354 = vmatprep.subr.bf16.mxu1 %v12738_v36  ;;  %v14276_v36 = vpop.f32.mrf.mxu1 }
 0x4f9   : > { %8316 = vmatpush1.bf16.msra.mxu0 %v12739_v57  ;;  %v12811_v57 = vld [vmem:[%s13458_s20 + $0x13a8] ss:$52 sps:$4 sm:$0xff]  }
 0x4fa   : > { %8355 = vmatpush1.bf16.msra.mxu1 %v12736_v56  ;;  %8317 = vmatprep.subr.bf16.mxu0 %v12747_v58  ;;  %v12808_v56 = vld [vmem:[%s13458_s20 + $0x10d0] ss:$52 sps:$4 sm:$0xff]   ;;  %v12817_v58 = vld [vmem:[%s13458_s20 + $0x648] ss:$52 sps:$4 sm:$0xff]  }
 0x4fb   : > { %8356 = vmatprep.subr.bf16.mxu1 %v12744_v63  ;;  %v12816_v63 = vld [vmem:[%s13458_s20 + $0x106c] ss:$52 sps:$4 sm:$0xff]  }
 0x4fd   : > { %8318 = vmatpush1.bf16.msra.mxu0 %v12745_v60  ;;  %v14287_v60 = vpop.f32.mrf.mxu1 }
 0x4fe   : > { %8357 = vmatpush1.bf16.msra.mxu1 %v12742_v59  ;;  %8319 = vmatprep.subr.bf16.mxu0 %v12753_v62  ;;  %v14284_v59 = vld [vmem:[#allocation2 + $0x8] ss:$28 sps:$4 sm:$0xff]  }
 0x4ff   : > { %8358 = vmatprep.subr.bf16.mxu1 %v12750_v61  ;;  %v14289_v61 = vpop.f32.mrf.mxu0  ;;  %v12814_v62 = vld [vmem:[%s13458_s20 + $0x1068] ss:$52 sps:$4 sm:$0xff]  }
 0x501   : > { %8320 = vmatpush1.bf16.msra.mxu0 %v12751_v2  ;;  %v14294_v2 = vpop.f32.mrf.mxu1 }
 0x502   : > { %8359 = vmatpush1.bf16.msra.mxu1 %v12748_v1  ;;  %8321 = vmatprep.subr.bf16.mxu0 %v12759_v4  ;;  %v12818_v1 = vld [vmem:[%s13458_s20 + $0xcc8] ss:$52 sps:$4 sm:$0xff]  }
 0x503   : > { %8360 = vmatprep.subr.bf16.mxu1 %v12756_v3  ;;  %v14296_v3 = vpop.f32.mrf.mxu0  ;;  %v12819_v4 = vld [vmem:[%s13458_s20 + $0x308] ss:$52 sps:$4 sm:$0xff]  }
 0x505   : > { %8322 = vmatpush1.bf16.msra.mxu0 %v12757_v6  ;;  %v12821_v6 = vld [vmem:[%s13458_s20 + $0x5e0] ss:$52 sps:$4 sm:$0xff]  }
 0x506   : > { %8361 = vmatpush1.bf16.msra.mxu1 %v12754_v12  ;;  %8323 = vmatprep.subr.bf16.mxu0 %v12765_v38  ;;  %v12820_v12 = vld [vmem:[%s13458_s20 + $0x988] ss:$52 sps:$4 sm:$0xff]   ;;  %v14302_v38 = vpop.f32.mrf.mxu1 }
 0x507   : > { %8362 = vmatprep.subr.bf16.mxu1 %v12762_v8  ;;  %v12822_v8 = vld [vmem:[%s13458_s20 + $0xc60] ss:$52 sps:$4 sm:$0xff]  }
 0x509   : > { %8324 = vmatpush2.bf16.msra.mxu0 %v12763_v27  ;;  %v12823_v27 = vld [vmem:[%s13458_s20 + $0x2a0] ss:$52 sps:$4 sm:$0xff]  }
 0x50a   : > { %8363 = vmatpush1.bf16.msra.mxu1 %v12760_v9  ;;  %8325 = vmatprep.subr.bf16.mxu0 %v12771_v11  ;;  %v14304_v9 = vpop.f32.mrf.mxu0  ;;  %v12825_v11 = vld [vmem:[%s13458_s20 + $0x578] ss:$52 sps:$4 sm:$0xff]  }
 0x50b   : > { %8364 = vmatprep.subr.bf16.mxu1 %v12768_v10  ;;  %v12824_v10 = vld [vmem:[%s13458_s20 + $0x920] ss:$52 sps:$4 sm:$0xff]  }
 0x50d   : > { %8326 = vmatpush2.bf16.msra.mxu0 %v12769_v21  ;;  %v14315_v21 = vpop.f32.mrf.mxu1 }
 0x50e   : > { %8365 = vmatpush1.bf16.msra.mxu1 %v12766_v23  ;;  %8327 = vmatprep.subr.bf16.mxu0 %v12777_v54  ;;  %v12826_v23 = vld [vmem:[%s13458_s20 + $0xbf8] ss:$52 sps:$4 sm:$0xff]  }
 0x50f   : > { %8366 = vmatprep.subr.bf16.mxu1 %v12774_v14  ;;  %v14317_v14 = vpop.f32.mrf.mxu0  ;;  %v12986_v54 = vld [vmem:[#allocation2 + $0x4] ss:$28 sps:$4 sm:$0xff]  }
 0x511   : > { %8328 = vmatpush2.bf16.msra.mxu0 %v12775_v43  ;;  %v12827_v43 = vld [vmem:[%s13458_s20 + $0x238] ss:$52 sps:$4 sm:$0xff]  }
 0x512   : > { %8367 = vmatpush2.bf16.msra.mxu1 %v12772_v15  ;;  %8329 = vmatprep.subr.bf16.mxu0 %v12783_v16  ;;  %v12987_v15 = vld [vmem:[#allocation2 + $0xc] ss:$28 sps:$4 sm:$0xff]  }
 0x513   : > { %8368 = vmatprep.subr.bf16.mxu1 %v12780_v0  ;;  %v12828_v0 = vld [vmem:[%s13458_s20 + $0x8b8] ss:$52 sps:$4 sm:$0xff]   ;;  %v12829_v16 = vld [vmem:[%s13458_s20 + $0x510] ss:$52 sps:$4 sm:$0xff]  }
 0x515   : > { %8330 = vmatpush2.bf16.msra.mxu0 %v12781_v7  ;;  %v14323_v7 = vpop.f32.mrf.mxu1 }
 0x516   : > { %8369 = vmatpush2.bf16.msra.mxu1 %v12778_v17  ;;  %8331 = vmatprep.subr.bf16.mxu0 %v12789_v20  ;;  %v12830_v17 = vld [vmem:[%s13458_s20 + $0xb90] ss:$52 sps:$4 sm:$0xff]   ;;  %v4066_v20 = vlaneseq }
 0x517   : > { %8370 = vmatprep.subr.bf16.mxu1 %v12786_v19  ;;  %v14325_v19 = vpop.f32.mrf.mxu0 }
 0x519   : > { %8332 = vmatpush2.bf16.msra.mxu0 %v12787_v28  ;;  %v12832_v28 = vld [vmem:[%s13458_s20 + $0x850] ss:$52 sps:$4 sm:$0xff]  }
 0x51a   : > { %8371 = vmatpush2.bf16.msra.mxu1 %v12784_v25  ;;  %8333 = vmatprep.subr.bf16.mxu0 %v12795_v31  ;;  %v12831_v25 = vld [vmem:[%s13458_s20 + $0x1d0] ss:$52 sps:$4 sm:$0xff]   ;;  %v12834_v31 = vld [vmem:[%s13458_s20 + $0xb28] ss:$52 sps:$4 sm:$0xff]  }
 0x51b   : > { %8372 = vmatprep.subr.bf16.mxu1 %v12792_v30  ;;  %v12833_v30 = vld [vmem:[%s13458_s20 + $0x4a8] ss:$52 sps:$4 sm:$0xff]  }
 0x51d   : > { %8334 = vmatpush2.bf16.msra.mxu0 %v12793_v35  ;;  %v14333_v35 = vpop.f32.mrf.mxu0 }
 0x51e   : > { %8373 = vmatpush2.bf16.msra.mxu1 %v12790_v34  ;;  %8335 = vmatprep.subr.bf16.mxu0 %v12801_v39  ;;  %v14331_v34 = vpop.f32.mrf.mxu1 }
 0x51f   : > { %8374 = vmatprep.subr.bf16.mxu1 %v12798_v5  ;;  %v14335_v5 = vshrl.u32 %v4066_v20, 7 }
 0x520   : > { %v14337_v39 = vpop.f32.mrf.mxu1 }
 0x521   : > { %8336 = vmatpush2.bf16.msra.mxu0 %v12799_v53  ;;  %v12836_v53 = vld [vmem:[%s13458_s20 + $0x7e8] ss:$52 sps:$4 sm:$0xff]  }
 0x522   : > { %8375 = vmatpush2.bf16.msra.mxu1 %v12796_v44  ;;  %8337 = vmatprep.subr.bf16.mxu0 %v12807_v29  ;;  %v12835_v44 = vld [vmem:[%s13458_s20 + $0x168] ss:$52 sps:$4 sm:$0xff]   ;;  %v12838_v29 = vld [vmem:[%s13458_s20 + $0xac0] ss:$52 sps:$4 sm:$0xff]  }
 0x523   : > { %8376 = vmatprep.subr.bf16.mxu1 %v12804_v45  ;;  %v12837_v45 = vld [vmem:[%s13458_s20 + $0x440] ss:$52 sps:$4 sm:$0xff]  }
 0x525   : > { %8338 = vmatpush2.bf16.msra.mxu0 %v12805_v51  ;;  %v4072_v51 = vsub.s32 1, %v14335_v5 }
 0x526   : > { %8377 = vmatpush2.bf16.msra.mxu1 %v12802_v50  ;;  %8407 = vmatprep.subr.bf16.mxu0 %v12813_v26  ;;  %v14343_v50 = vpop.f32.mrf.mxu0  ;;  %v14349_v26 = vpop.f32.mrf.mxu1 }
 0x527   : > { %8378 = vmatprep.subr.bf16.mxu1 %v12810_v52  ;;  %v14347_v52 = vld [vmem:[%s13464_s10] sm:$0xff] }
 0x528   : > { %8340 = vmatmul.mubr.bf16.vlgmr.msra.gmra.mxu0 %v14284_v59 }
 0x529   : > { %8408 = vmatpush1.bf16.msra.mxu0 %v12811_v57  ;;  %8425 = vmatprep.mubr.bf16.mxu0 %v13214_v13  ;;  %v14307_v13 = vld [vmem:[#allocation2 + $0x18] ss:$28 sps:$4 sm:$0xff]   ;;  %v12840_v57 = vld [vmem:[%s13458_s20 + $0x780] ss:$52 sps:$4 sm:$0xff]  }
 0x52a   : > { %8379 = vmatpush2.bf16.msra.mxu1 %v12808_v56  ;;  %11095 = vmatprep.subr.bf16.mxu0 %v12817_v58  ;;  %v12839_v56 = vld [vmem:[%s13458_s20 + $0x100] ss:$52 sps:$4 sm:$0xff]   ;;  %v12842_v58 = vld [vmem:[%s13458_s20 + $0xa58] ss:$52 sps:$4 sm:$0xff]  }
 0x52b   : > { %8380 = vmatprep.subr.bf16.mxu1 %v12816_v63  ;;  %v12841_v63 = vld [vmem:[%s13458_s20 + $0x3d8] ss:$52 sps:$4 sm:$0xff]  }
 0x52e   : > { %8381 = vmatpush2.bf16.msra.mxu1 %v12814_v62  ;;  %v14355_v62 = vpop.f32.mrf.mxu0 }
 0x52f   : > { %11117 = vmatprep.subr.bf16.mxu1 %v12818_v1  ;;  %v4073_v1 = vrot.slane %v14347_v52, %v4072_v51 }
 0x530   : > { %10906 = vmatmul.mubr.msk.bf16.vlgmr.msra.gmra.mxu0 %vm7400_vm3, %v14307_v13 }
 0x531   : > { %8383 = vmatmul.mubr.bf16.vlgmr.msra.gmra.mxu1 %v14190_v42  ;;  %11096 = vmatpush3.bf16.msra.mxu0 %v12819_v4  ;;  %v14360_v4 = vpop.f32.mrf.mxu1 }
 0x532   : > { %11118 = vmatpush3.bf16.msra.mxu1 %v12820_v12  ;;  %11097 = vmatprep.subr.bf16.mxu0 %v12821_v6  ;;  %v12843_v12 = vld [vmem:[%s13458_s20 + $0x98] ss:$52 sps:$4 sm:$0xff]  }
 0x533   : > { %11119 = vmatprep.subr.bf16.mxu1 %v12822_v8  ;;  %8468 = vmatprep.mubr.bf16.mxu0 %v12986_v54  ;;  %v12844_v6 = vld [vmem:[%s13458_s20 + $0x718] ss:$52 sps:$4 sm:$0xff]   ;;  %v7445_v8 = vadd.f32 %v14264_v46, %v4073_v1  ;;  %v14370_v54 = vpop.f32.mrf.mxu1  ;;  %v12849_v46 = vld [vmem:[%s13458_s20 + $0x1348] ss:$52 sps:$4 sm:$0xff]  }
 0x534   : > { %8509 = vmatprep.mubr.bf16.mxu1 %v12987_v15  ;;  %v12847_v15 = vld [vmem:[%s13458_s20 + $0x30] ss:$52 sps:$4 sm:$0xff]  }
 0x535   : > { %11098 = vmatpush3.bf16.msra.mxu0 %v12823_v27  ;;  %v12845_v27 = vld [vmem:[%s13458_s20 + $0x370] ss:$52 sps:$4 sm:$0xff]  }
 0x536   : > { %11120 = vmatpush3.bf16.msra.mxu1 %v12824_v10  ;;  %11099 = vmatprep.subr.bf16.mxu0 %v12825_v11  ;;  %v12846_v10 = vld [vmem:[%s13458_s20 + $0x9f0] ss:$52 sps:$4 sm:$0xff]   ;;  %v14367_v11 = vpop.f32.mrf.mxu0 }
 0x537   : > { %11121 = vmatprep.subr.bf16.mxu1 %v12826_v23  ;;  %v7441_v23 = vadd.f32 %v14248_v32, %v4073_v1 }
 0x539   : > { %11100 = vmatpush3.bf16.msra.mxu0 %v12827_v43  ;;  %v12848_v43 = vld [vmem:[%s13458_s20 + $0x6b0] ss:$52 sps:$4 sm:$0xff]   ;;  %v7484_v32 = vadd.f32 %v14250_v33, %v7441_v23 }
 0x53a   : > { %11122 = vmatpush3.bf16.msra.mxu1 %v12828_v0  ;;  %11101 = vmatprep.subr.bf16.mxu0 %v12829_v16  ;;  %v7488_v0 = vadd.f32 %v14266_v48, %v7445_v8  ;;  %v14376_v16 = vpop.f32.mrf.mxu0  ;;  %v12852_v48 = vld [vmem:[%s13458_s20 + $0x13b0] ss:$52 sps:$4 sm:$0xff]  }
 0x53b   : > { %11123 = vmatprep.subr.bf16.mxu1 %v12830_v17  ;;  %v14378_v17 = vpop.f32.mrf.mxu1  ;;  %v12854_v33 = vld [vmem:[%s13466_s15 + $0x78] sm:$0xff]  }
 0x53c   : > { %v7531_v20 = vadd.f32 %v14296_v3, %v7488_v0  ;;  %v12861_v23 = vld [vmem:[%s13458_s20 + $0xed0] ss:$52 sps:$4 sm:$0xff]  }
 0x53d   : > { %11102 = vmatpush3.bf16.msra.mxu0 %v12831_v25  ;;  %v14382_v25 = vpop.f32.mrf.mxu0 }
 0x53e   : > { %11124 = vmatpush3.bf16.msra.mxu1 %v12832_v28  ;;  %11103 = vmatprep.subr.bf16.mxu0 %v12833_v30  ;;  %v12850_v28 = vld [vmem:[%s13458_s20 + $0x1008] ss:$52 sps:$4 sm:$0xff]   ;;  %v7527_v30 = vadd.f32 %v14278_v55, %v7484_v32  ;;  %v7574_v3 = vadd.f32 %v14294_v2, %v7531_v20  ;;  %v12853_v55 = vld [vmem:[%s13458_s20 + $0xfa0] ss:$52 sps:$4 sm:$0xff]   ;;  %v12855_v2 = vld [vmem:[%s13458_s20 + $0x1278] ss:$52 sps:$4 sm:$0xff]  }
 0x53f   : > { %11125 = vmatprep.subr.bf16.mxu1 %v12834_v31  ;;  %v13215_v31 = vmov 0.0   ;;  %v12864_v32 = vld [vmem:[%s13466_s15 + $0x28] sm:$0xff]  }
 0x540   : > { %v12865_v20 = vld [vmem:[%s13458_s20 + $0xe68] ss:$52 sps:$4 sm:$0xff]  }
 0x541   : > { %11104 = vmatpush3.bf16.msra.mxu0 %v12835_v44  ;;  %v12851_v44 = vld [vmem:[%s13458_s20 + $0x12e0] ss:$52 sps:$4 sm:$0xff]  }
 0x542   : > { %11126 = vmatpush3.bf16.msra.mxu1 %v12836_v53  ;;  %11105 = vmatprep.subr.bf16.mxu0 %v12837_v45  ;;  %v14389_v53 = vpop.f32.mrf.mxu1  ;;  %v14395_v45 = vpop.f32.mrf.mxu0 }
 0x543   : > { %11127 = vmatprep.subr.bf16.mxu1 %v12838_v29  ;;  %v7570_v29 = vadd.f32 %v14276_v36, %v7527_v30  ;;  %v12857_v36 = vld [vmem:[%s13458_s20 + $0xf38] ss:$52 sps:$4 sm:$0xff]   ;;  %v12867_v30 = vld [vmem:[%s13458_s20 + $0x1140] ss:$52 sps:$4 sm:$0xff]  }
 0x545   : > { %11106 = vmatpush3.bf16.msra.mxu0 %v12839_v56  ;;  %v14405_v56 = vpop.f32.mrf.mxu0 }
 0x546   : > { %11128 = vmatpush3.bf16.msra.mxu1 %v12840_v57  ;;  %11107 = vmatprep.subr.bf16.mxu0 %v12841_v63  ;;  %v12856_v57 = vld [vmem:[%s13466_s15 + $0x38] sm:$0xff]   ;;  %v8601_v63 = vmax.f32 %v7570_v29, 0.0  ;;  %v12868_v29 = vld [vmem:[%s13466_s15 + $0x20] sm:$0xff]  }
 0x547   : > { %11129 = vmatprep.subr.bf16.mxu1 %v12842_v58  ;;  %v12858_v58 = vld [vmem:[%s13466_s15 + $0x70] sm:$0xff]   ;;  %v7788_v8 = vpop.f32.mrf.mxu0 }
 0x549   : > { %11108 = vmatpush3.bf16.msra.mxu0 %v12843_v12  ;;  %v12859_v12 = vld [vmem:[%s13458_s20 + $0x1210] ss:$52 sps:$4 sm:$0xff]   ;;  %v14422_v0 = vpop.f32.mrf.mxu0 }
 0x54a   : > { %11130 = vmatpush3.bf16.msra.mxu1 %v12844_v6  ;;  %11109 = vmatprep.subr.bf16.mxu0 %v12845_v27  ;;  %v4080_v6 = vsub.s32 3, %v14335_v5 }
 0x54b   : > { %11131 = vmatprep.subr.bf16.mxu1 %v12846_v10  ;;  %v12860_v10 = vld [vmem:[%s13466_s15 + $0x30] sm:$0xff]  }
 0x54d   : > { %11110 = vmatpush3.bf16.msra.mxu0 %v12847_v15  ;;  %v12862_v15 = vld [vmem:[%s13466_s15 + $0x68] sm:$0xff]  }
 0x54e   : > { %11132 = vmatpush3.bf16.msra.mxu1 %v12848_v43  ;;  %11139 = vmatprep.subr.bf16.mxu0 %v12849_v46  ;;  %v12863_v43 = vld [vmem:[%s13458_s20 + $0x11a8] ss:$52 sps:$4 sm:$0xff]  }
 0x54f   : > { %11310 = vmatprep.subr.bf16.mxu1 %v13215_v31 }
 0x550   : > { %8469 = vmatmul.mubr.bf16.vlgmr.msra.gmra.mxu0 %v14117_v41  ;;  %v14402_v41 = vpop.f32.mrf.mxu1 }
 0x551   : > { %8510 = vmatmul.mubr.bf16.vlgmr.msra.gmra.mxu1 %v14284_v59  ;;  %11140 = vmatpush3.bf16.msra.mxu0 %v12850_v28  ;;  %v8614_v59 = vmax.f32 %v7574_v3, 0.0  ;;  %v4068_v28 = vsub.s32 0, %v14335_v5 }
 0x552   : > { %11311 = vmatpush3.bf16.msra.mxu1 %v12852_v48  ;;  %11141 = vmatprep.subr.bf16.mxu0 %v12851_v44  ;;  %v14410_v1 = vpop.f32.mrf.mxu1  ;;  %v12866_v48 = vld [vmem:[%s13466_s15 + $0x60] sm:$0xff]   ;;  %v4088_v44 = vsub.s32 5, %v14335_v5 }
 0x553   : > { %11312 = vmatprep.mubr.msk.bf16.mxu1 %vm13216_vm4, %v13215_v31  ;;  %11163 = vmatprep.subr.bf16.mxu1 %v12854_v33  ;;  %v7870_v33 = vpop.f32.mrf.mxu0 }
 0x554   : > { %8550 = vmatprep.mubr.bf16.mxu0 %v14126_v37  ;;  %v8629_v37 = vpack.c.bf16 %v8614_v59, %v8601_v63  ;;  %v14416_v27 = vpop.f32.mrf.mxu1  ;;  %v4069_v59 = vrot.slane %v14347_v52, %v4068_v28  ;;  %v12870_v63 = vld [vmem:[%s13466_s15 + $0x58] sm:$0xff]  }
 0x555   : > { %11142 = vmatpush3.bf16.msra.mxu0 %v12853_v55 }
 0x556   : > { %11143 = vmatprep.subr.bf16.mxu0 %v12855_v2  ;;  %v14427_v46 = vpop.f32.mrf.mxu1  ;;  %v12869_v2 = vld [vmem:[%s13458_s20 + $0xe00] ss:$52 sps:$4 sm:$0xff]  }
 0x558   : > { %v14436_v55 = vpop.f32.mrf.mxu1 }
 0x559   : > { %11313 = vmatmul.mubr.msk.bf16.vlgmr.msra.gmra.mxu1 %vm7400_vm3, %v14307_v13  ;;  %11144 = vmatpush3.bf16.msra.mxu0 %v12857_v36  ;;  %v4081_v13 = vrot.slane %v14347_v52, %v4080_v6 }
 0x55a   : > { %11164 = vmatpush3.bf16.msra.mxu1 %v12856_v57  ;;  %9505 = vmatprep.mubr.bf16.mxu1 %v8629_v37  ;;  %v7443_v37 = vadd.f32 %v14256_v18, %v4069_v59  ;;  %v12875_v18 = vld [vmem:[%s13458_s20 + $0x1070] ss:$52 sps:$4 sm:$0xff]  }
 0x55b   : > { %11165 = vmatprep.subr.bf16.mxu1 %v12858_v58  ;;  %11145 = vmatprep.subr.bf16.mxu0 %v12859_v12  ;;  %v7617_v3 = vadd.f32 %v14331_v34, %v4081_v13  ;;  %v7613_v57 = vadd.f32 %v14315_v21, %v4081_v13  ;;  %v12871_v34 = vld [vmem:[%s13458_s20 + $0x10d8] ss:$52 sps:$4 sm:$0xff]   ;;  %v4089_v58 = vrot.slane %v14347_v52, %v4088_v44  ;;  %v14448_v12 = vpop.f32.mrf.mxu0 }
 0x55c   : > { %v7439_v13 = vadd.f32 %v14240_v22, %v4069_v59 }
 0x55d   : > { %11146 = vmatpush3.bf16.msra.mxu0 %v12861_v23  ;;  %v7660_v36 = vadd.f32 %v14333_v35, %v7617_v3  ;;  %v7789_v21 = vadd.f32 %v7788_v8, %v4089_v58  ;;  %v12872_v35 = vld [vmem:[%s13466_s15 + $0x18] sm:$0xff]  }
 0x55e   : > { %11166 = vmatpush3.bf16.msra.mxu1 %v12860_v10  ;;  %11147 = vmatprep.subr.bf16.mxu0 %v12863_v43  ;;  %v7656_v10 = vadd.f32 %v14317_v14, %v7613_v57  ;;  %v12873_v43 = vld [vmem:[%s13458_s20 + $0xd98] ss:$52 sps:$4 sm:$0xff]   ;;  %v7785_v14 = vadd.f32 %v14395_v45, %v4089_v58  ;;  %v12877_v3 = vld [vmem:[%s13458_s20 + $0xd30] ss:$52 sps:$4 sm:$0xff]  }
 0x55f   : > { %11167 = vmatprep.subr.bf16.mxu1 %v12862_v15  ;;  %v7703_v23 = vadd.f32 %v14370_v54, %v7660_v36  ;;  %v7917_v15 = vpop.f32.mrf.mxu1  ;;  %v7874_v54 = vpop.f32.mrf.mxu0  ;;  %v7832_v22 = vadd.f32 %v14410_v1, %v7789_v21 }
 0x560   : > { %v7828_v1 = vadd.f32 %v14389_v53, %v7785_v14  ;;  %v12882_v53 = vld [vmem:[%s13466_s15 + $0x40] sm:$0xff]  }
 0x561   : > { %11148 = vmatpush3.bf16.msra.mxu0 %v12865_v20  ;;  %v12874_v20 = vld [vmem:[%s13466_s15 + $0x50] sm:$0xff]   ;;  %v14460_v8 = vpop.f32.mrf.mxu1  ;;  %v14465_v44 = vpop.f32.mrf.mxu0  ;;  %v7875_v59 = vadd.f32 %v7874_v54, %v7832_v22  ;;  %v12889_v22 = vld [vmem:[%s13466_s15 + $0xa8] sm:$0xff]  }
 0x562   : > { %11168 = vmatpush3.bf16.msra.mxu1 %v12864_v32  ;;  %11149 = vmatprep.subr.bf16.mxu0 %v12867_v30  ;;  %v7699_v32 = vadd.f32 %v14349_v26, %v7656_v10  ;;  %v7746_v30 = vadd.f32 %v14376_v16, %v7703_v23  ;;  %v12876_v26 = vld [vmem:[%s13466_s15 + $0x10] sm:$0xff]   ;;  %v12880_v16 = vld [vmem:[%s13466_s15 + $0xf8] sm:$0xff]  }
 0x563   : > { %11169 = vmatprep.subr.bf16.mxu1 %v12866_v48  ;;  %v7486_v48 = vadd.f32 %v14258_v40, %v7443_v37  ;;  %v12878_v40 = vld [vmem:[%s13466_s15 + $0x48] sm:$0xff]   ;;  %v14475_v57 = vpop.f32.mrf.mxu1  ;;  %v7918_v10 = vadd.f32 %v7917_v15, %v7875_v59  ;;  %v12886_v15 = vld [vmem:[%s13466_s15 + $0x178] sm:$0xff]   ;;  %v12893_v59 = vld [vmem:[%s13466_s15 + $0xa0] sm:$0xff]  }
 0x565   : > { %11150 = vmatpush3.bf16.msra.mxu0 %v12869_v2  ;;  %v7529_v45 = vadd.f32 %v14289_v61, %v7486_v48  ;;  %v7742_v2 = vadd.f32 %v14355_v62, %v7699_v32  ;;  %v12879_v61 = vld [vmem:[%s13466_s15 + $0x8] sm:$0xff]   ;;  %v12881_v62 = vld [vmem:[%s13466_s15 + $0xb8] sm:$0xff]  }
 0x566   : > { %11170 = vmatpush3.bf16.msra.mxu1 %v12868_v29  ;;  %11151 = vmatprep.subr.bf16.mxu0 %v12871_v34  ;;  %v7482_v29 = vadd.f32 %v14242_v24, %v7439_v13  ;;  %v8616_v24 = vmax.f32 %v7746_v30, 0.0  ;;  %v14478_v34 = vpop.f32.mrf.mxu0  ;;  %v12885_v13 = vld [vmem:[%s13466_s15 + $0xb0] sm:$0xff]   ;;  %v12888_v48 = vld [vmem:[%s13466_s15 + $0x138] sm:$0xff]  }
 0x567   : > { %11171 = vmatprep.subr.bf16.mxu1 %v12870_v63  ;;  %v7871_v63 = vadd.f32 %v7870_v33, %v7828_v1  ;;  %v7572_v58 = vadd.f32 %v14287_v60, %v7529_v45  ;;  %v8603_v37 = vmax.f32 %v7742_v2, 0.0  ;;  %v12884_v33 = vld [vmem:[%s13466_s15 + $0xf0] sm:$0xff]   ;;  %v12883_v60 = vld [vmem:[%s13466_s15] sm:$0xff]   ;;  %v4096_v2 = vsub.s32 7, %v14335_v5 }
 0x568   : > { %v7525_v36 = vadd.f32 %v14270_v47, %v7482_v29  ;;  %v14484_v47 = vpop.f32.mrf.mxu1  ;;  %v12891_v45 = vld [vmem:[%s13466_s15 + $0xe0] sm:$0xff]   ;;  %v12892_v1 = vld [vmem:[%s13466_s15 + $0x130] sm:$0xff]  }
 0x569   : > { %11152 = vmatpush3.bf16.msra.mxu0 %v12873_v43  ;;  %v8631_v21 = vpack.c.bf16 %v8616_v24, %v8603_v37  ;;  %v14490_v43 = vpop.f32.mrf.mxu0  ;;  %v8613_v32 = vmax.f32 %v7572_v58, 0.0  ;;  %v12896_v37 = vld [vmem:[%s13466_s15 + $0x128] sm:$0xff]  }
 0x56a   : > { %11172 = vmatpush3.bf16.msra.mxu1 %v12872_v35  ;;  %11153 = vmatprep.subr.bf16.mxu0 %v12875_v18  ;;  %v7568_v23 = vadd.f32 %v14268_v49, %v7525_v36  ;;  %v7914_v35 = vadd.f32 %v14427_v46, %v7871_v63  ;;  %v8618_v49 = vmax.f32 %v7918_v10, 0.0  ;;  %v7960_v18 = vpop.f32.mrf.mxu1  ;;  %v12894_v36 = vld [vmem:[%s13466_s15 + $0x168] sm:$0xff]   ;;  %v12895_v63 = vld [vmem:[%s13466_s15 + $0xd8] sm:$0xff]  }
 0x56b   : > { %11173 = vmatprep.subr.bf16.mxu1 %v12874_v20  ;;  %v12887_v20 = vld [vmem:[%s13466_s15 + $0xe8] sm:$0xff]   ;;  %v8003_v14 = vpop.f32.mrf.mxu0  ;;  %v12897_v10 = vld [vmem:[%s13466_s15 + $0x98] sm:$0xff]  }
 0x56c   : > { %v8605_v46 = vmax.f32 %v7914_v35, 0.0  ;;  %v14496_v54 = vpop.f32.mrf.mxu1 }
 0x56d   : > { %11154 = vmatpush3.bf16.msra.mxu0 %v12877_v3  ;;  %v4076_v3 = vsub.s32 2, %v14335_v5 }
 0x56e   : > { %11174 = vmatpush3.bf16.msra.mxu1 %v12876_v26  ;;  %11185 = vmatprep.subr.bf16.mxu0 %v12880_v16  ;;  %v12890_v26 = vld [vmem:[%s13466_s15 + $0x170] sm:$0xff]   ;;  %v8633_v29 = vpack.c.bf16 %v8618_v49, %v8605_v46  ;;  %v8042_v16 = vpop.f32.mrf.mxu1 }
 0x56f   : > { %11175 = vmatprep.subr.bf16.mxu1 %v12878_v40  ;;  %v14504_v40 = vpop.f32.mrf.mxu0  ;;  %v4077_v24 = vrot.slane %v14347_v52, %v4076_v3 }
 0x570   : > { %8551 = vmatmul.mubr.bf16.vlgmr.msra.gmra.mxu0 %v14190_v42  ;;  %v8600_v42 = vmax.f32 %v7568_v23, 0.0  ;;  %v14514_v58 = vpop.f32.mrf.mxu1 }
 0x571   : > { %11186 = vmatpush3.bf16.msra.mxu0 %v12881_v62  ;;  %9546 = vmatprep.mubr.bf16.mxu0 %v8631_v21  ;;  %v8085_v62 = vpop.f32.mrf.mxu0  ;;  %v7615_v23 = vadd.f32 %v14323_v7, %v4077_v24  ;;  %v12899_v21 = vld [vmem:[%s13466_s15 + $0xd0] sm:$0xff]  }
 0x572   : > { %11176 = vmatpush3.bf16.msra.mxu1 %v12879_v61  ;;  %11187 = vmatprep.subr.bf16.mxu0 %v12884_v33  ;;  %v8628_v30 = vpack.c.bf16 %v8613_v32, %v8600_v42  ;;  %v4097_v61 = vrot.slane %v14347_v52, %v4096_v2  ;;  %v12898_v33 = vld [vmem:[%s13466_s15 + $0x160] sm:$0xff]   ;;  %v12906_v2 = vld [vmem:[%s13466_s15 + $0x150] sm:$0xff]  }
 0x573   : > { %11177 = vmatprep.subr.bf16.mxu1 %v12882_v53  ;;  %v4084_v53 = vsub.s32 4, %v14335_v5  ;;  %v14524_v32 = vpop.f32.mrf.mxu0 }
 0x574   : > { %v7961_v35 = vadd.f32 %v7960_v18, %v4097_v61  ;;  %v7957_v7 = vadd.f32 %v14475_v57, %v4097_v61  ;;  %v12901_v18 = vld [vmem:[%s13466_s15 + $0x90] sm:$0xff]  }
 0x575   : > { %11188 = vmatpush3.bf16.msra.mxu0 %v12885_v13  ;;  %v7658_v13 = vadd.f32 %v14325_v19, %v7615_v23  ;;  %v4085_v49 = vrot.slane %v14347_v52, %v4084_v53 }
 0x576   : > { %11178 = vmatpush3.bf16.msra.mxu1 %v12883_v60  ;;  %11189 = vmatprep.subr.bf16.mxu0 %v12887_v20  ;;  %v7611_v60 = vadd.f32 %v14302_v38, %v4077_v24  ;;  %v12900_v20 = vld [vmem:[%s13466_s15 + $0x120] sm:$0xff]   ;;  %v8004_v42 = vadd.f32 %v8003_v14, %v7961_v35  ;;  %v12902_v38 = vld [vmem:[%s13466_s15 + $0x158] sm:$0xff]   ;;  %v12916_v35 = vld [vmem:[%s13466_s15 + $0x1f0] sm:$0xff]  }
 0x577   : > { %11207 = vmatprep.subr.bf16.mxu1 %v12886_v15  ;;  %v8046_v15 = vpop.f32.mrf.mxu1  ;;  %v7701_v46 = vadd.f32 %v14360_v4, %v7658_v13  ;;  %v12905_v4 = vld [vmem:[%s13466_s15 + $0x88] sm:$0xff]   ;;  %v12915_v13 = vld [vmem:[%s13466_s15 + $0x100] sm:$0xff]  }
 0x578   : > { %v7654_v19 = vadd.f32 %v14304_v9, %v7611_v60  ;;  %v8047_v57 = vadd.f32 %v8046_v15, %v8004_v42  ;;  %v12917_v15 = vld [vmem:[%s13466_s15 + $0x1b0] sm:$0xff]   ;;  %v12921_v42 = vld [vmem:[%s13466_s15 + $0x238] sm:$0xff]  }
 0x579   : > { %9506 = vmatmul.mubr.bf16.vlgmr.msra.gmra.mxu1 %v8628_v30  ;;  %11190 = vmatpush3.bf16.msra.mxu0 %v12889_v22  ;;  %v7787_v30 = vadd.f32 %v14405_v56, %v4085_v49  ;;  %v8000_v22 = vadd.f32 %v14478_v34, %v7957_v7  ;;  %v7744_v56 = vadd.f32 %v14367_v11, %v7701_v46  ;;  %v12907_v34 = vld [vmem:[%s13466_s15 + $0xc0] sm:$0xff]   ;;  %v4092_v46 = vsub.s32 6, %v14335_v5 }
 0x57a   : > { %11208 = vmatpush3.bf16.msra.mxu1 %v12888_v48  ;;  %9587 = vmatprep.mubr.bf16.mxu1 %v8633_v29  ;;  %v12903_v48 = vld [vmem:[%s13466_s15 + $0xc8] sm:$0xff]   ;;  %v7697_v14 = vadd.f32 %v14337_v39, %v7654_v19  ;;  %v12904_v29 = vld [vmem:[%s13466_s15 + $0x118] sm:$0xff]   ;;  %v12909_v11 = vld [vmem:[%s13466_s15 + $0x80] sm:$0xff]  }
 0x57b   : > { %11209 = vmatprep.subr.bf16.mxu1 %v12890_v26  ;;  %11191 = vmatprep.subr.bf16.mxu0 %v12891_v45  ;;  %v8089_v26 = vpop.f32.mrf.mxu0  ;;  %v7783_v45 = vadd.f32 %v14382_v25, %v4085_v49  ;;  %v8043_v9 = vadd.f32 %v8042_v16, %v8000_v22  ;;  %v7830_v39 = vadd.f32 %v14402_v41, %v7787_v30  ;;  %v12908_v25 = vld [vmem:[%s13466_s15 + $0x110] sm:$0xff]   ;;  %v8615_v61 = vmax.f32 %v7744_v56, 0.0  ;;  %v12912_v41 = vld [vmem:[%s13466_s15 + $0x1f8] sm:$0xff]   ;;  %v12918_v49 = vld [vmem:[%s13466_s15 + $0x1e8] sm:$0xff]  }
 0x57c   : > { %v12924_v19 = vld [vmem:[%s13466_s15 + $0x270] sm:$0xff]  }
 0x57d   : > { %11192 = vmatpush3.bf16.msra.mxu0 %v12893_v59  ;;  %v7740_v59 = vadd.f32 %v14343_v50, %v7697_v14  ;;  %v7826_v16 = vadd.f32 %v14378_v17, %v7783_v45  ;;  %v8086_v24 = vadd.f32 %v8085_v62, %v8043_v9  ;;  %v12911_v17 = vld [vmem:[%s13466_s15 + $0x108] sm:$0xff]   ;;  %v12925_v30 = vld [vmem:[%s13466_s15 + $0x230] sm:$0xff]   ;;  %v8126_v22 = vpop.f32.mrf.mxu0  ;;  %v12923_v14 = vld [vmem:[%s13466_s15 + $0x1a0] sm:$0xff]  }
 0x57e   : > { %11210 = vmatpush3.bf16.msra.mxu1 %v12892_v1  ;;  %11193 = vmatprep.subr.bf16.mxu0 %v12895_v63  ;;  %v8090_v1 = vadd.f32 %v8089_v26, %v8047_v57  ;;  %v12910_v63 = vld [vmem:[%s13466_s15 + $0x148] sm:$0xff]   ;;  %v12926_v45 = vld [vmem:[%s13466_s15 + $0x1d8] sm:$0xff]  }
 0x57f   : > { %11211 = vmatprep.subr.bf16.mxu1 %v12894_v36  ;;  %v7873_v36 = vadd.f32 %v14448_v12, %v7830_v39  ;;  %v7869_v50 = vadd.f32 %v14422_v0, %v7826_v16  ;;  %v8607_v62 = vmax.f32 %v8086_v24, 0.0  ;;  %v12928_v26 = vld [vmem:[%s13466_s15 + $0x268] sm:$0xff]   ;;  %v12932_v39 = vld [vmem:[%s13466_s15 + $0x260] sm:$0xff]  }
 0x580   : > { %v12929_v9 = vld [vmem:[%s13466_s15 + $0x228] sm:$0xff]  }
 0x581   : > { %11194 = vmatpush3.bf16.msra.mxu0 %v12897_v10  ;;  %v8602_v10 = vmax.f32 %v7740_v59, 0.0  ;;  %v7916_v12 = vadd.f32 %v14436_v55, %v7873_v36  ;;  %v7912_v0 = vadd.f32 %v14416_v27, %v7869_v50  ;;  %v12930_v59 = vld [vmem:[%s13466_s15 + $0x1d0] sm:$0xff]   ;;  %v12933_v36 = vld [vmem:[%s13466_s15 + $0x220] sm:$0xff]  }
 0x582   : > { %11212 = vmatpush3.bf16.msra.mxu1 %v12896_v37  ;;  %11195 = vmatprep.subr.bf16.mxu0 %v12899_v21  ;;  %v8620_v37 = vmax.f32 %v8090_v1, 0.0  ;;  %v12914_v21 = vld [vmem:[%s13466_s15 + $0x140] sm:$0xff]  }
 0x583   : > { %11213 = vmatprep.subr.bf16.mxu1 %v12898_v33  ;;  %v12913_v33 = vld [vmem:[%s13466_s15 + $0x1b8] sm:$0xff]   ;;  %v8630_v23 = vpack.c.bf16 %v8615_v61, %v8602_v10  ;;  %v8617_v55 = vmax.f32 %v7916_v12, 0.0  ;;  %v8604_v7 = vmax.f32 %v7912_v0, 0.0  ;;  %v12935_v12 = vld [vmem:[%s13466_s15 + $0x188] sm:$0xff]  }
 0x584   : > { %v8635_v60 = vpack.c.bf16 %v8620_v37, %v8607_v62  ;;  %v12940_v62 = vld [vmem:[%s13466_s15 + $0x250] sm:$0xff]  }
 0x585   : > { %11196 = vmatpush3.bf16.msra.mxu0 %v12901_v18  ;;  %v8632_v27 = vpack.c.bf16 %v8617_v55, %v8604_v7  ;;  %v14565_v18 = vpop.f32.mrf.mxu1 }
 0x586   : > { %11214 = vmatpush3.bf16.msra.mxu1 %v12900_v20  ;;  %11197 = vmatprep.subr.bf16.mxu0 %v12903_v48  ;;  %v12920_v20 = vld [vmem:[%s13466_s15 + $0x278] sm:$0xff]   ;;  %v12922_v48 = vld [vmem:[%s13466_s15 + $0x1e0] sm:$0xff]  }
 0x587   : > { %11215 = vmatprep.subr.bf16.mxu1 %v12902_v38  ;;  %v12919_v38 = vld [vmem:[%s13466_s15 + $0x1a8] sm:$0xff]   ;;  %v8171_v57 = vpop.f32.mrf.mxu1 }
 0x589   : > { %11198 = vmatpush3.bf16.msra.mxu0 %v12905_v4  ;;  %v14578_v4 = vld [vmem:[%s13464_s10 + $0x8] sm:$0x1f]  ;;  %v8173_v56 = vpop.f32.mrf.mxu1 }
 0x58a   : > { %11216 = vmatpush3.bf16.msra.mxu1 %v12904_v29  ;;  %11199 = vmatprep.subr.bf16.mxu0 %v12907_v34  ;;  %v4093_v29 = vrot.slane %v14347_v52, %v4092_v46  ;;  %v12927_v34 = vld [vmem:[%s13466_s15 + $0x198] sm:$0xff]   ;;  %v4105_v16 = vrot.slane %v14578_v4, %v4072_v51  ;;  %v4101_v24 = vrot.slane %v14578_v4, %v4068_v28  ;;  %v12934_v51 = vld [vmem:[%s13466_s15 + $0x1c8] sm:$0xff]  }
 0x58b   : > { %11217 = vmatprep.subr.bf16.mxu1 %v12906_v2  ;;  %v8128_v2 = vpop.f32.mrf.mxu0  ;;  %v12937_v28 = vld [vmem:[%s13466_s15 + $0x218] sm:$0xff]  }
 0x58c   : > { %v7959_v1 = vadd.f32 %v14484_v47, %v4093_v29  ;;  %v7955_v52 = vadd.f32 %v14460_v8, %v4093_v29  ;;  %v8175_v47 = vpop.f32.mrf.mxu1  ;;  %v12936_v8 = vld [vmem:[%s13466_s15 + $0x258] sm:$0xff]   ;;  %v8129_v37 = vadd.f32 %v8128_v2, %v4105_v16  ;;  %v8127_v10 = vadd.f32 %v8126_v22, %v4101_v24  ;;  %v12944_v22 = vld [vmem:[%s13466_s15 + $0x240] sm:$0xff]  }
 0x58d   : > { %11200 = vmatpush3.bf16.msra.mxu0 %v12909_v11  ;;  %v8130_v11 = vpop.f32.mrf.mxu0 }
 0x58e   : > { %11218 = vmatpush3.bf16.msra.mxu1 %v12908_v25  ;;  %11229 = vmatprep.subr.bf16.mxu0 %v12912_v41  ;;  %v8002_v25 = vadd.f32 %v14490_v43, %v7959_v1  ;;  %v7998_v43 = vadd.f32 %v14465_v44, %v7955_v52  ;;  %v8255_v41 = vpop.f32.mrf.mxu1 }
 0x58f   : > { %11219 = vmatprep.subr.bf16.mxu1 %v12910_v63  ;;  %v12931_v63 = vld [vmem:[%s13466_s15 + $0x190] sm:$0xff]  }
 0x590   : > { %9547 = vmatmul.mubr.bf16.vlgmr.msra.gmra.mxu0 %v8630_v23  ;;  %v8045_v61 = vadd.f32 %v14514_v58, %v8002_v25  ;;  %v8041_v50 = vadd.f32 %v14496_v54, %v7998_v43  ;;  %v8131_v58 = vadd.f32 %v8130_v11, %v4101_v24  ;;  %v8257_v23 = vpop.f32.mrf.mxu1  ;;  %v12962_v11 = vld [vmem:[%s13466_s15 + $0x338] sm:$0xff]   ;;  %v12963_v43 = vld [vmem:[%s13466_s15 + $0x330] sm:$0xff]  }
 0x591   : > { %11230 = vmatpush3.bf16.msra.mxu0 %v12913_v33  ;;  %9628 = vmatprep.mubr.bf16.mxu0 %v8635_v60  ;;  %v12938_v33 = vld [vmem:[%s13466_s15 + $0x1c0] sm:$0xff]   ;;  %v12941_v60 = vld [vmem:[%s13466_s15 + $0x210] sm:$0xff]  }
 0x592   : > { %11220 = vmatpush3.bf16.msra.mxu1 %v12911_v17  ;;  %11231 = vmatprep.subr.bf16.mxu0 %v12916_v35  ;;  %v8132_v17 = vpop.f32.mrf.mxu0  ;;  %v8088_v44 = vadd.f32 %v14524_v32, %v8045_v61  ;;  %v8084_v54 = vadd.f32 %v14504_v40, %v8041_v50  ;;  %v8172_v35 = vadd.f32 %v8171_v57, %v8129_v37  ;;  %v12942_v32 = vld [vmem:[%s13466_s15 + $0x248] sm:$0xff]   ;;  %v8259_v40 = vpop.f32.mrf.mxu1  ;;  %v12947_v57 = vld [vmem:[%s13466_s15 + $0x2b8] sm:$0xff]   ;;  %v12953_v61 = vld [vmem:[%s13466_s15 + $0x2a0] sm:$0xff]  }
 0x593   : > { %11221 = vmatprep.subr.bf16.mxu1 %v12914_v21  ;;  %v8133_v0 = vadd.f32 %v8132_v17, %v4105_v16  ;;  %v12950_v16 = vld [vmem:[%s13466_s15 + $0x2e8] sm:$0xff]   ;;  %v12955_v50 = vld [vmem:[%s13466_s15 + $0x298] sm:$0xff]   ;;  %v12956_v37 = vld [vmem:[%s13466_s15 + $0x2d0] sm:$0xff]  }
 0x594   : > { %v8261_v2 = vpop.f32.mrf.mxu1  ;;  %v12958_v17 = vld [vmem:[%s13466_s15 + $0x2c8] sm:$0xff]  }
 0x595   : > { %11232 = vmatpush3.bf16.msra.mxu0 %v12917_v15  ;;  %v12939_v15 = vld [vmem:[%s13466_s15 + $0x180] sm:$0xff]   ;;  %v8176_v46 = vadd.f32 %v8175_v47, %v8133_v0 }
 0x596   : > { %11222 = vmatpush3.bf16.msra.mxu1 %v12915_v13  ;;  %11233 = vmatprep.subr.bf16.mxu0 %v12918_v49  ;;  %v8170_v13 = vadd.f32 %v14565_v18, %v8127_v10  ;;  %v8174_v49 = vadd.f32 %v8173_v56, %v8131_v58  ;;  %v12957_v10 = vld [vmem:[%s13466_s15 + $0x290] sm:$0xff]  }
 0x597   : > { %11251 = vmatprep.subr.bf16.mxu1 %v12920_v20  ;;  %v8619_v20 = vmax.f32 %v8088_v44, 0.0  ;;  %v12960_v44 = vld [vmem:[%s13466_s15 + $0x2c0] sm:$0xff]   ;;  %v12967_v58 = vld [vmem:[%s13466_s15 + $0x310] sm:$0xff]  }
 0x599   : > { %9588 = vmatmul.mubr.bf16.vlgmr.msra.gmra.mxu1 %v8632_v27  ;;  %11234 = vmatpush3.bf16.msra.mxu0 %v12919_v38 }
 0x59a   : > { %11252 = vmatpush3.bf16.msra.mxu1 %v12921_v42  ;;  %11235 = vmatprep.subr.bf16.mxu0 %v12922_v48  ;;  %v12946_v42 = vld [vmem:[%s13466_s15 + $0x2f8] sm:$0xff]   ;;  %v12943_v48 = vld [vmem:[%s13466_s15 + $0x208] sm:$0xff]  }
 0x59b   : > { %11253 = vmatprep.subr.bf16.mxu1 %v12924_v19  ;;  %v8606_v19 = vmax.f32 %v8084_v54, 0.0 }
 0x59d   : > { %11236 = vmatpush3.bf16.msra.mxu0 %v12923_v14  ;;  %v8634_v14 = vpack.c.bf16 %v8619_v20, %v8606_v19 }
 0x59e   : > { %11254 = vmatpush3.bf16.msra.mxu1 %v12925_v30  ;;  %11237 = vmatprep.subr.bf16.mxu0 %v12926_v45 }
 0x59f   : > { %11255 = vmatprep.subr.bf16.mxu1 %v12928_v26 }
 0x5a1   : > { %11238 = vmatpush3.bf16.msra.mxu0 %v12927_v34 }
 0x5a2   : > { %11256 = vmatpush3.bf16.msra.mxu1 %v12929_v9  ;;  %11239 = vmatprep.subr.bf16.mxu0 %v12930_v59  ;;  %v12948_v9 = vld [vmem:[%s13466_s15 + $0x2f0] sm:$0xff]  }
 0x5a3   : > { %11257 = vmatprep.subr.bf16.mxu1 %v12932_v39  ;;  %v12945_v39 = vld [vmem:[%s13466_s15 + $0x200] sm:$0xff]   ;;  %v12949_v59 = vld [vmem:[%s13466_s15 + $0x2b0] sm:$0xff]  }
 0x5a5   : > { %11240 = vmatpush3.bf16.msra.mxu0 %v12931_v63  ;;  %v12951_v63 = vld [vmem:[%s13466_s15 + $0x2a8] sm:$0xff]  }
 0x5a6   : > { %11258 = vmatpush3.bf16.msra.mxu1 %v12933_v36  ;;  %11241 = vmatprep.subr.bf16.mxu0 %v12934_v51  ;;  %v12954_v51 = vld [vmem:[%s13466_s15 + $0x2d8] sm:$0xff]  }
 0x5a7   : > { %11259 = vmatprep.subr.bf16.mxu1 %v12936_v8  ;;  %v12952_v8 = vld [vmem:[%s13466_s15 + $0x2e0] sm:$0xff]  }
 0x5a8   : > { %v8212_v21 = vpop.f32.mrf.mxu0 }
 0x5a9   : > { %11242 = vmatpush3.bf16.msra.mxu0 %v12935_v12  ;;  %v8213_v27 = vadd.f32 %v8212_v21, %v8170_v13  ;;  %v12966_v12 = vld [vmem:[%s13466_s15 + $0x318] sm:$0xff]   ;;  %v12969_v21 = vld [vmem:[%s13466_s15 + $0x300] sm:$0xff]  }
 0x5aa   : > { %11260 = vmatpush3.bf16.msra.mxu1 %v12937_v28  ;;  %v8214_v55 = vpop.f32.mrf.mxu0  ;;  %11243 = vmatprep.subr.bf16.mxu0 %v12938_v33  ;;  %v12965_v28 = vld [vmem:[%s13466_s15 + $0x320] sm:$0xff]  }
 0x5ab   : > { %11261 = vmatprep.subr.bf16.mxu1 %v12940_v62  ;;  %v8215_v7 = vadd.f32 %v8214_v55, %v8172_v35  ;;  %v8256_v56 = vadd.f32 %v8255_v41, %v8213_v27  ;;  %v12964_v41 = vld [vmem:[%s13466_s15 + $0x328] sm:$0xff]   ;;  %v12961_v33 = vld [vmem:[%s13466_s15 + $0x280] sm:$0xff]   ;;  %v4113_v55 = vrot.slane %v14578_v4, %v4080_v6 }
 0x5ac   : > { %v8216_v38 = vpop.f32.mrf.mxu0  ;;  %v12959_v62 = vld [vmem:[%s13466_s15 + $0x288] sm:$0xff]  }
 0x5ad   : > { %v8217_v18 = vadd.f32 %v8216_v38, %v8174_v49  ;;  %11244 = vmatpush3.bf16.msra.mxu0 %v12939_v15  ;;  %v8258_v26 = vadd.f32 %v8257_v23, %v8215_v7  ;;  %v8608_v36 = vmax.f32 %v8256_v56, 0.0  ;;  %v12968_v23 = vld [vmem:[%s13466_s15 + $0x308] sm:$0xff]   ;;  %v4109_v15 = vrot.slane %v14578_v4, %v4076_v3 }
 0x5ae   : > { %11262 = vmatpush3.bf16.msra.mxu1 %v12941_v60  ;;  %v8218_v30 = vpop.f32.mrf.mxu0  ;;  %11273 = vmatprep.subr.bf16.mxu0 %v12946_v42 }
 0x5af   : > { %11263 = vmatprep.subr.bf16.mxu1 %v12942_v32  ;;  %v8260_v29 = vadd.f32 %v8259_v40, %v8217_v18  ;;  %v8219_v45 = vadd.f32 %v8218_v30, %v8176_v46  ;;  %v8609_v52 = vmax.f32 %v8258_v26, 0.0 }
 0x5b0   : > { %9629 = vmatmul.mubr.bf16.vlgmr.msra.gmra.mxu0 %v8634_v14 }
 0x5b1   : > { %v8262_v34 = vadd.f32 %v8261_v2, %v8219_v45  ;;  %v8621_v1 = vmax.f32 %v8260_v29, 0.0  ;;  %11274 = vmatpush3.bf16.msra.mxu0 %v12947_v57  ;;  %v8298_v54 = vpop.f32.mrf.mxu1 }
 0x5b2   : > { %11264 = vmatpush3.bf16.msra.mxu1 %v12943_v48  ;;  %11275 = vmatprep.subr.bf16.mxu0 %v12948_v9  ;;  %v8299_v42 = vadd.f32 %v8298_v54, %v4109_v15 }
 0x5b3   : > { %11265 = vmatprep.subr.bf16.mxu1 %v12944_v22  ;;  %v8622_v25 = vmax.f32 %v8262_v34, 0.0  ;;  %v8636_v47 = vpack.c.bf16 %v8621_v1, %v8608_v36  ;;  %v8300_v35 = vpop.f32.mrf.mxu1 }
 0x5b4   : > { %v8301_v7 = vadd.f32 %v8300_v35, %v4113_v55 }
 0x5b5   : > { %v8637_v24 = vpack.c.bf16 %v8622_v25, %v8609_v52  ;;  %11276 = vmatpush3.bf16.msra.mxu0 %v12949_v59  ;;  %v8302_v60 = vpop.f32.mrf.mxu1 }
 0x5b6   : > { %11266 = vmatpush3.bf16.msra.mxu1 %v12945_v39  ;;  %11277 = vmatprep.subr.bf16.mxu0 %v12950_v16  ;;  %v8303_v27 = vadd.f32 %v8302_v60, %v4109_v15 }
 0x5b7   : > { %11316 = vmatprep.subr.bf16.mxu1 %v13215_v31  ;;  %9669 = vmatprep.mubr.bf16.mxu1 %v8637_v24  ;;  %v8304_v20 = vpop.f32.mrf.mxu1 }
 0x5b8   : > { %v8305_v48 = vadd.f32 %v8304_v20, %v4113_v55 }
 0x5b9   : > { %9670 = vmatmul.mubr.bf16.vlgmr.msra.gmra.mxu1 %v8636_v47  ;;  %11278 = vmatpush3.bf16.msra.mxu0 %v12951_v63 }
 0x5ba   : > { %11317 = vmatpush3.bf16.msra.mxu1 %v12962_v11  ;;  %11332 = vmatprep.mubr.msk.bf16.mxu1 %vm13216_vm4, %v13215_v31 }
 0x5bb   : > { %11318 = vmatprep.subr.bf16.mxu1 %v13215_v31  ;;  %11279 = vmatprep.subr.bf16.mxu0 %v12952_v8 }
 0x5bd   : > { %11280 = vmatpush3.bf16.msra.mxu0 %v12953_v61 }
 0x5be   : > { %11319 = vmatpush3.bf16.msra.mxu1 %v12963_v43  ;;  %11281 = vmatprep.subr.bf16.mxu0 %v12954_v51 }
 0x5bf   : > { %11320 = vmatprep.subr.bf16.mxu1 %v13215_v31 }
 0x5c1   : > { %11282 = vmatpush3.bf16.msra.mxu0 %v12955_v50 }
 0x5c2   : > { %11321 = vmatpush3.bf16.msra.mxu1 %v12964_v41  ;;  %11283 = vmatprep.subr.bf16.mxu0 %v12956_v37 }
 0x5c3   : > { %11322 = vmatprep.subr.bf16.mxu1 %v13215_v31 }
 0x5c5   : > { %11284 = vmatpush3.bf16.msra.mxu0 %v12957_v10 }
 0x5c6   : > { %11323 = vmatpush3.bf16.msra.mxu1 %v12965_v28  ;;  %11285 = vmatprep.subr.bf16.mxu0 %v12958_v17  ;;  %v4117_v28 = vrot.slane %v14578_v4, %v4084_v53 }
 0x5c7   : > { %11324 = vmatprep.subr.bf16.mxu1 %v13215_v31 }
 0x5c9   : > { %11286 = vmatpush3.bf16.msra.mxu0 %v12959_v62 }
 0x5ca   : > { %11325 = vmatpush3.bf16.msra.mxu1 %v12966_v12  ;;  %11287 = vmatprep.subr.bf16.mxu0 %v12960_v44 }
 0x5cb   : > { %11326 = vmatprep.subr.bf16.mxu1 %v13215_v31 }
 0x5cd   : > { %11288 = vmatpush3.bf16.msra.mxu0 %v12961_v33 }
 0x5ce   : > { %11327 = vmatpush3.bf16.msra.mxu1 %v12967_v58 }
 0x5cf   : > { %11328 = vmatprep.subr.bf16.mxu1 %v13215_v31 }
 0x5d2   : > { %11329 = vmatpush3.bf16.msra.mxu1 %v12968_v23 }
 0x5d3   : > { %11330 = vmatprep.subr.bf16.mxu1 %v13215_v31 }
 0x5d6   : > { %11331 = vmatpush3.bf16.msra.mxu1 %v12969_v21 }
 0x5e8   : > { %v8341_v0 = vpop.f32.mrf.mxu0 }
 0x5e9   : > { %v8342_v19 = vadd.f32 %v8341_v0, %v8299_v42 }
 0x5ea   : > { %v8343_v13 = vpop.f32.mrf.mxu0 }
 0x5eb   : > { %v8344_v38 = vadd.f32 %v8343_v13, %v8301_v7 }
 0x5ec   : > { %v8345_v32 = vpop.f32.mrf.mxu0 }
 0x5ed   : > { %v8346_v30 = vadd.f32 %v8345_v32, %v8303_v27 }
 0x5ee   : > { %v8347_v49 = vpop.f32.mrf.mxu0 }
 0x5ef   : > { %v8348_v26 = vadd.f32 %v8347_v49, %v8305_v48 }
 0x5f0   : > { %v8427_v40 = vpop.f32.mrf.mxu0 }
 0x5f1   : > { %v8384_v31 = vpop.f32.mrf.mxu1 }
 0x5f2   : > { %v8429_v18 = vpop.f32.mrf.mxu0  ;;  %v8385_v6 = vadd.f32 %v8384_v31, %v8342_v19 }
 0x5f3   : > { %v8386_v46 = vpop.f32.mrf.mxu1 }
 0x5f4   : > { %v8387_v22 = vadd.f32 %v8386_v46, %v8344_v38  ;;  %v8431_v14 = vpop.f32.mrf.mxu0  ;;  %v8428_v34 = vadd.f32 %v8427_v40, %v8385_v6 }
 0x5f5   : > { %v8388_v57 = vpop.f32.mrf.mxu1 }
 0x5f6   : > { %v8389_v3 = vadd.f32 %v8388_v57, %v8346_v30  ;;  %v8433_v45 = vpop.f32.mrf.mxu0  ;;  %v8430_v9 = vadd.f32 %v8429_v18, %v8387_v22  ;;  %v8610_v25 = vmax.f32 %v8428_v34, 0.0 }
 0x5f7   : > { %v8390_v29 = vpop.f32.mrf.mxu1 }
 0x5f8   : > { %v8432_v2 = vadd.f32 %v8431_v14, %v8389_v3  ;;  %v8391_v56 = vadd.f32 %v8390_v29, %v8348_v26  ;;  %v8611_v59 = vmax.f32 %v8430_v9, 0.0 }
 0x5fa   : > { %v8434_v39 = vadd.f32 %v8433_v45, %v8391_v56  ;;  %v8623_v1 = vmax.f32 %v8432_v2, 0.0 }
 0x5fc   : > { %v8624_v52 = vmax.f32 %v8434_v39, 0.0  ;;  %v8638_v36 = vpack.c.bf16 %v8623_v1, %v8610_v25 }
 0x5fe   : > { %v8639_v16 = vpack.c.bf16 %v8624_v52, %v8611_v59 }
 0x600   : > { %9710 = vmatprep.mubr.bf16.mxu0 %v8639_v16 }
 0x601   : > { %9711 = vmatmul.mubr.bf16.vlgmr.msra.gmra.mxu0 %v8638_v36 }
 0x610   : > { %v11111_v41 = vpop.f32.mrf.mxu0 }
 0x611   : > { %v11133_v24 = vpop.f32.mrf.mxu1 }
 0x612   : > { %v11112_v50 = vpop.f32.mrf.mxu0 }
 0x613   : > { %v11134_v11 = vpop.f32.mrf.mxu1  ;;  %v11113_v10 = vadd.f32 %v11112_v50, %v11111_v41 }
 0x614   : > { %v11114_v37 = vpop.f32.mrf.mxu0  ;;  %v11135_v62 = vadd.f32 %v11134_v11, %v11133_v24 }
 0x615   : > { %v11136_v47 = vpop.f32.mrf.mxu1  ;;  %v8471_v12 = vadd.f32 %v11113_v10, %v4117_v28 }
 0x616   : > { %v11115_v17 = vpop.f32.mrf.mxu0 }
 0x617   : > { %v11137_v63 = vpop.f32.mrf.mxu1  ;;  %v11116_v44 = vadd.f32 %v11115_v17, %v11114_v37  ;;  %v8512_v23 = vadd.f32 %v11135_v62, %v8471_v12  ;;  %v8626_v12 = vld [vmem:[#allocation3] sm:$0xff] }
 0x618   : > { %v11138_v54 = vadd.f32 %v11137_v63, %v11136_v47 }
 0x619   : > { %v8593_v8 = vpop.f32.mrf.mxu1  ;;  %v8474_v21 = vadd.f32 %v11116_v44, %v4117_v28 }
 0x61b   : > { %v11314_v43 = vpop.f32.mrf.mxu1  ;;  %v8515_v55 = vadd.f32 %v11138_v54, %v8474_v21  ;;  %v8627_v54 = vld [vmem:[#allocation3 + $0x8] sm:$0xff] }
 0x61d   : > { %v8596_v61 = vpop.f32.mrf.mxu1 }
 0x61f   : > { %v11315_v51 = vpop.f32.mrf.mxu1 }
 0x630   : > { %v11155_v58 = vpop.f32.mrf.mxu0 }
 0x632   : > { %v11156_v33 = vpop.f32.mrf.mxu0 }
 0x633   : > { %v11157_v35 = vadd.f32 %v11156_v33, %v11155_v58 }
 0x634   : > { %v11158_v0 = vpop.f32.mrf.mxu0 }
 0x635   : > { %v8553_v60 = vadd.f32 %v11157_v35, %v8512_v23 }
 0x636   : > { %v11159_v13 = vpop.f32.mrf.mxu0 }
 0x637   : > { %v11160_v15 = vadd.f32 %v11159_v13, %v11158_v0  ;;  %v8594_v32 = vadd.f32 %v8593_v8, %v8553_v60 }
 0x639   : > { %v8556_v5 = vadd.f32 %v11160_v15, %v8515_v55  ;;  %v8612_v53 = vmax.f32 %v8594_v32, 0.0  ;;  %v11179_v7 = vpop.f32.mrf.mxu1 }
 0x63b   : > { %v8597_v20 = vadd.f32 %v8596_v61, %v8556_v5  ;;  %v11180_v31 = vpop.f32.mrf.mxu1 }
 0x63c   : > { %v11181_v56 = vadd.f32 %v11180_v31, %v11179_v7 }
 0x63d   : > { %v8625_v4 = vmax.f32 %v8597_v20, 0.0  ;;  %v11182_v27 = vpop.f32.mrf.mxu1 }
 0x63f   : > { %v8640_v49 = vpack.c.bf16 %v8625_v4, %v8612_v53  ;;  %v11183_v19 = vpop.f32.mrf.mxu1 }
 0x640   : > { %v11184_v16 = vadd.f32 %v11183_v19, %v11182_v27 }
 0x641   : > { %11333 = vmatmul.mubr.bf16.vlgmr.msra.gmra.mxu1 %v8640_v49 }
 0x650   : > { %v11201_v42 = vpop.f32.mrf.mxu0 }
 0x652   : > { %v11202_v40 = vpop.f32.mrf.mxu0 }
 0x653   : > { %v11203_v9 = vadd.f32 %v11202_v40, %v11201_v42 }
 0x654   : > { %v11204_v38 = vpop.f32.mrf.mxu0 }
 0x655   : > { %v9549_v1 = vadd.f32 %v11203_v9, %v11181_v56 }
 0x656   : > { %v11205_v46 = vpop.f32.mrf.mxu0 }
 0x657   : > { %v11206_v59 = vadd.f32 %v11205_v46, %v11204_v38 }
 0x659   : > { %v11223_v18 = vpop.f32.mrf.mxu1  ;;  %v9552_v63 = vadd.f32 %v11206_v59, %v11184_v16 }
 0x65b   : > { %v11224_v30 = vpop.f32.mrf.mxu1 }
 0x65c   : > { %v11225_v34 = vadd.f32 %v11224_v30, %v11223_v18 }
 0x65d   : > { %v11226_v6 = vpop.f32.mrf.mxu1 }
 0x65e   : > { %v9590_v36 = vadd.f32 %v11225_v34, %v9549_v1 }
 0x65f   : > { %v11227_v14 = vpop.f32.mrf.mxu1 }
 0x660   : > { %v11228_v24 = vadd.f32 %v11227_v14, %v11226_v6 }
 0x662   : > { %v9593_v41 = vadd.f32 %v11228_v24, %v9552_v63 }
 0x670   : > { %v11245_v48 = vpop.f32.mrf.mxu0 }
 0x672   : > { %v11246_v22 = vpop.f32.mrf.mxu0 }
 0x673   : > { %v11247_v52 = vadd.f32 %v11246_v22, %v11245_v48 }
 0x674   : > { %v11248_v57 = vpop.f32.mrf.mxu0 }
 0x675   : > { %v9631_v8 = vadd.f32 %v11247_v52, %v9590_v36 }
 0x676   : > { %v11249_v26 = vpop.f32.mrf.mxu0 }
 0x677   : > { %v11250_v43 = vadd.f32 %v11249_v26, %v11248_v57 }
 0x679   : > { %v11267_v3 = vpop.f32.mrf.mxu1  ;;  %v9634_v28 = vadd.f32 %v11250_v43, %v9593_v41 }
 0x67b   : > { %v11268_v45 = vpop.f32.mrf.mxu1 }
 0x67c   : > { %v11269_v11 = vadd.f32 %v11268_v45, %v11267_v3 }
 0x67d   : > { %v11270_v39 = vpop.f32.mrf.mxu1 }
 0x67e   : > { %v9672_v50 = vadd.f32 %v11269_v11, %v9631_v8 }
 0x67f   : > { %v11271_v47 = vpop.f32.mrf.mxu1 }
 0x680   : > { %v11272_v37 = vadd.f32 %v11271_v47, %v11270_v39 }
 0x682   : > { %v9675_v44 = vadd.f32 %v11272_v37, %v9634_v28 }
 0x6c1   : > { %v11289_v29 = vpop.f32.mrf.mxu0 }
 0x6c3   : > { %v11290_v2 = vpop.f32.mrf.mxu0 }
 0x6c4   : > { %v11291_v61 = vadd.f32 %v11290_v2, %v11289_v29 }
 0x6c5   : > { %v11292_v25 = vpop.f32.mrf.mxu0 }
 0x6c6   : > { %v9713_v17 = vadd.f32 %v11291_v61, %v9672_v50 }
 0x6c7   : > { %v11293_v51 = vpop.f32.mrf.mxu0 }
 0x6c8   : > { %v11294_v10 = vadd.f32 %v11293_v51, %v11292_v25 }
 0x6ca   : > { %v9716_v21 = vadd.f32 %v11294_v10, %v9675_v44 }
 0x701   : > { %v9753_v62 = vpop.f32.mrf.mxu1 }
 0x702   : > { %v9754_v58 = vadd.f32 %v9753_v62, %v9713_v17 }
 0x703   : > { %v11334_v33 = vpop.f32.mrf.mxu1 }
 0x704   : > { %v9760_v23 = vadd.f32 %v9754_v58, %v8626_v12 }
 0x705   : > { %v9756_v35 = vpop.f32.mrf.mxu1 }
 0x706   : > { %9762 = vst [vmem:[#allocation3] sm:$0xff] %v9760_v23  ;;  %v9757_v0 = vadd.f32 %v9756_v35, %v9716_v21  ;;  %9767 = sbr.rel (%p11012_p3) target bundleno = 1813 (0x715), region = 80 }
 0x707   : > { %v11335_v60 = vpop.f32.mrf.mxu1 }
 0x708   : > { %v9761_v13 = vadd.f32 %v9757_v0, %v8627_v54 }
 0x70a   : > { %9763 = vst [vmem:[#allocation3 + $0x8] sm:$0xff] %v9761_v13 }
 0x70b   : > { %v11013_v15 = vld [vmem:[#allocation11] ss:$0 sm:$0xff] }
 0x70d   : > { %v9768_v55 = vld [vmem:[#allocation3] sm:$0xff] }
 0x70e   : > { %v9777_v5 = vadd.f32 %v11013_v15, %v9768_v55 }
 0x710   : > { %9779 = vst [vmem:[%s14682_s7] sm:$0xff] %v9777_v5 }
 0x711   : > { %v9769_v32 = vld [vmem:[#allocation3 + $0x8] sm:$0xff] }
 0x712   : > { %v9778_v20 = vadd.f32 %v11013_v15, %v9769_v32 }
 0x714   : > { %9780 = vst [vmem:[%s14682_s7 + $0x8] sm:$0xff] %v9778_v20 }
 0x715 PF: > { %s14715_s27 = sld [smem:[#allocation17_spill]]  ;;  %s14718_s24 = smov %s13188_s25 }
 0x716   : > { %s14716_s29 = sld [smem:[#allocation16_spill]] }
 0x717   : > { %s14717_s26 = sld [smem:[#allocation18_spill]] }
 0x71b   : > { %p16_p6 = scmp.ge.s32.totalorder %s14715_s27, 4  }
 0x71c   : > { %s14719_s25 = smov %s14716_s29 }
 0x71d   :  { %18 = sbr.rel (!%p16_p6) target bundleno = 3 (0x3), region = 125 }
 0x722   :  { %9792 = vsyncpa [#allocation5], 1 }
 0x723   :  { %9794 = vsyncpa [#allocation5 + $0x1], 1 }
 0x724   :  { %9795 = vsyncpa [#allocation7], 1 }

</bundles_post_ra>
